<compile_context>
chip_gen: v7x
topology: tpu7x:2x2x1
jax: 0.10.0
libtpu: 0.0.40
codegen_flags: <defaults>
</compile_context>

<pallas_src>
import jax
import jax.numpy as jnp
from jax import lax
from jax.experimental import pallas as pl
from jax.experimental.pallas import tpu as pltpu

EPS = 1e-5  # nn.BatchNorm2d default eps


# ----------------------------------------- the kernel -----------------------------------------

def afim_init_block_kernel(x_ref,
                           w1_ref, g1_ref, b1_ref,
                           w2_ref, g2_ref, b2_ref,
                           ws_ref, gs_ref, bs_ref,
                           out_ref,
                           pad_ref, col_ref):
    N, H, W, Cin = x_ref.shape
    Cout = out_ref.shape[-1]
    M = N * H * W
    inv_m = 1.0 / M

    def bn(y, gamma, beta, relu):
        # Single-pass training-mode BN in f32, folded into one per-channel fma.
        s1 = jnp.sum(y, axis=0, keepdims=True)
        s2 = jnp.sum(y * y, axis=0, keepdims=True)
        mean = s1 * inv_m
        var = s2 * inv_m - mean * mean            # biased batch variance (PyTorch train mode)
        scale = gamma * lax.rsqrt(var + EPS)      # rsqrt -> EUP slot
        shift = beta - mean * scale
        out = y * scale + shift
        return jnp.maximum(out, 0.0) if relu else out

    def conv3x3_matmul(c, w_flat):
        # Build the im2col patch matrix (M, 9*c) in VMEM, then a single K = 9*c MXU matmul.
        for kh in range(3):
            for kw in range(3):
                k = kh * 3 + kw
                patch = pad_ref[:, kh:kh + H, kw:kw + W, :c].reshape(M, c)
                col_ref[:, k * c:(k + 1) * c] = patch.astype(col_ref.dtype)
        return jnp.dot(col_ref[:, :9 * c], w_flat, preferred_element_type=jnp.float32)

    # --- zero only the 1-wide halo border of the pad scratch (interior is always overwritten) ---
    Hp, Wp, Cp = pad_ref.shape[1], pad_ref.shape[2], pad_ref.shape[3]
    zrow = jnp.zeros((N, 1, Wp, Cp), pad_ref.dtype)
    zcol = jnp.zeros((N, Hp, 1, Cp), pad_ref.dtype)
    pad_ref[:, 0:1, :, :] = zrow
    pad_ref[:, H + 1:H + 2, :, :] = zrow
    pad_ref[:, :, 0:1, :] = zcol
    pad_ref[:, :, W + 1:W + 2, :] = zcol

    # --- conv1 (3x3, pad=1, stride=1) -> bn1 -> relu ---
    x = x_ref[...]
    pad_ref[:, 1:H + 1, 1:W + 1, :Cin] = x
    c1 = conv3x3_matmul(Cin, w1_ref[...])                       # (M, Cout) f32
    y1 = bn(c1, g1_ref[...], b1_ref[...], relu=True)

    # --- conv2 (3x3, pad=1, stride=1) -> bn2 ---
    pad_ref[:, 1:H + 1, 1:W + 1, :Cout] = y1.reshape(N, H, W, Cout)
    c2 = conv3x3_matmul(Cout, w2_ref[...])                      # (M, Cout) f32
    y2 = bn(c2, g2_ref[...], b2_ref[...], relu=False)

    # --- projection shortcut: 1x1 conv -> bn ---
    sc = jnp.dot(x.reshape(M, Cin).astype(ws_ref.dtype), ws_ref[...],
                 preferred_element_type=jnp.float32)
    ysc = bn(sc, gs_ref[...], bs_ref[...], relu=False)

    # --- residual add + relu, lane-dense 2-D store ---
    out_ref[...] = jnp.maximum(y2 + ysc, 0.0)


# ----------------------------------------- wrapper -----------------------------------------

def afim_init_block(x, params, *, mxu_dtype=jnp.bfloat16):
    """x: (N, H, W, Cin) float32 NHWC. Returns (N, H, W, Cout) float32."""
    N, H, W, Cin = x.shape
    Cout = params["w1"].shape[-1]
    Cp = max(Cin, Cout)          # shared pad/im2col scratch channel width
    M = N * H * W

    # Weight plumbing: flatten 3x3 kernels to im2col (kh, kw, cin) row order; cast MXU operands.
    w1f = params["w1"].reshape(9 * Cin, Cout).astype(mxu_dtype)
    w2f = params["w2"].reshape(9 * Cout, Cout).astype(mxu_dtype)
    wsf = params["ws"].astype(mxu_dtype)

    # Rough VMEM footprint estimate; raise the scoped-VMEM limit only if needed (cap < v7x 64 MiB).
    mxu_isz = jnp.dtype(mxu_dtype).itemsize
    est_bytes = (4 * (x.size + M * Cout)                      # input + output
                 + 4 * N * (H + 2) * (W + 2) * Cp             # pad scratch (f32)
                 + mxu_isz * M * 9 * Cp                       # im2col scratch
                 + mxu_isz * (w1f.size + w2f.size + wsf.size))
    compiler_params = None
    if 3 * est_bytes > 16 * 1024 * 1024:
        compiler_params = pltpu.CompilerParams(
            vmem_limit_bytes=int(min(3 * est_bytes, 48 * 1024 * 1024)))

    vmem = pl.BlockSpec(memory_space=pltpu.MemorySpace.VMEM)
    out2d = pl.pallas_call(
        afim_init_block_kernel,
        out_shape=jax.ShapeDtypeStruct((M, Cout), jnp.float32),    # lane-dense 2-D output slab
        in_specs=[vmem] * 10,
        out_specs=vmem,
        scratch_shapes=[
            pltpu.VMEM((N, H + 2, W + 2, Cp), jnp.float32),        # zero-halo conv input (f32)
            pltpu.VMEM((M, 9 * Cp), mxu_dtype),                    # im2col patch matrix (MXU dtype)
        ],
        compiler_params=compiler_params,
    )(x,
      w1f, params["g1"], params["b1"],
      w2f, params["g2"], params["b2"],
      wsf, params["gs"], params["bs"])
    return out2d.reshape(N, H, W, Cout)


# ----------------------------------------- reference -----------------------------------------

def afim_init_block_ref(x, params):
    def bn(y, g, b):
        mean = jnp.mean(y, axis=(0, 1, 2), keepdims=True)
        var = jnp.mean((y - mean) ** 2, axis=(0, 1, 2), keepdims=True)
        return (y - mean) / jnp.sqrt(var + EPS) * g.reshape(1, 1, 1, -1) + b.reshape(1, 1, 1, -1)

    def conv(y, w):
        return lax.conv_general_dilated(
            y, w, window_strides=(1, 1), padding="SAME",
            dimension_numbers=("NHWC", "HWIO", "NHWC"))

    out = jax.nn.relu(bn(conv(x, params["w1"]), params["g1"], params["b1"]))
    out = bn(conv(out, params["w2"]), params["g2"], params["b2"])
    ws = params["ws"].reshape(1, 1, *params["ws"].shape)
    sc = bn(conv(x, ws), params["gs"], params["bs"])
    return jax.nn.relu(out + sc)


# ----------------------------------------- main -----------------------------------------

if __name__ == "__main__":
    key = jax.random.PRNGKey(0)
    ks = jax.random.split(key, 10)

    # in_planes=4, planes=8, stride=1  (projection shortcut since in_planes != planes)
    N, H, W, Cin, Cout = 2, 8, 8, 4, 8

    x = jax.random.normal(ks[0], (N, H, W, Cin), jnp.float32)
    params = {
        "w1": 0.1 * jax.random.normal(ks[1], (3, 3, Cin, Cout), jnp.float32),
        "g1": 1.0 + 0.1 * jax.random.normal(ks[2], (1, Cout), jnp.float32),
        "b1": 0.1 * jax.random.normal(ks[3], (1, Cout), jnp.float32),
        "w2": 0.1 * jax.random.normal(ks[4], (3, 3, Cout, Cout), jnp.float32),
        "g2": 1.0 + 0.1 * jax.random.normal(ks[5], (1, Cout), jnp.float32),
        "b2": 0.1 * jax.random.normal(ks[6], (1, Cout), jnp.float32),
        "ws": 0.1 * jax.random.normal(ks[7], (Cin, Cout), jnp.float32),
        "gs": 1.0 + 0.1 * jax.random.normal(ks[8], (1, Cout), jnp.float32),
        "bs": 0.1 * jax.random.normal(ks[9], (1, Cout), jnp.float32),
    }

    ref = jax.block_until_ready(afim_init_block_ref(x, params))

    # Strict check: f32 MXU path must match the module forward to fp tolerance.
    out_f32 = jax.block_until_ready(afim_init_block(x, params, mxu_dtype=jnp.float32))
    assert out_f32.shape == (N, H, W, Cout)
    err32 = float(jnp.max(jnp.abs(out_f32 - ref)))
    assert jnp.allclose(out_f32, ref, atol=1e-4, rtol=1e-4), err32

    # Fast path: bf16 MXU operands (f32 accumulation, f32 BN) -> looser tolerance.
    out_bf16 = jax.block_until_ready(afim_init_block(x, params))
    assert out_bf16.shape == (N, H, W, Cout)
    errbf = float(jnp.max(jnp.abs(out_bf16 - ref)))
    assert jnp.allclose(out_bf16, ref, atol=7.5e-2, rtol=7.5e-2), errbf

    print("KERNEL_OK")
</pallas_src>

<mosaic_0001>
module attributes {stable_mosaic.version = 11 : i64} {
  func.func @afim_init_block_kernel(%arg0: memref<2x8x8x4xf32, #tpu.memory_space<vmem>>, %arg1: memref<36x8xf32, #tpu.memory_space<vmem>>, %arg2: memref<1x8xf32, #tpu.memory_space<vmem>>, %arg3: memref<1x8xf32, #tpu.memory_space<vmem>>, %arg4: memref<72x8xf32, #tpu.memory_space<vmem>>, %arg5: memref<1x8xf32, #tpu.memory_space<vmem>>, %arg6: memref<1x8xf32, #tpu.memory_space<vmem>>, %arg7: memref<4x8xf32, #tpu.memory_space<vmem>>, %arg8: memref<1x8xf32, #tpu.memory_space<vmem>>, %arg9: memref<1x8xf32, #tpu.memory_space<vmem>>, %arg10: memref<128x8xf32, #tpu.memory_space<vmem>>, %arg11: memref<2x10x10x8xf32, #tpu.memory_space<vmem>>, %arg12: memref<128x72xf32, #tpu.memory_space<vmem>>) attributes {dimension_semantics = [], scalar_prefetch = 0 : i64, scratch_operands = 2 : i64, tpu.core_type = #tpu.core_type<tc>} {
    %cst = arith.constant 0.000000e+00 : f32
    %0 = vector.broadcast %cst : f32 to vector<2x1x10x8xf32>
    %cst_0 = arith.constant 0.000000e+00 : f32
    %1 = vector.broadcast %cst_0 : f32 to vector<2x10x1x8xf32>
    %c0 = arith.constant 0 : index
    %c0_1 = arith.constant 0 : index
    %c0_2 = arith.constant 0 : index
    %c0_3 = arith.constant 0 : index
    %2 = vector.load %arg11[%c0, %c0_1, %c0_2, %c0_3] : memref<2x10x10x8xf32, #tpu.memory_space<vmem>>, vector<2x1x10x8xf32>
    tpu.vector_store %arg11[%c0, %c0_1, %c0_2, %c0_3], %0 {strides = array<i32>} : memref<2x10x10x8xf32, #tpu.memory_space<vmem>>, vector<2x1x10x8xf32>,
    %c0_4 = arith.constant 0 : index
    %c9 = arith.constant 9 : index
    %c0_5 = arith.constant 0 : index
    %c0_6 = arith.constant 0 : index
    %3 = vector.load %arg11[%c0_4, %c9, %c0_5, %c0_6] : memref<2x10x10x8xf32, #tpu.memory_space<vmem>>, vector<2x1x10x8xf32>
    tpu.vector_store %arg11[%c0_4, %c9, %c0_5, %c0_6], %0 {strides = array<i32>} : memref<2x10x10x8xf32, #tpu.memory_space<vmem>>, vector<2x1x10x8xf32>,
    %c0_7 = arith.constant 0 : index
    %c0_8 = arith.constant 0 : index
    %c0_9 = arith.constant 0 : index
    %c0_10 = arith.constant 0 : index
    %4 = vector.load %arg11[%c0_7, %c0_8, %c0_9, %c0_10] : memref<2x10x10x8xf32, #tpu.memory_space<vmem>>, vector<2x10x1x8xf32>
    tpu.vector_store %arg11[%c0_7, %c0_8, %c0_9, %c0_10], %1 {strides = array<i32>} : memref<2x10x10x8xf32, #tpu.memory_space<vmem>>, vector<2x10x1x8xf32>,
    %c0_11 = arith.constant 0 : index
    %c0_12 = arith.constant 0 : index
    %c9_13 = arith.constant 9 : index
    %c0_14 = arith.constant 0 : index
    %5 = vector.load %arg11[%c0_11, %c0_12, %c9_13, %c0_14] : memref<2x10x10x8xf32, #tpu.memory_space<vmem>>, vector<2x10x1x8xf32>
    tpu.vector_store %arg11[%c0_11, %c0_12, %c9_13, %c0_14], %1 {strides = array<i32>} : memref<2x10x10x8xf32, #tpu.memory_space<vmem>>, vector<2x10x1x8xf32>,
    %c0_15 = arith.constant 0 : index
    %c0_16 = arith.constant 0 : index
    %c0_17 = arith.constant 0 : index
    %c0_18 = arith.constant 0 : index
    %6 = vector.load %arg0[%c0_15, %c0_16, %c0_17, %c0_18] : memref<2x8x8x4xf32, #tpu.memory_space<vmem>>, vector<2x8x8x4xf32>
    %c0_19 = arith.constant 0 : index
    %c1 = arith.constant 1 : index
    %c1_20 = arith.constant 1 : index
    %c0_21 = arith.constant 0 : index
    %7 = vector.load %arg11[%c0_19, %c1, %c1_20, %c0_21] : memref<2x10x10x8xf32, #tpu.memory_space<vmem>>, vector<2x8x8x4xf32>
    tpu.vector_store %arg11[%c0_19, %c1, %c1_20, %c0_21], %6 {strides = array<i32>} : memref<2x10x10x8xf32, #tpu.memory_space<vmem>>, vector<2x8x8x4xf32>,
    %c0_22 = arith.constant 0 : index
    %c0_23 = arith.constant 0 : index
    %8 = vector.load %arg1[%c0_22, %c0_23] : memref<36x8xf32, #tpu.memory_space<vmem>>, vector<36x8xf32>
    %c0_24 = arith.constant 0 : index
    %c0_25 = arith.constant 0 : index
    %c0_26 = arith.constant 0 : index
    %c0_27 = arith.constant 0 : index
    %9 = vector.load %arg11[%c0_24, %c0_25, %c0_26, %c0_27] : memref<2x10x10x8xf32, #tpu.memory_space<vmem>>, vector<2x8x8x4xf32>
    %10 = vector.shape_cast %9 : vector<2x8x8x4xf32> to vector<128x4xf32>
    %c0_28 = arith.constant 0 : index
    %c0_29 = arith.constant 0 : index
    %11 = vector.load %arg12[%c0_28, %c0_29] : memref<128x72xf32, #tpu.memory_space<vmem>>, vector<128x4xf32>
    tpu.vector_store %arg12[%c0_28, %c0_29], %10 {strides = array<i32>} : memref<128x72xf32, #tpu.memory_space<vmem>>, vector<128x4xf32>,
    %c0_30 = arith.constant 0 : index
    %c0_31 = arith.constant 0 : index
    %c1_32 = arith.constant 1 : index
    %c0_33 = arith.constant 0 : index
    %12 = vector.load %arg11[%c0_30, %c0_31, %c1_32, %c0_33] : memref<2x10x10x8xf32, #tpu.memory_space<vmem>>, vector<2x8x8x4xf32>
    %13 = vector.shape_cast %12 : vector<2x8x8x4xf32> to vector<128x4xf32>
    %c0_34 = arith.constant 0 : index
    %c4 = arith.constant 4 : index
    %14 = vector.load %arg12[%c0_34, %c4] : memref<128x72xf32, #tpu.memory_space<vmem>>, vector<128x4xf32>
    tpu.vector_store %arg12[%c0_34, %c4], %13 {strides = array<i32>} : memref<128x72xf32, #tpu.memory_space<vmem>>, vector<128x4xf32>,
    %c0_35 = arith.constant 0 : index
    %c0_36 = arith.constant 0 : index
    %c2 = arith.constant 2 : index
    %c0_37 = arith.constant 0 : index
    %15 = vector.load %arg11[%c0_35, %c0_36, %c2, %c0_37] : memref<2x10x10x8xf32, #tpu.memory_space<vmem>>, vector<2x8x8x4xf32>
    %16 = vector.shape_cast %15 : vector<2x8x8x4xf32> to vector<128x4xf32>
    %c0_38 = arith.constant 0 : index
    %c8 = arith.constant 8 : index
    %17 = vector.load %arg12[%c0_38, %c8] : memref<128x72xf32, #tpu.memory_space<vmem>>, vector<128x4xf32>
    tpu.vector_store %arg12[%c0_38, %c8], %16 {strides = array<i32>} : memref<128x72xf32, #tpu.memory_space<vmem>>, vector<128x4xf32>,
    %c0_39 = arith.constant 0 : index
    %c1_40 = arith.constant 1 : index
    %c0_41 = arith.constant 0 : index
    %c0_42 = arith.constant 0 : index
    %18 = vector.load %arg11[%c0_39, %c1_40, %c0_41, %c0_42] : memref<2x10x10x8xf32, #tpu.memory_space<vmem>>, vector<2x8x8x4xf32>
    %19 = vector.shape_cast %18 : vector<2x8x8x4xf32> to vector<128x4xf32>
    %c0_43 = arith.constant 0 : index
    %c12 = arith.constant 12 : index
    %20 = vector.load %arg12[%c0_43, %c12] : memref<128x72xf32, #tpu.memory_space<vmem>>, vector<128x4xf32>
    tpu.vector_store %arg12[%c0_43, %c12], %19 {strides = array<i32>} : memref<128x72xf32, #tpu.memory_space<vmem>>, vector<128x4xf32>,
    %c0_44 = arith.constant 0 : index
    %c1_45 = arith.constant 1 : index
    %c1_46 = arith.constant 1 : index
    %c0_47 = arith.constant 0 : index
    %21 = vector.load %arg11[%c0_44, %c1_45, %c1_46, %c0_47] : memref<2x10x10x8xf32, #tpu.memory_space<vmem>>, vector<2x8x8x4xf32>
    %22 = vector.shape_cast %21 : vector<2x8x8x4xf32> to vector<128x4xf32>
    %c0_48 = arith.constant 0 : index
    %c16 = arith.constant 16 : index
    %23 = vector.load %arg12[%c0_48, %c16] : memref<128x72xf32, #tpu.memory_space<vmem>>, vector<128x4xf32>
    tpu.vector_store %arg12[%c0_48, %c16], %22 {strides = array<i32>} : memref<128x72xf32, #tpu.memory_space<vmem>>, vector<128x4xf32>,
    %c0_49 = arith.constant 0 : index
    %c1_50 = arith.constant 1 : index
    %c2_51 = arith.constant 2 : index
    %c0_52 = arith.constant 0 : index
    %24 = vector.load %arg11[%c0_49, %c1_50, %c2_51, %c0_52] : memref<2x10x10x8xf32, #tpu.memory_space<vmem>>, vector<2x8x8x4xf32>
    %25 = vector.shape_cast %24 : vector<2x8x8x4xf32> to vector<128x4xf32>
    %c0_53 = arith.constant 0 : index
    %c20 = arith.constant 20 : index
    %26 = vector.load %arg12[%c0_53, %c20] : memref<128x72xf32, #tpu.memory_space<vmem>>, vector<128x4xf32>
    tpu.vector_store %arg12[%c0_53, %c20], %25 {strides = array<i32>} : memref<128x72xf32, #tpu.memory_space<vmem>>, vector<128x4xf32>,
    %c0_54 = arith.constant 0 : index
    %c2_55 = arith.constant 2 : index
    %c0_56 = arith.constant 0 : index
    %c0_57 = arith.constant 0 : index
    %27 = vector.load %arg11[%c0_54, %c2_55, %c0_56, %c0_57] : memref<2x10x10x8xf32, #tpu.memory_space<vmem>>, vector<2x8x8x4xf32>
    %28 = vector.shape_cast %27 : vector<2x8x8x4xf32> to vector<128x4xf32>
    %c0_58 = arith.constant 0 : index
    %c24 = arith.constant 24 : index
    %29 = vector.load %arg12[%c0_58, %c24] : memref<128x72xf32, #tpu.memory_space<vmem>>, vector<128x4xf32>
    tpu.vector_store %arg12[%c0_58, %c24], %28 {strides = array<i32>} : memref<128x72xf32, #tpu.memory_space<vmem>>, vector<128x4xf32>,
    %c0_59 = arith.constant 0 : index
    %c2_60 = arith.constant 2 : index
    %c1_61 = arith.constant 1 : index
    %c0_62 = arith.constant 0 : index
    %30 = vector.load %arg11[%c0_59, %c2_60, %c1_61, %c0_62] : memref<2x10x10x8xf32, #tpu.memory_space<vmem>>, vector<2x8x8x4xf32>
    %31 = vector.shape_cast %30 : vector<2x8x8x4xf32> to vector<128x4xf32>
    %c0_63 = arith.constant 0 : index
    %c28 = arith.constant 28 : index
    %32 = vector.load %arg12[%c0_63, %c28] : memref<128x72xf32, #tpu.memory_space<vmem>>, vector<128x4xf32>
    tpu.vector_store %arg12[%c0_63, %c28], %31 {strides = array<i32>} : memref<128x72xf32, #tpu.memory_space<vmem>>, vector<128x4xf32>,
    %c0_64 = arith.constant 0 : index
    %c2_65 = arith.constant 2 : index
    %c2_66 = arith.constant 2 : index
    %c0_67 = arith.constant 0 : index
    %33 = vector.load %arg11[%c0_64, %c2_65, %c2_66, %c0_67] : memref<2x10x10x8xf32, #tpu.memory_space<vmem>>, vector<2x8x8x4xf32>
    %34 = vector.shape_cast %33 : vector<2x8x8x4xf32> to vector<128x4xf32>
    %c0_68 = arith.constant 0 : index
    %c32 = arith.constant 32 : index
    %35 = vector.load %arg12[%c0_68, %c32] : memref<128x72xf32, #tpu.memory_space<vmem>>, vector<128x4xf32>
    tpu.vector_store %arg12[%c0_68, %c32], %34 {strides = array<i32>} : memref<128x72xf32, #tpu.memory_space<vmem>>, vector<128x4xf32>,
    %c0_69 = arith.constant 0 : index
    %c0_70 = arith.constant 0 : index
    %36 = vector.load %arg12[%c0_69, %c0_70] : memref<128x72xf32, #tpu.memory_space<vmem>>, vector<128x36xf32>
    %cst_71 = arith.constant dense<0.000000e+00> : vector<128x8xf32>
    %37 = tpu.matmul %36, %8, %cst_71 {dimension_numbers = #tpu.dot_dimension_numbers<[1], [0], [0], [1], [0, 0, 1, 1], [], []>} : vector<128x36xf32>, vector<36x8xf32>, vector<128x8xf32> -> vector<128x8xf32>
    %c0_72 = arith.constant 0 : index
    %c0_73 = arith.constant 0 : index
    %38 = vector.load %arg2[%c0_72, %c0_73] : memref<1x8xf32, #tpu.memory_space<vmem>>, vector<1x8xf32>
    %c0_74 = arith.constant 0 : index
    %c0_75 = arith.constant 0 : index
    %39 = vector.load %arg3[%c0_74, %c0_75] : memref<1x8xf32, #tpu.memory_space<vmem>>, vector<1x8xf32>
    %cst_76 = arith.constant dense<0.000000e+00> : vector<8xf32>
    %40 = vector.multi_reduction <add>, %37, %cst_76 [0] : vector<128x8xf32> to vector<8xf32>
    %41 = vector.shape_cast %40 : vector<8xf32> to vector<1x8xf32>
    %42 = arith.mulf %37, %37 : vector<128x8xf32>
    %cst_77 = arith.constant dense<0.000000e+00> : vector<8xf32>
    %43 = vector.multi_reduction <add>, %42, %cst_77 [0] : vector<128x8xf32> to vector<8xf32>
    %44 = vector.shape_cast %43 : vector<8xf32> to vector<1x8xf32>
    %cst_78 = arith.constant 7.812500e-03 : f32
    %45 = vector.broadcast %cst_78 : f32 to vector<1x8xf32>
    %46 = arith.mulf %41, %45 : vector<1x8xf32>
    %cst_79 = arith.constant 7.812500e-03 : f32
    %47 = vector.broadcast %cst_79 : f32 to vector<1x8xf32>
    %48 = arith.mulf %44, %47 : vector<1x8xf32>
    %49 = arith.mulf %46, %46 : vector<1x8xf32>
    %50 = arith.subf %48, %49 : vector<1x8xf32>
    %cst_80 = arith.constant 9.99999974E-6 : f32
    %51 = vector.broadcast %cst_80 : f32 to vector<1x8xf32>
    %52 = arith.addf %50, %51 : vector<1x8xf32>
    %53 = math.rsqrt %52 : vector<1x8xf32>
    %54 = arith.mulf %38, %53 : vector<1x8xf32>
    %55 = arith.mulf %46, %54 : vector<1x8xf32>
    %56 = arith.subf %39, %55 : vector<1x8xf32>
    %57 = vector.broadcast %54 : vector<1x8xf32> to vector<128x8xf32>
    %58 = arith.mulf %37, %57 : vector<128x8xf32>
    %59 = vector.broadcast %56 : vector<1x8xf32> to vector<128x8xf32>
    %60 = arith.addf %58, %59 : vector<128x8xf32>
    %cst_81 = arith.constant 0.000000e+00 : f32
    %61 = vector.broadcast %cst_81 : f32 to vector<128x8xf32>
    %62 = arith.maximumf %60, %61 : vector<128x8xf32>
    %63 = vector.shape_cast %62 : vector<128x8xf32> to vector<2x8x8x8xf32>
    %c0_82 = arith.constant 0 : index
    %c1_83 = arith.constant 1 : index
    %c1_84 = arith.constant 1 : index
    %c0_85 = arith.constant 0 : index
    %64 = vector.load %arg11[%c0_82, %c1_83, %c1_84, %c0_85] : memref<2x10x10x8xf32, #tpu.memory_space<vmem>>, vector<2x8x8x8xf32>
    tpu.vector_store %arg11[%c0_82, %c1_83, %c1_84, %c0_85], %63 {strides = array<i32>} : memref<2x10x10x8xf32, #tpu.memory_space<vmem>>, vector<2x8x8x8xf32>,
    %c0_86 = arith.constant 0 : index
    %c0_87 = arith.constant 0 : index
    %65 = vector.load %arg4[%c0_86, %c0_87] : memref<72x8xf32, #tpu.memory_space<vmem>>, vector<72x8xf32>
    %c0_88 = arith.constant 0 : index
    %c0_89 = arith.constant 0 : index
    %c0_90 = arith.constant 0 : index
    %c0_91 = arith.constant 0 : index
    %66 = vector.load %arg11[%c0_88, %c0_89, %c0_90, %c0_91] : memref<2x10x10x8xf32, #tpu.memory_space<vmem>>, vector<2x8x8x8xf32>
    %67 = vector.shape_cast %66 : vector<2x8x8x8xf32> to vector<128x8xf32>
    %c0_92 = arith.constant 0 : index
    %c0_93 = arith.constant 0 : index
    %68 = vector.load %arg12[%c0_92, %c0_93] : memref<128x72xf32, #tpu.memory_space<vmem>>, vector<128x8xf32>
    tpu.vector_store %arg12[%c0_92, %c0_93], %67 {strides = array<i32>} : memref<128x72xf32, #tpu.memory_space<vmem>>, vector<128x8xf32>,
    %c0_94 = arith.constant 0 : index
    %c0_95 = arith.constant 0 : index
    %c1_96 = arith.constant 1 : index
    %c0_97 = arith.constant 0 : index
    %69 = vector.load %arg11[%c0_94, %c0_95, %c1_96, %c0_97] : memref<2x10x10x8xf32, #tpu.memory_space<vmem>>, vector<2x8x8x8xf32>
    %70 = vector.shape_cast %69 : vector<2x8x8x8xf32> to vector<128x8xf32>
    %c0_98 = arith.constant 0 : index
    %c8_99 = arith.constant 8 : index
    %71 = vector.load %arg12[%c0_98, %c8_99] : memref<128x72xf32, #tpu.memory_space<vmem>>, vector<128x8xf32>
    tpu.vector_store %arg12[%c0_98, %c8_99], %70 {strides = array<i32>} : memref<128x72xf32, #tpu.memory_space<vmem>>, vector<128x8xf32>,
    %c0_100 = arith.constant 0 : index
    %c0_101 = arith.constant 0 : index
    %c2_102 = arith.constant 2 : index
    %c0_103 = arith.constant 0 : index
    %72 = vector.load %arg11[%c0_100, %c0_101, %c2_102, %c0_103] : memref<2x10x10x8xf32, #tpu.memory_space<vmem>>, vector<2x8x8x8xf32>
    %73 = vector.shape_cast %72 : vector<2x8x8x8xf32> to vector<128x8xf32>
    %c0_104 = arith.constant 0 : index
    %c16_105 = arith.constant 16 : index
    %74 = vector.load %arg12[%c0_104, %c16_105] : memref<128x72xf32, #tpu.memory_space<vmem>>, vector<128x8xf32>
    tpu.vector_store %arg12[%c0_104, %c16_105], %73 {strides = array<i32>} : memref<128x72xf32, #tpu.memory_space<vmem>>, vector<128x8xf32>,
    %c0_106 = arith.constant 0 : index
    %c1_107 = arith.constant 1 : index
    %c0_108 = arith.constant 0 : index
    %c0_109 = arith.constant 0 : index
    %75 = vector.load %arg11[%c0_106, %c1_107, %c0_108, %c0_109] : memref<2x10x10x8xf32, #tpu.memory_space<vmem>>, vector<2x8x8x8xf32>
    %76 = vector.shape_cast %75 : vector<2x8x8x8xf32> to vector<128x8xf32>
    %c0_110 = arith.constant 0 : index
    %c24_111 = arith.constant 24 : index
    %77 = vector.load %arg12[%c0_110, %c24_111] : memref<128x72xf32, #tpu.memory_space<vmem>>, vector<128x8xf32>
    tpu.vector_store %arg12[%c0_110, %c24_111], %76 {strides = array<i32>} : memref<128x72xf32, #tpu.memory_space<vmem>>, vector<128x8xf32>,
    %c0_112 = arith.constant 0 : index
    %c1_113 = arith.constant 1 : index
    %c1_114 = arith.constant 1 : index
    %c0_115 = arith.constant 0 : index
    %78 = vector.load %arg11[%c0_112, %c1_113, %c1_114, %c0_115] : memref<2x10x10x8xf32, #tpu.memory_space<vmem>>, vector<2x8x8x8xf32>
    %79 = vector.shape_cast %78 : vector<2x8x8x8xf32> to vector<128x8xf32>
    %c0_116 = arith.constant 0 : index
    %c32_117 = arith.constant 32 : index
    %80 = vector.load %arg12[%c0_116, %c32_117] : memref<128x72xf32, #tpu.memory_space<vmem>>, vector<128x8xf32>
    tpu.vector_store %arg12[%c0_116, %c32_117], %79 {strides = array<i32>} : memref<128x72xf32, #tpu.memory_space<vmem>>, vector<128x8xf32>,
    %c0_118 = arith.constant 0 : index
    %c1_119 = arith.constant 1 : index
    %c2_120 = arith.constant 2 : index
    %c0_121 = arith.constant 0 : index
    %81 = vector.load %arg11[%c0_118, %c1_119, %c2_120, %c0_121] : memref<2x10x10x8xf32, #tpu.memory_space<vmem>>, vector<2x8x8x8xf32>
    %82 = vector.shape_cast %81 : vector<2x8x8x8xf32> to vector<128x8xf32>
    %c0_122 = arith.constant 0 : index
    %c40 = arith.constant 40 : index
    %83 = vector.load %arg12[%c0_122, %c40] : memref<128x72xf32, #tpu.memory_space<vmem>>, vector<128x8xf32>
    tpu.vector_store %arg12[%c0_122, %c40], %82 {strides = array<i32>} : memref<128x72xf32, #tpu.memory_space<vmem>>, vector<128x8xf32>,
    %c0_123 = arith.constant 0 : index
    %c2_124 = arith.constant 2 : index
    %c0_125 = arith.constant 0 : index
    %c0_126 = arith.constant 0 : index
    %84 = vector.load %arg11[%c0_123, %c2_124, %c0_125, %c0_126] : memref<2x10x10x8xf32, #tpu.memory_space<vmem>>, vector<2x8x8x8xf32>
    %85 = vector.shape_cast %84 : vector<2x8x8x8xf32> to vector<128x8xf32>
    %c0_127 = arith.constant 0 : index
    %c48 = arith.constant 48 : index
    %86 = vector.load %arg12[%c0_127, %c48] : memref<128x72xf32, #tpu.memory_space<vmem>>, vector<128x8xf32>
    tpu.vector_store %arg12[%c0_127, %c48], %85 {strides = array<i32>} : memref<128x72xf32, #tpu.memory_space<vmem>>, vector<128x8xf32>,
    %c0_128 = arith.constant 0 : index
    %c2_129 = arith.constant 2 : index
    %c1_130 = arith.constant 1 : index
    %c0_131 = arith.constant 0 : index
    %87 = vector.load %arg11[%c0_128, %c2_129, %c1_130, %c0_131] : memref<2x10x10x8xf32, #tpu.memory_space<vmem>>, vector<2x8x8x8xf32>
    %88 = vector.shape_cast %87 : vector<2x8x8x8xf32> to vector<128x8xf32>
    %c0_132 = arith.constant 0 : index
    %c56 = arith.constant 56 : index
    %89 = vector.load %arg12[%c0_132, %c56] : memref<128x72xf32, #tpu.memory_space<vmem>>, vector<128x8xf32>
    tpu.vector_store %arg12[%c0_132, %c56], %88 {strides = array<i32>} : memref<128x72xf32, #tpu.memory_space<vmem>>, vector<128x8xf32>,
    %c0_133 = arith.constant 0 : index
    %c2_134 = arith.constant 2 : index
    %c2_135 = arith.constant 2 : index
    %c0_136 = arith.constant 0 : index
    %90 = vector.load %arg11[%c0_133, %c2_134, %c2_135, %c0_136] : memref<2x10x10x8xf32, #tpu.memory_space<vmem>>, vector<2x8x8x8xf32>
    %91 = vector.shape_cast %90 : vector<2x8x8x8xf32> to vector<128x8xf32>
    %c0_137 = arith.constant 0 : index
    %c64 = arith.constant 64 : index
    %92 = vector.load %arg12[%c0_137, %c64] : memref<128x72xf32, #tpu.memory_space<vmem>>, vector<128x8xf32>
    tpu.vector_store %arg12[%c0_137, %c64], %91 {strides = array<i32>} : memref<128x72xf32, #tpu.memory_space<vmem>>, vector<128x8xf32>,
    %c0_138 = arith.constant 0 : index
    %c0_139 = arith.constant 0 : index
    %93 = vector.load %arg12[%c0_138, %c0_139] : memref<128x72xf32, #tpu.memory_space<vmem>>, vector<128x72xf32>
    %cst_140 = arith.constant dense<0.000000e+00> : vector<128x8xf32>
    %94 = tpu.matmul %93, %65, %cst_140 {dimension_numbers = #tpu.dot_dimension_numbers<[1], [0], [0], [1], [0, 0, 1, 1], [], []>} : vector<128x72xf32>, vector<72x8xf32>, vector<128x8xf32> -> vector<128x8xf32>
    %c0_141 = arith.constant 0 : index
    %c0_142 = arith.constant 0 : index
    %95 = vector.load %arg5[%c0_141, %c0_142] : memref<1x8xf32, #tpu.memory_space<vmem>>, vector<1x8xf32>
    %c0_143 = arith.constant 0 : index
    %c0_144 = arith.constant 0 : index
    %96 = vector.load %arg6[%c0_143, %c0_144] : memref<1x8xf32, #tpu.memory_space<vmem>>, vector<1x8xf32>
    %cst_145 = arith.constant dense<0.000000e+00> : vector<8xf32>
    %97 = vector.multi_reduction <add>, %94, %cst_145 [0] : vector<128x8xf32> to vector<8xf32>
    %98 = vector.shape_cast %97 : vector<8xf32> to vector<1x8xf32>
    %99 = arith.mulf %94, %94 : vector<128x8xf32>
    %cst_146 = arith.constant dense<0.000000e+00> : vector<8xf32>
    %100 = vector.multi_reduction <add>, %99, %cst_146 [0] : vector<128x8xf32> to vector<8xf32>
    %101 = vector.shape_cast %100 : vector<8xf32> to vector<1x8xf32>
    %cst_147 = arith.constant 7.812500e-03 : f32
    %102 = vector.broadcast %cst_147 : f32 to vector<1x8xf32>
    %103 = arith.mulf %98, %102 : vector<1x8xf32>
    %cst_148 = arith.constant 7.812500e-03 : f32
    %104 = vector.broadcast %cst_148 : f32 to vector<1x8xf32>
    %105 = arith.mulf %101, %104 : vector<1x8xf32>
    %106 = arith.mulf %103, %103 : vector<1x8xf32>
    %107 = arith.subf %105, %106 : vector<1x8xf32>
    %cst_149 = arith.constant 9.99999974E-6 : f32
    %108 = vector.broadcast %cst_149 : f32 to vector<1x8xf32>
    %109 = arith.addf %107, %108 : vector<1x8xf32>
    %110 = math.rsqrt %109 : vector<1x8xf32>
    %111 = arith.mulf %95, %110 : vector<1x8xf32>
    %112 = arith.mulf %103, %111 : vector<1x8xf32>
    %113 = arith.subf %96, %112 : vector<1x8xf32>
    %114 = vector.broadcast %111 : vector<1x8xf32> to vector<128x8xf32>
    %115 = arith.mulf %94, %114 : vector<128x8xf32>
    %116 = vector.broadcast %113 : vector<1x8xf32> to vector<128x8xf32>
    %117 = arith.addf %115, %116 : vector<128x8xf32>
    %118 = vector.shape_cast %6 : vector<2x8x8x4xf32> to vector<128x4xf32>
    %c0_150 = arith.constant 0 : index
    %c0_151 = arith.constant 0 : index
    %119 = vector.load %arg7[%c0_150, %c0_151] : memref<4x8xf32, #tpu.memory_space<vmem>>, vector<4x8xf32>
    %cst_152 = arith.constant dense<0.000000e+00> : vector<128x8xf32>
    %120 = tpu.matmul %118, %119, %cst_152 {dimension_numbers = #tpu.dot_dimension_numbers<[1], [0], [0], [1], [0, 0, 1, 1], [], []>} : vector<128x4xf32>, vector<4x8xf32>, vector<128x8xf32> -> vector<128x8xf32>
    %c0_153 = arith.constant 0 : index
    %c0_154 = arith.constant 0 : index
    %121 = vector.load %arg8[%c0_153, %c0_154] : memref<1x8xf32, #tpu.memory_space<vmem>>, vector<1x8xf32>
    %c0_155 = arith.constant 0 : index
    %c0_156 = arith.constant 0 : index
    %122 = vector.load %arg9[%c0_155, %c0_156] : memref<1x8xf32, #tpu.memory_space<vmem>>, vector<1x8xf32>
    %cst_157 = arith.constant dense<0.000000e+00> : vector<8xf32>
    %123 = vector.multi_reduction <add>, %120, %cst_157 [0] : vector<128x8xf32> to vector<8xf32>
    %124 = vector.shape_cast %123 : vector<8xf32> to vector<1x8xf32>
    %125 = arith.mulf %120, %120 : vector<128x8xf32>
    %cst_158 = arith.constant dense<0.000000e+00> : vector<8xf32>
    %126 = vector.multi_reduction <add>, %125, %cst_158 [0] : vector<128x8xf32> to vector<8xf32>
    %127 = vector.shape_cast %126 : vector<8xf32> to vector<1x8xf32>
    %cst_159 = arith.constant 7.812500e-03 : f32
    %128 = vector.broadcast %cst_159 : f32 to vector<1x8xf32>
    %129 = arith.mulf %124, %128 : vector<1x8xf32>
    %cst_160 = arith.constant 7.812500e-03 : f32
    %130 = vector.broadcast %cst_160 : f32 to vector<1x8xf32>
    %131 = arith.mulf %127, %130 : vector<1x8xf32>
    %132 = arith.mulf %129, %129 : vector<1x8xf32>
    %133 = arith.subf %131, %132 : vector<1x8xf32>
    %cst_161 = arith.constant 9.99999974E-6 : f32
    %134 = vector.broadcast %cst_161 : f32 to vector<1x8xf32>
    %135 = arith.addf %133, %134 : vector<1x8xf32>
    %136 = math.rsqrt %135 : vector<1x8xf32>
    %137 = arith.mulf %121, %136 : vector<1x8xf32>
    %138 = arith.mulf %129, %137 : vector<1x8xf32>
    %139 = arith.subf %122, %138 : vector<1x8xf32>
    %140 = vector.broadcast %137 : vector<1x8xf32> to vector<128x8xf32>
    %141 = arith.mulf %120, %140 : vector<128x8xf32>
    %142 = vector.broadcast %139 : vector<1x8xf32> to vector<128x8xf32>
    %143 = arith.addf %141, %142 : vector<128x8xf32>
    %144 = arith.addf %117, %143 : vector<128x8xf32>
    %cst_162 = arith.constant 0.000000e+00 : f32
    %145 = vector.broadcast %cst_162 : f32 to vector<128x8xf32>
    %146 = arith.maximumf %144, %145 : vector<128x8xf32>
    %c0_163 = arith.constant 0 : index
    %c0_164 = arith.constant 0 : index
    %147 = vector.load %arg10[%c0_163, %c0_164] : memref<128x8xf32, #tpu.memory_space<vmem>>, vector<128x8xf32>
    tpu.vector_store %arg10[%c0_163, %c0_164], %146 {strides = array<i32>} : memref<128x8xf32, #tpu.memory_space<vmem>>, vector<128x8xf32>,
    return
  }
}

</mosaic_0001>

<bundles_post_ra>
// kernel: tpu_custom_call.1
= control target key start
LH: loop header
LB: loop body
LE: loop exit
PB: predicated region body
PF: predicated region fallthrough
CT: control target
= control target key end

     0   :  { %vm35_vm0 = vcmask 64512   ;;  %vm37_vm1 = vcmask 58368   ;;  %vm46_vm2 = vcmask 57344   ;;  %v3152_v0 = vmov 0.0   ;;  %s3153_s13 = smov 4   ;;  %s3154_s14 = smov 8   ;;  %s4659_s0 = inlined_call_operand.vmem [shape: f32[2,8,8,4], index: 0, kind: input, shape index: {}]   ;;  %s4660_s1 = inlined_call_operand.vmem [shape: f32[36,8], index: 1, kind: input, shape index: {}]   ;;  %s4661_s2 = inlined_call_operand.vmem [shape: f32[1,8], index: 2, kind: input, shape index: {}]   ;;  %s4662_s3 = inlined_call_operand.vmem [shape: f32[1,8], index: 3, kind: input, shape index: {}]   ;;  %s4663_s4 = inlined_call_operand.vmem [shape: f32[72,8], index: 4, kind: input, shape index: {}]   ;;  %s4664_s7 = inlined_call_operand.vmem [shape: f32[4,8], index: 7, kind: input, shape index: {}]   ;;  %s4665_s5 = inlined_call_operand.vmem [shape: f32[1,8], index: 5, kind: input, shape index: {}]   ;;  %s4666_s6 = inlined_call_operand.vmem [shape: f32[1,8], index: 6, kind: input, shape index: {}]   ;;  %s4667_s8 = inlined_call_operand.vmem [shape: f32[1,8], index: 8, kind: input, shape index: {}]   ;;  %s4668_s9 = inlined_call_operand.vmem [shape: f32[1,8], index: 9, kind: input, shape index: {}]   ;;  %s4669_s10 = inlined_call_operand.vmem [shape: f32[128,8], index: 10, kind: output, shape index: {}]  }
   0x1   :  { %36 = vst.msk [vmem:[#allocation2] sm:$0xff] %vm35_vm0, %v3152_v0  ;;  %39 = vst.msk [vmem:[#allocation2 + $0xa0] sm:$0xff] %vm35_vm0, %v3152_v0  ;;  %v3259_v1 = vld [vmem:[%s4659_s0] sm:$0xff]  ;;  %vm104_vm3 = vcmask 31744   ;;  %v3264_v2 = vld [vmem:[%s4659_s0 + $0x8] sm:$0xff]  ;;  %s3155_s15 = smov 12  }
   0x2   :  { %38 = vst.msk [vmem:[#allocation2 + $0x8] sm:$0x3] %vm37_vm1, %v3152_v0  ;;  %40 = vst.msk [vmem:[#allocation2 + $0xa8] sm:$0x3] %vm37_vm1, %v3152_v0  ;;  %v3269_v3 = vld [vmem:[%s4659_s0 + $0x10] sm:$0xff]  ;;  %v3288_v4 = vld [vmem:[%s4659_s0 + $0x18] sm:$0xff] }
   0x3   :  { %42 = vst.msk [vmem:[#allocation2 + $0x90] sm:$0xff] %vm35_vm0, %v3152_v0  ;;  %44 = vst.msk [vmem:[#allocation2 + $0x130] sm:$0xff] %vm35_vm0, %v3152_v0  ;;  %v3293_v5 = vld [vmem:[%s4659_s0 + $0x20] sm:$0xff]  ;;  %v3298_v6 = vld [vmem:[%s4659_s0 + $0x28] sm:$0xff]  ;;  %s3156_s18 = smov 16   ;;  %s3157_s19 = smov 20  }
   0x4   :  { %43 = vst.msk [vmem:[#allocation2 + $0x98] sm:$0x3] %vm37_vm1, %v3152_v0  ;;  %45 = vst.msk [vmem:[#allocation2 + $0x138] sm:$0x3] %vm37_vm1, %v3152_v0  ;;  %v3309_v7 = vld [vmem:[%s4659_s0 + $0x30] sm:$0xff]  ;;  %v3314_v8 = vld [vmem:[%s4659_s0 + $0x38] sm:$0xff] }
   0x5   :  { %48 = vst.msk [vmem:[#allocation2 + $0x10] sm:$0x1] %vm46_vm2, %v3152_v0  ;;  %49 = vst.msk [vmem:[#allocation2 + $0x20] sm:$0x1] %vm46_vm2, %v3152_v0  ;;  %v3319_v9 = vld [vmem:[%s4659_s0 + $0x40] sm:$0xff]  ;;  %v3330_v10 = vld [vmem:[%s4659_s0 + $0x48] sm:$0xff] }
   0x6   :  { %50 = vst.msk [vmem:[#allocation2 + $0x30] sm:$0x1] %vm46_vm2, %v3152_v0  ;;  %51 = vst.msk [vmem:[#allocation2 + $0x40] sm:$0x1] %vm46_vm2, %v3152_v0  ;;  %v3369_v26 = vld [vmem:[%s4659_s0 + $0x50] sm:$0xff]  ;;  %s3158_s20 = smov 24  }
   0x7   :  { %52 = vst.msk [vmem:[#allocation2 + $0x50] sm:$0x1] %vm46_vm2, %v3152_v0  ;;  %53 = vst.msk [vmem:[#allocation2 + $0x60] sm:$0x1] %vm46_vm2, %v3152_v0  ;;  %v3386_v30 = vld [vmem:[%s4659_s0 + $0x58] sm:$0xff]  ;;  %v121_v32 = vld [vmem:[%s4660_s1] sm:$0xff] }
   0x8   :  { %54 = vst.msk [vmem:[#allocation2 + $0x70] sm:$0x1] %vm46_vm2, %v3152_v0  ;;  %55 = vst.msk [vmem:[#allocation2 + $0x80] sm:$0x1] %vm46_vm2, %v3152_v0  ;;  %v122_v33 = vld [vmem:[%s4660_s1 + $0x8] sm:$0xff]  ;;  %s3159_s27 = smov 28  }
   0x9   :  { %58 = vst.msk [vmem:[#allocation2 + $0xb0] sm:$0x1] %vm46_vm2, %v3152_v0  ;;  %59 = vst.msk [vmem:[#allocation2 + $0xc0] sm:$0x1] %vm46_vm2, %v3152_v0  ;;  %v158_v11 = vld [vmem:[#allocation2 + $0x1] sm:$0xff]  ;;  %v3107_v34 = vpack.c.bf16 %v122_v33, %v121_v32  ;;  %v123_v36 = vld [vmem:[%s4660_s1 + $0x10] sm:$0xff] }
   0xa   :  { %60 = vst.msk [vmem:[#allocation2 + $0xd0] sm:$0x1] %vm46_vm2, %v3152_v0  ;;  %61 = vst.msk [vmem:[#allocation2 + $0xe0] sm:$0x1] %vm46_vm2, %v3152_v0  ;;  %190 = vrot.lane.b32.xlu0 %v158_v11, %s3153_s13  ;;  %v124_v37 = vld [vmem:[%s4660_s1 + $0x18] sm:$0xff]  ;;  %s3160_s12 = smov 32  }
   0xb   :  { %62 = vst.msk [vmem:[#allocation2 + $0xf0] sm:$0x1] %vm46_vm2, %v3152_v0  ;;  %63 = vst.msk [vmem:[#allocation2 + $0x100] sm:$0x1] %vm46_vm2, %v3152_v0  ;;  %3108 = vmatprep.subr.bf16.mxu0 %v3107_v34  ;;  %v3111_v38 = vpack.c.bf16 %v124_v37, %v123_v36  ;;  %v125_v40 = vld [vmem:[%s4660_s1 + $0x20] sm:$0xf] }
   0xc   :  { %64 = vst.msk [vmem:[#allocation2 + $0x110] sm:$0x1] %vm46_vm2, %v3152_v0  ;;  %65 = vst.msk [vmem:[#allocation2 + $0x120] sm:$0x1] %vm46_vm2, %v3152_v0  ;;  %3110 = vmatpush3.bf16.msra.mxu0 %v3107_v34  ;;  %vm1000_vm4 = vcmask 1043456   ;;  %v3427_v41 = vld [vmem:[%s4659_s0 + $0x60] sm:$0xff] }
   0xd   :  { %68 = vst.msk [vmem:[#allocation2 + $0x19] sm:$0x1] %vm46_vm2, %v3152_v0  ;;  %69 = vst.msk [vmem:[#allocation2 + $0x29] sm:$0x1] %vm46_vm2, %v3152_v0  ;;  %3112 = vmatprep.subr.bf16.mxu0 %v3111_v38  ;;  %v3443_v45 = vld [vmem:[%s4659_s0 + $0x68] sm:$0xff]  ;;  %v3469_v49 = vld [vmem:[%s4659_s0 + $0x70] sm:$0xff] }
   0xe   :  { %70 = vst.msk [vmem:[#allocation2 + $0x39] sm:$0x1] %vm46_vm2, %v3152_v0  ;;  %71 = vst.msk [vmem:[#allocation2 + $0x49] sm:$0x1] %vm46_vm2, %v3152_v0  ;;  %v3485_v53 = vld [vmem:[%s4659_s0 + $0x78] sm:$0xff]  ;;  %v166_v57 = vld [vmem:[#allocation2 + $0xa1] sm:$0xff] }
   0xf   :  { %72 = vst.msk [vmem:[#allocation2 + $0x59] sm:$0x1] %vm46_vm2, %v3152_v0  ;;  %73 = vst.msk [vmem:[#allocation2 + $0x69] sm:$0x1] %vm46_vm2, %v3152_v0  ;;  %vm238_vm5 = vcmask 64544   ;;  %vm335_vm6 = vcmask 97344  }
  0x10   :  { %74 = vst.msk [vmem:[#allocation2 + $0x79] sm:$0x1] %vm46_vm2, %v3152_v0  ;;  %75 = vst.msk [vmem:[#allocation2 + $0x89] sm:$0x1] %vm46_vm2, %v3152_v0  ;;  %3114 = vmatpush3.bf16.msra.mxu0 %v3111_v38  ;;  %vm432_vm7 = vcmask 130144   ;;  %vm529_vm8 = vcmask 162944  }
  0x11   :  { %78 = vst.msk [vmem:[#allocation2 + $0xb9] sm:$0x1] %vm46_vm2, %v3152_v0  ;;  %79 = vst.msk [vmem:[#allocation2 + $0xc9] sm:$0x1] %vm46_vm2, %v3152_v0  ;;  %3013 = vmatprep.subr.msk.mxu0 %vm1000_vm4, %v125_v40  ;;  %vm626_vm9 = vcmask 195744   ;;  %vm724_vm10 = vcmask 228544  }
  0x12   :  { %80 = vst.msk [vmem:[#allocation2 + $0xd9] sm:$0x1] %vm46_vm2, %v3152_v0  ;;  %81 = vst.msk [vmem:[#allocation2 + $0xe9] sm:$0x1] %vm46_vm2, %v3152_v0  ;;  %vm821_vm11 = vcmask 261344   ;;  %vm918_vm12 = vcmask 294144  }
  0x13   :  { %82 = vst.msk [vmem:[#allocation2 + $0xf9] sm:$0x1] %vm46_vm2, %v3152_v0  ;;  %83 = vst.msk [vmem:[#allocation2 + $0x109] sm:$0x1] %vm46_vm2, %v3152_v0  ;;  %vm951_vm13 = vcmask 293888   ;;  %s3161_s0 = smov 48  }
  0x14   :  { %84 = vst.msk [vmem:[#allocation2 + $0x119] sm:$0x1] %vm46_vm2, %v3152_v0  ;;  %85 = vst.msk [vmem:[#allocation2 + $0x129] sm:$0x1] %vm46_vm2, %v3152_v0  ;;  %3014 = vmatpush3.msk.msra.mxu0 %vm1000_vm4, %v125_v40  ;;  %vm1447_vm14 = vcmask 130112   ;;  %vm1544_vm15 = vcmask 195712  }
  0x15   :  { %67 = vst.msk [vmem:[#allocation2 + $0x9] sm:$0x1] %vm46_vm2, %v3152_v0  ;;  %47 = vst.msk [vmem:[#allocation2] sm:$0x1] %vm46_vm2, %v3152_v0  ;;  %vm1641_vm1 = vcmask 261312  }
  0x16   :  { %56 = vst.msk [vmem:[#allocation2 + $0x90] sm:$0x1] %vm46_vm2, %v3152_v0  ;;  %57 = vst.msk [vmem:[#allocation2 + $0xa0] sm:$0x1] %vm46_vm2, %v3152_v0 }
  0x17   :  { %66 = vst.msk [vmem:[#allocation2 + $0x130] sm:$0x1] %vm46_vm2, %v3152_v0  ;;  %76 = vst.msk [vmem:[#allocation2 + $0x99] sm:$0x1] %vm46_vm2, %v3152_v0 }
  0x18   :  { %77 = vst.msk [vmem:[#allocation2 + $0xa9] sm:$0x1] %vm46_vm2, %v3152_v0  ;;  %86 = vst.msk [vmem:[#allocation2 + $0x139] sm:$0x1] %vm46_vm2, %v3152_v0  ;;  %vm1738_vm2 = vcmask 326912  }
  0x19   :  { %105 = vst.msk [vmem:[#allocation2 + $0x11] sm:$0xff] %vm104_vm3, %v3259_v1  ;;  %106 = vst.msk [vmem:[#allocation2 + $0x21] sm:$0xff] %vm104_vm3, %v3264_v2 }
  0x1a   :  { %107 = vst.msk [vmem:[#allocation2 + $0x31] sm:$0xff] %vm104_vm3, %v3269_v3  ;;  %108 = vst.msk [vmem:[#allocation2 + $0x41] sm:$0xff] %vm104_vm3, %v3288_v4 }
  0x1b   :  { %109 = vst.msk [vmem:[#allocation2 + $0x51] sm:$0xff] %vm104_vm3, %v3293_v5  ;;  %110 = vst.msk [vmem:[#allocation2 + $0x61] sm:$0xff] %vm104_vm3, %v3298_v6 }
  0x1c   :  { %111 = vst.msk [vmem:[#allocation2 + $0x71] sm:$0xff] %vm104_vm3, %v3309_v7  ;;  %112 = vst.msk [vmem:[#allocation2 + $0x81] sm:$0xff] %vm104_vm3, %v3314_v8  ;;  %v255_v12 = vld [vmem:[#allocation2 + $0x2] sm:$0xff] }
  0x1d   :  { %113 = vst.msk [vmem:[#allocation2 + $0xb1] sm:$0xff] %vm104_vm3, %v3319_v9  ;;  %114 = vst.msk [vmem:[#allocation2 + $0xc1] sm:$0xff] %vm104_vm3, %v3330_v10  ;;  %287 = vrot.lane.b32.xlu1 %v255_v12, %s3154_s14  ;;  %v126_v22 = vld [vmem:[#allocation2] sm:$0xff] }
  0x1e   :  { %142 = vst.msk [vmem:[#allocation3] sm:$0xff] %vm104_vm3, %v126_v22  ;;  %115 = vst.msk [vmem:[#allocation2 + $0xd1] sm:$0xff] %vm104_vm3, %v3369_v26  ;;  %v3494_v55 = vld [vmem:[#allocation2 + $0xa0] sm:$0xff] }
  0x1f   :  { %116 = vst.msk [vmem:[#allocation2 + $0xe1] sm:$0xff] %vm104_vm3, %v3386_v30  ;;  %117 = vst.msk [vmem:[#allocation2 + $0xf1] sm:$0xff] %vm104_vm3, %v3427_v41  ;;  %v263_v61 = vld [vmem:[#allocation2 + $0xa2] sm:$0xff] }
  0x20   :  { %v159_v13 = vld [vmem:[#allocation2 + $0x11] sm:$0xff]  ;;  %v353_v15 = vld [vmem:[#allocation2 + $0x20] sm:$0xff]  ;;  %118 = vst.msk [vmem:[#allocation2 + $0x101] sm:$0xff] %vm104_vm3, %v3443_v45  ;;  %119 = vst.msk [vmem:[#allocation2 + $0x111] sm:$0xff] %vm104_vm3, %v3469_v49 }
  0x21   :  { %v352_v14 = vld [vmem:[#allocation2 + $0x10] sm:$0xff]  ;;  %144 = vst.msk [vmem:[#allocation3 + $0x10] sm:$0xff] %vm104_vm3, %v353_v15  ;;  %v3338_v18 = vld [vmem:[#allocation2 + $0x40] sm:$0xff]  ;;  %192 = vrot.lane.b32.xlu0 %v159_v13, %s3153_s13  ;;  %120 = vst.msk [vmem:[#allocation2 + $0x121] sm:$0xff] %vm104_vm3, %v3485_v53 }
  0x22   :  { %v256_v16 = vld [vmem:[#allocation2 + $0x12] sm:$0xff]  ;;  %143 = vst.msk [vmem:[#allocation3 + $0x8] sm:$0xff] %vm104_vm3, %v352_v14  ;;  %146 = vst.msk [vmem:[#allocation3 + $0x20] sm:$0xff] %vm104_vm3, %v3338_v18  ;;  %v3347_v20 = vld [vmem:[#allocation2 + $0x60] sm:$0xff] }
  0x23   :  { %v354_v17 = vld [vmem:[#allocation2 + $0x30] sm:$0xff]  ;;  %289 = vrot.lane.b32.xlu1 %v256_v16, %s3154_s14  ;;  %148 = vst.msk [vmem:[#allocation3 + $0x30] sm:$0xff] %vm104_vm3, %v3347_v20  ;;  %v160_v24 = vld [vmem:[#allocation2 + $0x21] sm:$0xff]  ;;  %150 = vst.msk [vmem:[#allocation3 + $0x40] sm:$0xff] %vm104_vm3, %v3494_v55 }
  0x24   :  { %145 = vst.msk [vmem:[#allocation3 + $0x18] sm:$0xff] %vm104_vm3, %v354_v17  ;;  %v3345_v19 = vld [vmem:[#allocation2 + $0x50] sm:$0xff]  ;;  %v3362_v25 = vld [vmem:[#allocation2 + $0xc0] sm:$0xff] }
  0x25   :  { %147 = vst.msk [vmem:[#allocation3 + $0x28] sm:$0xff] %vm104_vm3, %v3345_v19  ;;  %v3353_v21 = vld [vmem:[#allocation2 + $0x70] sm:$0xff]  ;;  %384 = vrot.lane.b32.xlu0 %v352_v14, %s3155_s15  ;;  %152 = vst.msk [vmem:[#allocation3 + $0x50] sm:$0xff] %vm104_vm3, %v3362_v25  ;;  %v257_v28 = vld [vmem:[#allocation2 + $0x22] sm:$0xff] }
  0x26   :  { %149 = vst.msk [vmem:[#allocation3 + $0x38] sm:$0xff] %vm104_vm3, %v3353_v21  ;;  %v3360_v23 = vld [vmem:[#allocation2 + $0xb0] sm:$0xff]  ;;  %v3404_v35 = vld [vmem:[#allocation2 + $0xe0] sm:$0xff] }
  0x27   :  { %386 = vrot.lane.b32.xlu1 %v353_v15, %s3155_s15  ;;  %151 = vst.msk [vmem:[#allocation3 + $0x48] sm:$0xff] %vm104_vm3, %v3360_v23  ;;  %v161_v27 = vld [vmem:[#allocation2 + $0x31] sm:$0xff]  ;;  %154 = vst.msk [vmem:[#allocation3 + $0x60] sm:$0xff] %vm104_vm3, %v3404_v35  ;;  %v162_v39 = vld [vmem:[#allocation2 + $0x41] sm:$0xff] }
  0x28   :  { %v258_v29 = vld [vmem:[#allocation2 + $0x32] sm:$0xff]  ;;  %v259_v43 = vld [vmem:[#allocation2 + $0x42] sm:$0xff] }
  0x29   :  { %481 = vrot.lane.b32.xlu0 %v159_v13, %s3156_s18  ;;  %v3389_v31 = vld [vmem:[#allocation2 + $0xd0] sm:$0xff]  ;;  %v3457_v47 = vld [vmem:[#allocation2 + $0x100] sm:$0xff] }
  0x2a   :  { %153 = vst.msk [vmem:[#allocation3 + $0x58] sm:$0xff] %vm104_vm3, %v3389_v31  ;;  %v163_v42 = vld [vmem:[#allocation2 + $0x51] sm:$0xff]  ;;  %156 = vst.msk [vmem:[#allocation3 + $0x70] sm:$0xff] %vm104_vm3, %v3457_v47  ;;  %v164_v48 = vld [vmem:[#allocation2 + $0x61] sm:$0xff] }
  0x2b   :  { %194 = vrot.lane.b32.xlu1 %v160_v24, %s3153_s13  ;;  %v260_v44 = vld [vmem:[#allocation2 + $0x52] sm:$0xff]  ;;  %v261_v51 = vld [vmem:[#allocation2 + $0x62] sm:$0xff] }
  0x2c   :  { %v3446_v46 = vld [vmem:[#allocation2 + $0xf0] sm:$0xff]  ;;  %v359_v56 = vld [vmem:[#allocation2 + $0x80] sm:$0xff] }
  0x2d   :  { %483 = vrot.lane.b32.xlu0 %v160_v24, %s3156_s18  ;;  %155 = vst.msk [vmem:[#allocation3 + $0x68] sm:$0xff] %vm104_vm3, %v3446_v46  ;;  %v165_v50 = vld [vmem:[#allocation2 + $0x71] sm:$0xff]  ;;  %v456_v58 = vld [vmem:[#allocation2 + $0x81] sm:$0xff] }
  0x2e   :  { %v262_v52 = vld [vmem:[#allocation2 + $0x72] sm:$0xff]  ;;  %v553_v63 = vld [vmem:[#allocation2 + $0x82] sm:$0xff] }
  0x2f   :  { %578 = vrot.lane.b32.xlu1 %v256_v16, %s3157_s19  ;;  %v3488_v54 = vld [vmem:[#allocation2 + $0x110] sm:$0xff]  ;;  %v265_v36 = vld [vmem:[#allocation2 + $0xc2] sm:$0xff] }
  0x30   :  { %157 = vst.msk [vmem:[#allocation3 + $0x78] sm:$0xff] %vm104_vm3, %v3488_v54  ;;  %v167_v59 = vld [vmem:[#allocation2 + $0xb1] sm:$0xff] }
  0x31   :  { %196 = vrot.lane.b32.xlu0 %v161_v27, %s3153_s13  ;;  %v264_v12 = vld [vmem:[#allocation2 + $0xb2] sm:$0xff] }
  0x32   :  { %v169_v33 = vld [vmem:[#allocation2 + $0xd1] sm:$0xff] }
  0x33   :  { %291 = vrot.lane.b32.xlu1 %v257_v28, %s3154_s14  ;;  %v266_v40 = vld [vmem:[#allocation2 + $0xd2] sm:$0xff] }
  0x35   :  { %580 = vrot.lane.b32.xlu0 %v257_v28, %s3157_s19 }
  0x37   :  { %676 = vrot.lane.b32.xlu1 %v353_v15, %s3158_s20  ;;  %v651_v15 = vld [vmem:[#allocation2 + $0x90] sm:$0xff] }
  0x39   :  { %293 = vrot.lane.b32.xlu0 %v258_v29, %s3154_s14 }
  0x3b   :  { %388 = vrot.lane.b32.xlu1 %v354_v17, %s3155_s15 }
  0x3d   :  { %678 = vrot.lane.b32.xlu0 %v354_v17, %s3158_s20 }
  0x3f   :  { %773 = vrot.lane.b32.xlu1 %v160_v24, %s3159_s27 }
  0x41   :  { %390 = vrot.lane.b32.xlu0 %v3338_v18, %s3155_s15 }
  0x43   :  { %485 = vrot.lane.b32.xlu1 %v161_v27, %s3156_s18 }
  0x45   :  { %775 = vrot.lane.b32.xlu0 %v161_v27, %s3159_s27 }
  0x47   :  { %870 = vrot.lane.b32.xlu1 %v257_v28, %s3160_s12 }
  0x49   :  { %198 = vrot.lane.b32.xlu0 %v162_v39, %s3153_s13 }
  0x4b   :  { %487 = vrot.lane.b32.xlu1 %v162_v39, %s3156_s18 }
  0x4d   :  { %582 = vrot.lane.b32.xlu0 %v258_v29, %s3157_s19 }
  0x4f   :  { %872 = vrot.lane.b32.xlu1 %v258_v29, %s3160_s12  ;;  %v845_v29 = vld [vmem:[#allocation2 + $0x92] sm:$0xff] }
  0x51   :  { %200 = vrot.lane.b32.xlu0 %v163_v42, %s3153_s13 }
  0x53   :  { %295 = vrot.lane.b32.xlu1 %v259_v43, %s3154_s14 }
  0x55   :  { %584 = vrot.lane.b32.xlu0 %v259_v43, %s3157_s19 }
  0x57   :  { %680 = vrot.lane.b32.xlu1 %v3338_v18, %s3158_s20 }
  0x59   :  { %297 = vrot.lane.b32.xlu0 %v260_v44, %s3154_s14 }
  0x5b   :  { %392 = vrot.lane.b32.xlu1 %v3345_v19, %s3155_s15 }
  0x5d   :  { %682 = vrot.lane.b32.xlu0 %v3345_v19, %s3158_s20 }
  0x5f   :  { %777 = vrot.lane.b32.xlu1 %v162_v39, %s3159_s27 }
  0x61   :  { %394 = vrot.lane.b32.xlu0 %v3347_v20, %s3155_s15 }
  0x63   :  { %489 = vrot.lane.b32.xlu1 %v163_v42, %s3156_s18 }
  0x65   :  { %779 = vrot.lane.b32.xlu0 %v163_v42, %s3159_s27 }
  0x67   :  { %874 = vrot.lane.b32.xlu1 %v259_v43, %s3160_s12 }
  0x69   :  { %202 = vrot.lane.b32.xlu0 %v164_v48, %s3153_s13 }
  0x6b   :  { %491 = vrot.lane.b32.xlu1 %v164_v48, %s3156_s18 }
  0x6d   :  { %586 = vrot.lane.b32.xlu0 %v260_v44, %s3157_s19 }
  0x6f   :  { %876 = vrot.lane.b32.xlu1 %v260_v44, %s3160_s12 }
  0x71   :  { %204 = vrot.lane.b32.xlu0 %v165_v50, %s3153_s13 }
  0x73   :  { %299 = vrot.lane.b32.xlu1 %v261_v51, %s3154_s14 }
  0x75   :  { %588 = vrot.lane.b32.xlu0 %v261_v51, %s3157_s19 }
  0x77   :  { %684 = vrot.lane.b32.xlu1 %v3347_v20, %s3158_s20  ;;  %v748_v20 = vld [vmem:[#allocation2 + $0x91] sm:$0xff] }
  0x79   :  { %301 = vrot.lane.b32.xlu0 %v262_v52, %s3154_s14 }
  0x7b   :  { %396 = vrot.lane.b32.xlu1 %v3353_v21, %s3155_s15 }
  0x7c   :  { %v191_v60 = vpop.permute.xlu0 %190 }
  0x7d   :  { %686 = vrot.lane.b32.xlu0 %v3353_v21, %s3158_s20  ;;  %239 = vst.msk [vmem:[#allocation3] sm:$0xff] %vm238_vm5, %v191_v60 }
  0x7f   :  { %781 = vrot.lane.b32.xlu1 %v164_v48, %s3159_s27 }
  0x81   :  { %398 = vrot.lane.b32.xlu0 %v359_v56, %s3155_s15 }
  0x83   :  { %493 = vrot.lane.b32.xlu1 %v165_v50, %s3156_s18 }
  0x85   :  { %783 = vrot.lane.b32.xlu0 %v165_v50, %s3159_s27 }
  0x87   :  { %878 = vrot.lane.b32.xlu1 %v261_v51, %s3160_s12 }
  0x89   :  { %206 = vrot.lane.b32.xlu0 %v166_v57, %s3153_s13 }
  0x8b   :  { %495 = vrot.lane.b32.xlu1 %v456_v58, %s3156_s18 }
  0x8d   :  { %590 = vrot.lane.b32.xlu0 %v262_v52, %s3157_s19 }
  0x8f   :  { %880 = vrot.lane.b32.xlu1 %v262_v52, %s3160_s12  ;;  %v288_v62 = vpop.permute.xlu1 %287 }
  0x90   :  { %336 = vst.msk [vmem:[#allocation3] sm:$0xff] %vm335_vm6, %v288_v62  ;;  %v171_v62 = vld [vmem:[#allocation2 + $0xf1] sm:$0xff] }
  0x91   :  { %208 = vrot.lane.b32.xlu0 %v167_v59, %s3153_s13 }
  0x93   :  { %303 = vrot.lane.b32.xlu1 %v263_v61, %s3154_s14  ;;  %v193_v0 = vpop.permute.xlu0 %192 }
  0x94   :  { %240 = vst.msk [vmem:[#allocation3 + $0x8] sm:$0xff] %vm238_vm5, %v193_v0  ;;  %v267_v0 = vld [vmem:[#allocation2 + $0xe2] sm:$0xff] }
  0x95   :  { %v290_v11 = vpop.permute.xlu1 %289  ;;  %592 = vrot.lane.b32.xlu0 %v553_v63, %s3157_s19 }
  0x96   :  { %337 = vst.msk [vmem:[#allocation3 + $0x8] sm:$0xff] %vm335_vm6, %v290_v11 }
  0x97   :  { %688 = vrot.lane.b32.xlu1 %v359_v56, %s3158_s20  ;;  %v385_v13 = vpop.permute.xlu0 %384  ;;  %v170_v56 = vld [vmem:[#allocation2 + $0xe1] sm:$0xff] }
  0x98   :  { %433 = vst.msk [vmem:[#allocation3] sm:$0xff] %vm432_vm7, %v385_v13 }
  0x99   :  { %v387_v14 = vpop.permute.xlu1 %386  ;;  %305 = vrot.lane.b32.xlu0 %v264_v12, %s3154_s14 }
  0x9a   :  { %434 = vst.msk [vmem:[#allocation3 + $0x8] sm:$0xff] %vm432_vm7, %v387_v14  ;;  %v268_v14 = vld [vmem:[#allocation2 + $0xf2] sm:$0xff] }
  0x9b   :  { %400 = vrot.lane.b32.xlu1 %v3360_v23, %s3155_s15  ;;  %v482_v16 = vpop.permute.xlu0 %481  ;;  %v168_v23 = vld [vmem:[#allocation2 + $0xc1] sm:$0xff] }
  0x9c   :  { %530 = vst.msk [vmem:[#allocation3] sm:$0xff] %vm529_vm8, %v482_v16 }
  0x9d   :  { %v195_v17 = vpop.permute.xlu1 %194  ;;  %690 = vrot.lane.b32.xlu0 %v651_v15, %s3158_s20 }
  0x9e   :  { %241 = vst.msk [vmem:[#allocation3 + $0x10] sm:$0xff] %vm238_vm5, %v195_v17 }
  0x9f   :  { %785 = vrot.lane.b32.xlu1 %v456_v58, %s3159_s27  ;;  %v484_v18 = vpop.permute.xlu0 %483 }
  0xa0   :  { %531 = vst.msk [vmem:[#allocation3 + $0x8] sm:$0xff] %vm529_vm8, %v484_v18 }
  0xa1   :  { %v579_v19 = vpop.permute.xlu1 %578  ;;  %402 = vrot.lane.b32.xlu0 %v3362_v25, %s3155_s15 }
  0xa2   :  { %627 = vst.msk [vmem:[#allocation3] sm:$0xff] %vm626_vm9, %v579_v19 }
  0xa3   :  { %497 = vrot.lane.b32.xlu1 %v167_v59, %s3156_s18  ;;  %v197_v21 = vpop.permute.xlu0 %196 }
  0xa4   :  { %242 = vst.msk [vmem:[#allocation3 + $0x18] sm:$0xff] %vm238_vm5, %v197_v21 }
  0xa5   :  { %v292_v22 = vpop.permute.xlu1 %291  ;;  %787 = vrot.lane.b32.xlu0 %v748_v20, %s3159_s27 }
  0xa6   :  { %338 = vst.msk [vmem:[#allocation3 + $0x10] sm:$0xff] %vm335_vm6, %v292_v22  ;;  %v172_v22 = vld [vmem:[#allocation2 + $0x101] sm:$0xff] }
  0xa7   :  { %882 = vrot.lane.b32.xlu1 %v553_v63, %s3160_s12  ;;  %v581_v24 = vpop.permute.xlu0 %580 }
  0xa8   :  { %628 = vst.msk [vmem:[#allocation3 + $0x8] sm:$0xff] %vm626_vm9, %v581_v24 }
  0xa9   :  { %v677_v27 = vpop.permute.xlu1 %676  ;;  %210 = vrot.lane.b32.xlu0 %v168_v23, %s3153_s13 }
  0xaa   :  { %725 = vst.msk [vmem:[#allocation3] sm:$0xff] %vm724_vm10, %v677_v27 }
  0xab   :  { %499 = vrot.lane.b32.xlu1 %v168_v23, %s3156_s18  ;;  %v294_v28 = vpop.permute.xlu0 %293 }
  0xac   :  { %339 = vst.msk [vmem:[#allocation3 + $0x18] sm:$0xff] %vm335_vm6, %v294_v28 }
  0xad   :  { %v389_v32 = vpop.permute.xlu1 %388  ;;  %594 = vrot.lane.b32.xlu0 %v264_v12, %s3157_s19 }
  0xae   :  { %435 = vst.msk [vmem:[#allocation3 + $0x10] sm:$0xff] %vm432_vm7, %v389_v32  ;;  %v173_v32 = vld [vmem:[#allocation2 + $0x111] sm:$0xff] }
  0xaf   :  { %884 = vrot.lane.b32.xlu1 %v845_v29, %s3160_s12  ;;  %v679_v34 = vpop.permute.xlu0 %678 }
  0xb0   :  { %726 = vst.msk [vmem:[#allocation3 + $0x8] sm:$0xff] %vm724_vm10, %v679_v34  ;;  %v269_v34 = vld [vmem:[#allocation2 + $0x102] sm:$0xff] }
  0xb1   :  { %v774_v37 = vpop.permute.xlu1 %773  ;;  %212 = vrot.lane.b32.xlu0 %v169_v33, %s3153_s13 }
  0xb2   :  { %822 = vst.msk [vmem:[#allocation3] sm:$0xff] %vm821_vm11, %v774_v37 }
  0xb3   :  { %307 = vrot.lane.b32.xlu1 %v265_v36, %s3154_s14  ;;  %v391_v38 = vpop.permute.xlu0 %390 }
  0xb4   :  { %436 = vst.msk [vmem:[#allocation3 + $0x18] sm:$0xff] %vm432_vm7, %v391_v38 }
  0xb5   :  { %v486_v39 = vpop.permute.xlu1 %485  ;;  %596 = vrot.lane.b32.xlu0 %v265_v36, %s3157_s19 }
  0xb6   :  { %532 = vst.msk [vmem:[#allocation3 + $0x10] sm:$0xff] %vm529_vm8, %v486_v39  ;;  %v270_v39 = vld [vmem:[#allocation2 + $0x112] sm:$0xff] }
  0xb7   :  { %692 = vrot.lane.b32.xlu1 %v3362_v25, %s3158_s20  ;;  %v776_v42 = vpop.permute.xlu0 %775 }
  0xb8   :  { %823 = vst.msk [vmem:[#allocation3 + $0x8] sm:$0xff] %vm821_vm11, %v776_v42 }
  0xb9   :  { %v871_v43 = vpop.permute.xlu1 %870  ;;  %309 = vrot.lane.b32.xlu0 %v266_v40, %s3154_s14 }
  0xba   :  { %919 = vst.msk [vmem:[#allocation3] sm:$0xff] %vm918_vm12, %v871_v43 }
  0xbb   :  { %404 = vrot.lane.b32.xlu1 %v3389_v31, %s3155_s15  ;;  %v199_v44 = vpop.permute.xlu0 %198 }
  0xbc   :  { %243 = vst.msk [vmem:[#allocation3 + $0x20] sm:$0xff] %vm238_vm5, %v199_v44 }
  0xbd   :  { %v488_v48 = vpop.permute.xlu1 %487  ;;  %694 = vrot.lane.b32.xlu0 %v3389_v31, %s3158_s20 }
  0xbe   :  { %533 = vst.msk [vmem:[#allocation3 + $0x18] sm:$0xff] %vm529_vm8, %v488_v48 }
  0xbf   :  { %789 = vrot.lane.b32.xlu1 %v168_v23, %s3159_s27  ;;  %v583_v25 = vpop.permute.xlu0 %582 }
  0xc0   :  { %629 = vst.msk [vmem:[#allocation3 + $0x10] sm:$0xff] %vm626_vm9, %v583_v25 }
  0xc1   :  { %v873_v50 = vpop.permute.xlu1 %872  ;;  %v935_v51 = vld [vmem:[#allocation3] sm:$0xff]  ;;  %406 = vrot.lane.b32.xlu0 %v3404_v35, %s3155_s15 }
  0xc2   :  { %920 = vst.msk [vmem:[#allocation3 + $0x8] sm:$0xff] %vm918_vm12, %v873_v50  ;;  %3015 = vmatprep.mubr.msk.f32.mxu0 %vm951_vm13, %v935_v51 }
  0xc3   :  { %501 = vrot.lane.b32.xlu1 %v169_v33, %s3156_s18  ;;  %v201_v52 = vpop.permute.xlu0 %200 }
  0xc4   :  { %244 = vst.msk [vmem:[#allocation3 + $0x28] sm:$0xff] %vm238_vm5, %v201_v52  ;;  %v464_v52 = vld [vmem:[#allocation2 + $0x121] sm:$0xff] }
  0xc5   :  { %v296_v31 = vpop.permute.xlu1 %295  ;;  %791 = vrot.lane.b32.xlu0 %v169_v33, %s3159_s27 }
  0xc6   :  { %340 = vst.msk [vmem:[#allocation3 + $0x20] sm:$0xff] %vm335_vm6, %v296_v31 }
  0xc7   :  { %886 = vrot.lane.b32.xlu1 %v265_v36, %s3160_s12  ;;  %v585_v57 = vpop.permute.xlu0 %584 }
  0xc8   :  { %630 = vst.msk [vmem:[#allocation3 + $0x18] sm:$0xff] %vm626_vm9, %v585_v57 }
  0xc9   :  { %v681_v58 = vpop.permute.xlu1 %680  ;;  %v936_v59 = vld [vmem:[#allocation3 + $0x8] sm:$0xff]  ;;  %214 = vrot.lane.b32.xlu0 %v170_v56, %s3153_s13 }
  0xca   :  { %727 = vst.msk [vmem:[#allocation3 + $0x10] sm:$0xff] %vm724_vm10, %v681_v58  ;;  %3016 = vmatmul.mubr.msk.f32.vlgmr.msra.gmra.mrb[0].mxu0 %vm951_vm13, %v936_v59  ;;  %v561_v59 = vld [vmem:[#allocation2 + $0x122] sm:$0xff] }
  0xcb   :  { %503 = vrot.lane.b32.xlu1 %v170_v56, %s3156_s18  ;;  %v298_v60 = vpop.permute.xlu0 %297 }
  0xcc   :  { %341 = vst.msk [vmem:[#allocation3 + $0x28] sm:$0xff] %vm335_vm6, %v298_v60 }
  0xcd   :  { %v393_v61 = vpop.permute.xlu1 %392  ;;  %598 = vrot.lane.b32.xlu0 %v266_v40, %s3157_s19 }
  0xce   :  { %437 = vst.msk [vmem:[#allocation3 + $0x20] sm:$0xff] %vm432_vm7, %v393_v61 }
  0xcf   :  { %888 = vrot.lane.b32.xlu1 %v266_v40, %s3160_s12  ;;  %v683_v63 = vpop.permute.xlu0 %682 }
  0xd0   :  { %728 = vst.msk [vmem:[#allocation3 + $0x18] sm:$0xff] %vm724_vm10, %v683_v63 }
  0xd1   :  { %v778_v11 = vpop.permute.xlu1 %777  ;;  %216 = vrot.lane.b32.xlu0 %v171_v62, %s3153_s13 }
  0xd2   :  { %824 = vst.msk [vmem:[#allocation3 + $0x10] sm:$0xff] %vm821_vm11, %v778_v11  ;;  %v756_v11 = vld [vmem:[#allocation2 + $0x131] sm:$0xff] }
  0xd3   :  { %311 = vrot.lane.b32.xlu1 %v267_v0, %s3154_s14  ;;  %v395_v12 = vpop.permute.xlu0 %394 }
  0xd4   :  { %438 = vst.msk [vmem:[#allocation3 + $0x28] sm:$0xff] %vm432_vm7, %v395_v12 }
  0xd5   :  { %v490_v13 = vpop.permute.xlu1 %489  ;;  %600 = vrot.lane.b32.xlu0 %v267_v0, %s3157_s19 }
  0xd6   :  { %534 = vst.msk [vmem:[#allocation3 + $0x20] sm:$0xff] %vm529_vm8, %v490_v13 }
  0xd7   :  { %696 = vrot.lane.b32.xlu1 %v3404_v35, %s3158_s20  ;;  %v780_v15 = vpop.permute.xlu0 %779 }
  0xd8   :  { %825 = vst.msk [vmem:[#allocation3 + $0x18] sm:$0xff] %vm821_vm11, %v780_v15 }
  0xd9   :  { %v875_v16 = vpop.permute.xlu1 %874  ;;  %313 = vrot.lane.b32.xlu0 %v268_v14, %s3154_s14 }
  0xda   :  { %921 = vst.msk [vmem:[#allocation3 + $0x10] sm:$0xff] %vm918_vm12, %v875_v16 }
  0xdb   :  { %408 = vrot.lane.b32.xlu1 %v3446_v46, %s3155_s15  ;;  %v203_v17 = vpop.permute.xlu0 %202 }
  0xdc   :  { %245 = vst.msk [vmem:[#allocation3 + $0x30] sm:$0xff] %vm238_vm5, %v203_v17 }
  0xdd   :  { %v492_v18 = vpop.permute.xlu1 %491  ;;  %698 = vrot.lane.b32.xlu0 %v3446_v46, %s3158_s20 }
  0xde   :  { %535 = vst.msk [vmem:[#allocation3 + $0x28] sm:$0xff] %vm529_vm8, %v492_v18 }
  0xdf   :  { %793 = vrot.lane.b32.xlu1 %v170_v56, %s3159_s27  ;;  %v587_v35 = vpop.permute.xlu0 %586 }
  0xe0   :  { %631 = vst.msk [vmem:[#allocation3 + $0x20] sm:$0xff] %vm626_vm9, %v587_v35 }
  0xe1   :  { %v877_v19 = vpop.permute.xlu1 %876  ;;  %v937_v20 = vld [vmem:[#allocation3 + $0x10] sm:$0xff]  ;;  %410 = vrot.lane.b32.xlu0 %v3457_v47, %s3155_s15 }
  0xe2   :  { %922 = vst.msk [vmem:[#allocation3 + $0x18] sm:$0xff] %vm918_vm12, %v877_v19  ;;  %3018 = vmatprep.mubr.msk.f32.mxu0 %vm951_vm13, %v937_v20 }
  0xe3   :  { %505 = vrot.lane.b32.xlu1 %v171_v62, %s3156_s18  ;;  %v205_v21 = vpop.permute.xlu0 %204 }
  0xe4   :  { %246 = vst.msk [vmem:[#allocation3 + $0x38] sm:$0xff] %vm238_vm5, %v205_v21 }
  0xe5   :  { %v300_v46 = vpop.permute.xlu1 %299  ;;  %795 = vrot.lane.b32.xlu0 %v171_v62, %s3159_s27  ;;  %v659_v62 = vld [vmem:[#allocation2 + $0x130] sm:$0xff] }
  0xe6   :  { %342 = vst.msk [vmem:[#allocation3 + $0x30] sm:$0xff] %vm335_vm6, %v300_v46 }
  0xe7   :  { %890 = vrot.lane.b32.xlu1 %v267_v0, %s3160_s12  ;;  %v589_v23 = vpop.permute.xlu0 %588 }
  0xe8   :  { %632 = vst.msk [vmem:[#allocation3 + $0x28] sm:$0xff] %vm626_vm9, %v589_v23 }
  0xe9   :  { %v685_v24 = vpop.permute.xlu1 %684  ;;  %v938_v27 = vld [vmem:[#allocation3 + $0x18] sm:$0xff]  ;;  %218 = vrot.lane.b32.xlu0 %v172_v22, %s3153_s13 }
  0xea   :  { %729 = vst.msk [vmem:[#allocation3 + $0x20] sm:$0xff] %vm724_vm10, %v685_v24  ;;  %3019 = vmatmul.mubr.msk.f32.gmra.mrb[2].mxu0 %vm951_vm13, %v938_v27 }
  0xeb   :  { %507 = vrot.lane.b32.xlu1 %v172_v22, %s3156_s18  ;;  %v302_v28 = vpop.permute.xlu0 %301 }
  0xec   :  { %343 = vst.msk [vmem:[#allocation3 + $0x38] sm:$0xff] %vm335_vm6, %v302_v28 }
  0xed   :  { %v397_v29 = vpop.permute.xlu1 %396  ;;  %602 = vrot.lane.b32.xlu0 %v268_v14, %s3157_s19 }
  0xee   :  { %439 = vst.msk [vmem:[#allocation3 + $0x30] sm:$0xff] %vm432_vm7, %v397_v29 }
  0xef   :  { %892 = vrot.lane.b32.xlu1 %v268_v14, %s3160_s12  ;;  %v687_v33 = vpop.permute.xlu0 %686  ;;  %v853_v14 = vld [vmem:[#allocation2 + $0x132] sm:$0xff] }
  0xf0   :  { %730 = vst.msk [vmem:[#allocation3 + $0x28] sm:$0xff] %vm724_vm10, %v687_v33 }
  0xf1   :  { %v782_v36 = vpop.permute.xlu1 %781  ;;  %220 = vrot.lane.b32.xlu0 %v173_v32, %s3153_s13  ;;  %s3162_s13 = smov 64  }
  0xf2   :  { %826 = vst.msk [vmem:[#allocation3 + $0x20] sm:$0xff] %vm821_vm11, %v782_v36 }
  0xf3   :  { %315 = vrot.lane.b32.xlu1 %v269_v34, %s3154_s14  ;;  %v399_v37 = vpop.permute.xlu0 %398 }
  0xf4   :  { %440 = vst.msk [vmem:[#allocation3 + $0x38] sm:$0xff] %vm432_vm7, %v399_v37 }
  0xf5   :  { %v494_v38 = vpop.permute.xlu1 %493  ;;  %604 = vrot.lane.b32.xlu0 %v269_v34, %s3157_s19 }
  0xf6   :  { %536 = vst.msk [vmem:[#allocation3 + $0x30] sm:$0xff] %vm529_vm8, %v494_v38 }
  0xf7   :  { %700 = vrot.lane.b32.xlu1 %v3457_v47, %s3158_s20  ;;  %v784_v40 = vpop.permute.xlu0 %783  ;;  %v367_v47 = vld [vmem:[#allocation2 + $0x120] sm:$0xff] }
  0xf8   :  { %827 = vst.msk [vmem:[#allocation3 + $0x28] sm:$0xff] %vm821_vm11, %v784_v40 }
  0xf9   :  { %v879_v42 = vpop.permute.xlu1 %878  ;;  %317 = vrot.lane.b32.xlu0 %v270_v39, %s3154_s14 }
  0xfa   :  { %923 = vst.msk [vmem:[#allocation3 + $0x20] sm:$0xff] %vm918_vm12, %v879_v42 }
  0xfb   :  { %412 = vrot.lane.b32.xlu1 %v3488_v54, %s3155_s15  ;;  %v207_v43 = vpop.permute.xlu0 %206 }
  0xfc   :  { %247 = vst.msk [vmem:[#allocation3 + $0x40] sm:$0xff] %vm238_vm5, %v207_v43 }
  0xfd   :  { %v496_v44 = vpop.permute.xlu1 %495  ;;  %702 = vrot.lane.b32.xlu0 %v3488_v54, %s3158_s20 }
  0xfe   :  { %537 = vst.msk [vmem:[#allocation3 + $0x38] sm:$0xff] %vm529_vm8, %v496_v44 }
  0xff   :  { %797 = vrot.lane.b32.xlu1 %v172_v22, %s3159_s27  ;;  %v591_v48 = vpop.permute.xlu0 %590 }
 0x100   :  { %633 = vst.msk [vmem:[#allocation3 + $0x30] sm:$0xff] %vm626_vm9, %v591_v48 }
 0x101   :  { %v881_v25 = vpop.permute.xlu1 %880  ;;  %v939_v50 = vld [vmem:[#allocation3 + $0x20] sm:$0xff]  ;;  %414 = vrot.lane.b32.xlu0 %v367_v47, %s3155_s15  ;;  %s3163_s15 = smov 56  }
 0x102   :  { %924 = vst.msk [vmem:[#allocation3 + $0x28] sm:$0xff] %vm918_vm12, %v881_v25  ;;  %3021 = vmatprep.mubr.msk.f32.mxu0 %vm951_vm13, %v939_v50 }
 0x103   :  { %509 = vrot.lane.b32.xlu1 %v173_v32, %s3156_s18  ;;  %v209_v51 = vpop.permute.xlu0 %208 }
 0x104   :  { %248 = vst.msk [vmem:[#allocation3 + $0x48] sm:$0xff] %vm238_vm5, %v209_v51 }
 0x105   :  { %v304_v54 = vpop.permute.xlu1 %303  ;;  %799 = vrot.lane.b32.xlu0 %v173_v32, %s3159_s27 }
 0x106   :  { %344 = vst.msk [vmem:[#allocation3 + $0x40] sm:$0xff] %vm335_vm6, %v304_v54 }
 0x107   :  { %894 = vrot.lane.b32.xlu1 %v269_v34, %s3160_s12  ;;  %v593_v31 = vpop.permute.xlu0 %592 }
 0x108   :  { %634 = vst.msk [vmem:[#allocation3 + $0x38] sm:$0xff] %vm626_vm9, %v593_v31 }
 0x109   :  { %v689_v56 = vpop.permute.xlu1 %688  ;;  %v940_v57 = vld [vmem:[#allocation3 + $0x28] sm:$0xff]  ;;  %511 = vrot.lane.b32.xlu0 %v464_v52, %s3156_s18 }
 0x10a   :  { %731 = vst.msk [vmem:[#allocation3 + $0x30] sm:$0xff] %vm724_vm10, %v689_v56  ;;  %3022 = vmatmul.mubr.msk.f32.gmra.mrb[4].mxu0 %vm951_vm13, %v940_v57 }
 0x10b   :  { %606 = vrot.lane.b32.xlu1 %v270_v39, %s3157_s19  ;;  %v306_v58 = vpop.permute.xlu0 %305 }
 0x10c   :  { %345 = vst.msk [vmem:[#allocation3 + $0x48] sm:$0xff] %vm335_vm6, %v306_v58 }
 0x10d   :  { %v401_v60 = vpop.permute.xlu1 %400  ;;  %896 = vrot.lane.b32.xlu0 %v270_v39, %s3160_s12 }
 0x10e   :  { %441 = vst.msk [vmem:[#allocation3 + $0x40] sm:$0xff] %vm432_vm7, %v401_v60 }
 0x10f   :  { %608 = vrot.lane.b32.xlu1 %v561_v59, %s3157_s19  ;;  %v691_v61 = vpop.permute.xlu0 %690 }
 0x110   :  { %732 = vst.msk [vmem:[#allocation3 + $0x38] sm:$0xff] %vm724_vm10, %v691_v61 }
 0x111   :  { %v786_v63 = vpop.permute.xlu1 %785  ;;  %704 = vrot.lane.b32.xlu0 %v367_v47, %s3158_s20 }
 0x112   :  { %828 = vst.msk [vmem:[#allocation3 + $0x30] sm:$0xff] %vm821_vm11, %v786_v63 }
 0x113   :  { %706 = vrot.lane.b32.xlu1 %v659_v62, %s3158_s20  ;;  %v403_v0 = vpop.permute.xlu0 %402 }
 0x114   :  { %442 = vst.msk [vmem:[#allocation3 + $0x48] sm:$0xff] %vm432_vm7, %v403_v0 }
 0x115   :  { %v498_v12 = vpop.permute.xlu1 %497  ;;  %801 = vrot.lane.b32.xlu0 %v464_v52, %s3159_s27 }
 0x116   :  { %538 = vst.msk [vmem:[#allocation3 + $0x40] sm:$0xff] %vm529_vm8, %v498_v12 }
 0x117   :  { %803 = vrot.lane.b32.xlu1 %v756_v11, %s3159_s27  ;;  %v788_v13 = vpop.permute.xlu0 %787 }
 0x118   :  { %829 = vst.msk [vmem:[#allocation3 + $0x38] sm:$0xff] %vm821_vm11, %v788_v13 }
 0x119   :  { %v883_v15 = vpop.permute.xlu1 %882  ;;  %898 = vrot.lane.b32.xlu0 %v561_v59, %s3160_s12 }
 0x11a   :  { %925 = vst.msk [vmem:[#allocation3 + $0x30] sm:$0xff] %vm918_vm12, %v883_v15 }
 0x11b   :  { %900 = vrot.lane.b32.xlu1 %v853_v14, %s3160_s12  ;;  %v211_v16 = vpop.permute.xlu0 %210 }
 0x11c   :  { %249 = vst.msk [vmem:[#allocation3 + $0x50] sm:$0xff] %vm238_vm5, %v211_v16 }
 0x11d   :  { %v500_v17 = vpop.permute.xlu1 %499 }
 0x11e   :  { %539 = vst.msk [vmem:[#allocation3 + $0x48] sm:$0xff] %vm529_vm8, %v500_v17 }
 0x11f   :  { %v595_v18 = vpop.permute.xlu0 %594 }
 0x120   :  { %635 = vst.msk [vmem:[#allocation3 + $0x40] sm:$0xff] %vm626_vm9, %v595_v18 }
 0x121   :  { %v885_v35 = vpop.permute.xlu1 %884  ;;  %v941_v19 = vld [vmem:[#allocation3 + $0x30] sm:$0xff] }
 0x122   :  { %926 = vst.msk [vmem:[#allocation3 + $0x38] sm:$0xff] %vm918_vm12, %v885_v35  ;;  %3024 = vmatprep.mubr.msk.f32.mxu0 %vm951_vm13, %v941_v19 }
 0x123   :  { %v213_v20 = vpop.permute.xlu0 %212 }
 0x124   :  { %250 = vst.msk [vmem:[#allocation3 + $0x58] sm:$0xff] %vm238_vm5, %v213_v20 }
 0x125   :  { %v308_v21 = vpop.permute.xlu1 %307 }
 0x126   :  { %346 = vst.msk [vmem:[#allocation3 + $0x50] sm:$0xff] %vm335_vm6, %v308_v21 }
 0x127   :  { %v597_v46 = vpop.permute.xlu0 %596 }
 0x128   :  { %636 = vst.msk [vmem:[#allocation3 + $0x48] sm:$0xff] %vm626_vm9, %v597_v46 }
 0x129   :  { %v693_v22 = vpop.permute.xlu1 %692  ;;  %v942_v23 = vld [vmem:[#allocation3 + $0x38] sm:$0xff] }
 0x12a   :  { %733 = vst.msk [vmem:[#allocation3 + $0x40] sm:$0xff] %vm724_vm10, %v693_v22  ;;  %3025 = vmatmul.mubr.msk.f32.gmra.mrb[6].mxu0 %vm951_vm13, %v942_v23 }
 0x12b   :  { %v310_v24 = vpop.permute.xlu0 %309 }
 0x12c   :  { %347 = vst.msk [vmem:[#allocation3 + $0x58] sm:$0xff] %vm335_vm6, %v310_v24 }
 0x12d   :  { %v405_v27 = vpop.permute.xlu1 %404 }
 0x12e   :  { %443 = vst.msk [vmem:[#allocation3 + $0x50] sm:$0xff] %vm432_vm7, %v405_v27 }
 0x12f   :  { %v695_v28 = vpop.permute.xlu0 %694 }
 0x130   :  { %734 = vst.msk [vmem:[#allocation3 + $0x48] sm:$0xff] %vm724_vm10, %v695_v28 }
 0x131   :  { %v790_v29 = vpop.permute.xlu1 %789 }
 0x132   :  { %830 = vst.msk [vmem:[#allocation3 + $0x40] sm:$0xff] %vm821_vm11, %v790_v29 }
 0x133   :  { %v407_v32 = vpop.permute.xlu0 %406 }
 0x134   :  { %444 = vst.msk [vmem:[#allocation3 + $0x58] sm:$0xff] %vm432_vm7, %v407_v32 }
 0x135   :  { %v502_v33 = vpop.permute.xlu1 %501 }
 0x136   :  { %540 = vst.msk [vmem:[#allocation3 + $0x50] sm:$0xff] %vm529_vm8, %v502_v33 }
 0x137   :  { %v792_v34 = vpop.permute.xlu0 %791 }
 0x138   :  { %831 = vst.msk [vmem:[#allocation3 + $0x48] sm:$0xff] %vm821_vm11, %v792_v34 }
 0x139   :  { %v887_v36 = vpop.permute.xlu1 %886 }
 0x13a   :  { %927 = vst.msk [vmem:[#allocation3 + $0x40] sm:$0xff] %vm918_vm12, %v887_v36 }
 0x13b   :  { %v215_v37 = vpop.permute.xlu0 %214 }
 0x13c   :  { %251 = vst.msk [vmem:[#allocation3 + $0x60] sm:$0xff] %vm238_vm5, %v215_v37 }
 0x13d   :  { %v504_v38 = vpop.permute.xlu1 %503 }
 0x13e   :  { %541 = vst.msk [vmem:[#allocation3 + $0x58] sm:$0xff] %vm529_vm8, %v504_v38 }
 0x13f   :  { %v599_v39 = vpop.permute.xlu0 %598 }
 0x140   :  { %637 = vst.msk [vmem:[#allocation3 + $0x50] sm:$0xff] %vm626_vm9, %v599_v39 }
 0x141   :  { %v889_v40 = vpop.permute.xlu1 %888  ;;  %v943_v42 = vld [vmem:[#allocation3 + $0x40] sm:$0xff] }
 0x142   :  { %928 = vst.msk [vmem:[#allocation3 + $0x48] sm:$0xff] %vm918_vm12, %v889_v40  ;;  %3027 = vmatprep.mubr.msk.f32.mxu0 %vm951_vm13, %v943_v42 }
 0x143   :  { %1359 = vst.msk [vmem:[#allocation3 + $0x40] sm:$0xff] %vm35_vm0, %v3494_v55  ;;  %v217_v43 = vpop.permute.xlu0 %216 }
 0x144   :  { %252 = vst.msk [vmem:[#allocation3 + $0x68] sm:$0xff] %vm238_vm5, %v217_v43 }
 0x145   :  { %v312_v44 = vpop.permute.xlu1 %311 }
 0x146   :  { %348 = vst.msk [vmem:[#allocation3 + $0x60] sm:$0xff] %vm335_vm6, %v312_v44 }
 0x147   :  { %v601_v47 = vpop.permute.xlu0 %600 }
 0x148   :  { %638 = vst.msk [vmem:[#allocation3 + $0x58] sm:$0xff] %vm626_vm9, %v601_v47 }
 0x149   :  { %v697_v48 = vpop.permute.xlu1 %696  ;;  %v944_v25 = vld [vmem:[#allocation3 + $0x48] sm:$0xff] }
 0x14a   :  { %735 = vst.msk [vmem:[#allocation3 + $0x50] sm:$0xff] %vm724_vm10, %v697_v48  ;;  %3028 = vmatmul.mubr.msk.f32.gmra.mrb[8].mxu0 %vm951_vm13, %v944_v25 }
 0x14b   :  { %v314_v50 = vpop.permute.xlu0 %313 }
 0x14c   :  { %349 = vst.msk [vmem:[#allocation3 + $0x68] sm:$0xff] %vm335_vm6, %v314_v50 }
 0x14d   :  { %v409_v51 = vpop.permute.xlu1 %408 }
 0x14e   :  { %445 = vst.msk [vmem:[#allocation3 + $0x60] sm:$0xff] %vm432_vm7, %v409_v51 }
 0x14f   :  { %v699_v55 = vpop.permute.xlu0 %698 }
 0x150   :  { %736 = vst.msk [vmem:[#allocation3 + $0x58] sm:$0xff] %vm724_vm10, %v699_v55 }
 0x151   :  { %v794_v54 = vpop.permute.xlu1 %793 }
 0x152   :  { %832 = vst.msk [vmem:[#allocation3 + $0x50] sm:$0xff] %vm821_vm11, %v794_v54 }
 0x153   :  { %v411_v52 = vpop.permute.xlu0 %410 }
 0x154   :  { %446 = vst.msk [vmem:[#allocation3 + $0x68] sm:$0xff] %vm432_vm7, %v411_v52 }
 0x155   :  { %v506_v31 = vpop.permute.xlu1 %505 }
 0x156   :  { %542 = vst.msk [vmem:[#allocation3 + $0x60] sm:$0xff] %vm529_vm8, %v506_v31 }
 0x157   :  { %v796_v56 = vpop.permute.xlu0 %795 }
 0x158   :  { %833 = vst.msk [vmem:[#allocation3 + $0x58] sm:$0xff] %vm821_vm11, %v796_v56 }
 0x159   :  { %v891_v57 = vpop.permute.xlu1 %890 }
 0x15a   :  { %929 = vst.msk [vmem:[#allocation3 + $0x50] sm:$0xff] %vm918_vm12, %v891_v57 }
 0x15b   :  { %v219_v58 = vpop.permute.xlu0 %218 }
 0x15c   :  { %253 = vst.msk [vmem:[#allocation3 + $0x70] sm:$0xff] %vm238_vm5, %v219_v58 }
 0x15d   :  { %v508_v59 = vpop.permute.xlu1 %507 }
 0x15e   :  { %543 = vst.msk [vmem:[#allocation3 + $0x68] sm:$0xff] %vm529_vm8, %v508_v59 }
 0x15f   :  { %v603_v60 = vpop.permute.xlu0 %602 }
 0x160   :  { %639 = vst.msk [vmem:[#allocation3 + $0x60] sm:$0xff] %vm626_vm9, %v603_v60 }
 0x161   :  { %v893_v61 = vpop.permute.xlu1 %892  ;;  %v945_v62 = vld [vmem:[#allocation3 + $0x50] sm:$0xff] }
 0x162   :  { %930 = vst.msk [vmem:[#allocation3 + $0x58] sm:$0xff] %vm918_vm12, %v893_v61  ;;  %3030 = vmatprep.mubr.msk.f32.mxu0 %vm951_vm13, %v945_v62 }
 0x163   :  { %v221_v63 = vpop.permute.xlu0 %220 }
 0x164   :  { %254 = vst.msk [vmem:[#allocation3 + $0x78] sm:$0xff] %vm238_vm5, %v221_v63  ;;  %vm1835_vm5 = vcmask 392512  }
 0x165   :  { %v316_v0 = vpop.permute.xlu1 %315 }
 0x166   :  { %350 = vst.msk [vmem:[#allocation3 + $0x70] sm:$0xff] %vm335_vm6, %v316_v0 }
 0x167   :  { %v605_v11 = vpop.permute.xlu0 %604 }
 0x168   :  { %640 = vst.msk [vmem:[#allocation3 + $0x68] sm:$0xff] %vm626_vm9, %v605_v11 }
 0x169   :  { %v701_v12 = vpop.permute.xlu1 %700  ;;  %v946_v13 = vld [vmem:[#allocation3 + $0x58] sm:$0xff] }
 0x16a   :  { %737 = vst.msk [vmem:[#allocation3 + $0x60] sm:$0xff] %vm724_vm10, %v701_v12  ;;  %3031 = vmatmul.mubr.msk.f32.gmra.mrb[10].mxu0 %vm951_vm13, %v946_v13 }
 0x16b   :  { %v318_v14 = vpop.permute.xlu0 %317 }
 0x16c   :  { %351 = vst.msk [vmem:[#allocation3 + $0x78] sm:$0xff] %vm335_vm6, %v318_v14  ;;  %vm1932_vm6 = vcmask 458112  }
 0x16d   :  { %v413_v15 = vpop.permute.xlu1 %412 }
 0x16e   :  { %447 = vst.msk [vmem:[#allocation3 + $0x70] sm:$0xff] %vm432_vm7, %v413_v15 }
 0x16f   :  { %v703_v16 = vpop.permute.xlu0 %702 }
 0x170   :  { %738 = vst.msk [vmem:[#allocation3 + $0x68] sm:$0xff] %vm724_vm10, %v703_v16 }
 0x171   :  { %v798_v17 = vpop.permute.xlu1 %797 }
 0x172   :  { %834 = vst.msk [vmem:[#allocation3 + $0x60] sm:$0xff] %vm821_vm11, %v798_v17 }
 0x173   :  { %v415_v18 = vpop.permute.xlu0 %414 }
 0x174   :  { %448 = vst.msk [vmem:[#allocation3 + $0x78] sm:$0xff] %vm432_vm7, %v415_v18  ;;  %vm2029_vm7 = vcmask 523712  }
 0x175   :  { %v510_v35 = vpop.permute.xlu1 %509 }
 0x176   :  { %544 = vst.msk [vmem:[#allocation3 + $0x70] sm:$0xff] %vm529_vm8, %v510_v35 }
 0x177   :  { %v800_v19 = vpop.permute.xlu0 %799 }
 0x178   :  { %835 = vst.msk [vmem:[#allocation3 + $0x68] sm:$0xff] %vm821_vm11, %v800_v19 }
 0x179   :  { %v895_v20 = vpop.permute.xlu1 %894 }
 0x17a   :  { %931 = vst.msk [vmem:[#allocation3 + $0x60] sm:$0xff] %vm918_vm12, %v895_v20 }
 0x17b   :  { %v512_v21 = vpop.permute.xlu0 %511 }
 0x17c   :  { %545 = vst.msk [vmem:[#allocation3 + $0x78] sm:$0xff] %vm529_vm8, %v512_v21  ;;  %vm2126_vm8 = vcmask 589312  }
 0x17d   :  { %v607_v46 = vpop.permute.xlu1 %606 }
 0x17e   :  { %641 = vst.msk [vmem:[#allocation3 + $0x70] sm:$0xff] %vm626_vm9, %v607_v46 }
 0x17f   :  { %v897_v22 = vpop.permute.xlu0 %896 }
 0x180   :  { %932 = vst.msk [vmem:[#allocation3 + $0x68] sm:$0xff] %vm918_vm12, %v897_v22 }
 0x181   :  { %v609_v23 = vpop.permute.xlu1 %608  ;;  %v947_v24 = vld [vmem:[#allocation3 + $0x60] sm:$0xff] }
 0x182   :  { %642 = vst.msk [vmem:[#allocation3 + $0x78] sm:$0xff] %vm626_vm9, %v609_v23  ;;  %3033 = vmatprep.mubr.msk.f32.mxu0 %vm951_vm13, %v947_v24  ;;  %vm2159_vm9 = vcmask 588800  }
 0x183   :  { %v705_v27 = vpop.permute.xlu0 %704 }
 0x184   :  { %739 = vst.msk [vmem:[#allocation3 + $0x70] sm:$0xff] %vm724_vm10, %v705_v27 }
 0x185   :  { %v707_v28 = vpop.permute.xlu1 %706 }
 0x186   :  { %740 = vst.msk [vmem:[#allocation3 + $0x78] sm:$0xff] %vm724_vm10, %v707_v28 }
 0x187   :  { %v802_v29 = vpop.permute.xlu0 %801  ;;  %v948_v32 = vld [vmem:[#allocation3 + $0x68] sm:$0xff] }
 0x188   :  { %836 = vst.msk [vmem:[#allocation3 + $0x70] sm:$0xff] %vm821_vm11, %v802_v29  ;;  %3034 = vmatmul.mubr.msk.f32.gmra.mrb[12].mxu0 %vm951_vm13, %v948_v32 }
 0x189   :  { %v804_v33 = vpop.permute.xlu1 %803 }
 0x18a   :  { %837 = vst.msk [vmem:[#allocation3 + $0x78] sm:$0xff] %vm821_vm11, %v804_v33 }
 0x18b   :  { %v899_v34 = vpop.permute.xlu0 %898 }
 0x18c   :  { %933 = vst.msk [vmem:[#allocation3 + $0x70] sm:$0xff] %vm918_vm12, %v899_v34 }
 0x18d   :  { %v901_v36 = vpop.permute.xlu1 %900 }
 0x18e   :  { %934 = vst.msk [vmem:[#allocation3 + $0x78] sm:$0xff] %vm918_vm12, %v901_v36  ;;  %v1367_v36 = vld [vmem:[#allocation2 + $0x1] sm:$0xff] }
 0x18f   :  { %1399 = vrot.lane.b32.xlu0 %v1367_v36, %s3154_s14 }
 0x193   :  { %v949_v37 = vld [vmem:[#allocation3 + $0x70] sm:$0xff] }
 0x194   :  { %3036 = vmatprep.mubr.msk.f32.mxu0 %vm951_vm13, %v949_v37  ;;  %v1464_v37 = vld [vmem:[#allocation2 + $0x2] sm:$0xff] }
 0x195   :  { %v950_v38 = vld [vmem:[#allocation3 + $0x78] sm:$0xff]  ;;  %1496 = vrot.lane.b32.xlu0 %v1464_v37, %s3156_s18 }
 0x196   :  { %3037 = vmatmul.mubr.msk.f32.gmra.mrb[14].mxu0 %vm951_vm13, %v950_v38  ;;  %v1375_v38 = vld [vmem:[#allocation2 + $0xa1] sm:$0xff] }
 0x197   :  { %3083 = vmatprep.mubr.msk.f32.mxu0 %vm104_vm3, %v3259_v1 }
 0x199   :  { %1415 = vrot.lane.b32.xlu0 %v1375_v38, %s3154_s14 }
 0x19d   :  { %v3742_v39 = vpop.f32.mrb[0].mxu0 }
 0x19e   :  { %v1152_v40 = vsel %vm35_vm0, %v3742_v39, 0.0  ;;  %v1189_v42 = vmul.f32 %v3742_v39, %v3742_v39  ;;  %v3748_v43 = vpop.f32.mrb[1].mxu0 }
 0x19f   :  { %v1151_v44 = vsel %vm35_vm0, %v3748_v43, 0.0  ;;  %v1188_v47 = vmul.f32 %v3748_v43, %v3748_v43 }
 0x1a0   :  { %v1205_v48 = vsel %vm35_vm0, %v1189_v42, 0.0  ;;  %v1153_v25 = vadd.f32 %v1152_v40, %v1151_v44  ;;  %v1472_v40 = vld [vmem:[#allocation2 + $0xa2] sm:$0xff]  ;;  %v1859_v42 = vld [vmem:[#allocation2 + $0x90] sm:$0xff] }
 0x1a1   :  { %v1204_v1 = vsel %vm35_vm0, %v1188_v47, 0.0  ;;  %1512 = vrot.lane.b32.xlu1 %v1472_v40, %s3156_s18  ;;  %1898 = vrot.lane.b32.xlu0 %v1859_v42, %s3161_s0  ;;  %v2053_v44 = vld [vmem:[#allocation2 + $0x92] sm:$0xff] }
 0x1a2   :  { %v1206_v50 = vadd.f32 %v1205_v48, %v1204_v1  ;;  %v1956_v47 = vld [vmem:[#allocation2 + $0x91] sm:$0xff] }
 0x1a5   :  { %2092 = vrot.lane.b32.xlu1 %v2053_v44, %s3162_s13  ;;  %1995 = vrot.lane.b32.xlu0 %v1956_v47, %s3163_s15 }
 0x1bd   :  { %v3756_v51 = vpop.f32.mrb[2].mxu0 }
 0x1be   :  { %v3758_v55 = vpop.f32.mrb[3].mxu0  ;;  %v1191_v54 = vmul.f32 %v3756_v51, %v3756_v51  ;;  %v1156_v57 = vsel %vm35_vm0, %v3756_v51, 0.0 }
 0x1bf   :  { %v1154_v52 = vsel %vm35_vm0, %v3758_v55, 0.0  ;;  %v1190_v31 = vmul.f32 %v3758_v55, %v3758_v55 }
 0x1c0   :  { %v1155_v56 = vadd.f32 %v1154_v52, %v1153_v25  ;;  %v1209_v61 = vsel %vm35_vm0, %v1191_v54, 0.0 }
 0x1c1   :  { %v1207_v58 = vsel %vm35_vm0, %v1190_v31, 0.0 }
 0x1c2   :  { %v1208_v59 = vadd.f32 %v1207_v58, %v1206_v50  ;;  %v1157_v60 = vadd.f32 %v1156_v57, %v1155_v56 }
 0x1c4   :  { %v1210_v62 = vadd.f32 %v1209_v61, %v1208_v59 }
 0x1dd   :  { %v3770_v63 = vpop.f32.mrb[4].mxu0 }
 0x1de   :  { %v3772_v0 = vpop.f32.mrb[5].mxu0  ;;  %v1193_v11 = vmul.f32 %v3770_v63, %v3770_v63  ;;  %v1160_v15 = vsel %vm35_vm0, %v3770_v63, 0.0 }
 0x1df   :  { %v1158_v12 = vsel %vm35_vm0, %v3772_v0, 0.0  ;;  %v1192_v13 = vmul.f32 %v3772_v0, %v3772_v0 }
 0x1e0   :  { %v1159_v14 = vadd.f32 %v1158_v12, %v1157_v60  ;;  %v1213_v35 = vsel %vm35_vm0, %v1193_v11, 0.0 }
 0x1e1   :  { %v1211_v16 = vsel %vm35_vm0, %v1192_v13, 0.0 }
 0x1e2   :  { %v1212_v17 = vadd.f32 %v1211_v16, %v1210_v62  ;;  %v1161_v18 = vadd.f32 %v1160_v15, %v1159_v14 }
 0x1e4   :  { %v1214_v19 = vadd.f32 %v1213_v35, %v1212_v17 }
 0x1fd   :  { %v3784_v20 = vpop.f32.mrb[6].mxu0 }
 0x1fe   :  { %v3786_v21 = vpop.f32.mrb[7].mxu0  ;;  %v1195_v46 = vmul.f32 %v3784_v20, %v3784_v20  ;;  %v1164_v27 = vsel %vm35_vm0, %v3784_v20, 0.0 }
 0x1ff   :  { %v1162_v22 = vsel %vm35_vm0, %v3786_v21, 0.0  ;;  %v1194_v23 = vmul.f32 %v3786_v21, %v3786_v21 }
 0x200   :  { %v1163_v24 = vadd.f32 %v1162_v22, %v1161_v18  ;;  %v1217_v33 = vsel %vm35_vm0, %v1195_v46, 0.0 }
 0x201   :  { %v1215_v28 = vsel %vm35_vm0, %v1194_v23, 0.0 }
 0x202   :  { %v1216_v29 = vadd.f32 %v1215_v28, %v1214_v19  ;;  %v1165_v32 = vadd.f32 %v1164_v27, %v1163_v24 }
 0x204   :  { %v1218_v34 = vadd.f32 %v1217_v33, %v1216_v29 }
 0x21d   :  { %v3803_v48 = vpop.f32.mrb[8].mxu0 }
 0x21e   :  { %v3805_v25 = vpop.f32.mrb[9].mxu0  ;;  %v1197_v1 = vmul.f32 %v3803_v48, %v3803_v48  ;;  %v1168_v31 = vsel %vm35_vm0, %v3803_v48, 0.0 }
 0x21f   :  { %v1166_v50 = vsel %vm35_vm0, %v3805_v25, 0.0  ;;  %v1196_v54 = vmul.f32 %v3805_v25, %v3805_v25 }
 0x220   :  { %v1167_v52 = vadd.f32 %v1166_v50, %v1165_v32  ;;  %v1221_v59 = vsel %vm35_vm0, %v1197_v1, 0.0 }
 0x221   :  { %v1219_v56 = vsel %vm35_vm0, %v1196_v54, 0.0 }
 0x222   :  { %v1220_v57 = vadd.f32 %v1219_v56, %v1218_v34  ;;  %v1169_v58 = vadd.f32 %v1168_v31, %v1167_v52 }
 0x224   :  { %v1222_v60 = vadd.f32 %v1221_v59, %v1220_v57 }
 0x23d   :  { %v3819_v61 = vpop.f32.mrb[10].mxu0 }
 0x23e   :  { %v3821_v62 = vpop.f32.mrb[11].mxu0  ;;  %v1199_v11 = vmul.f32 %v3819_v61, %v3819_v61  ;;  %v1172_v15 = vsel %vm35_vm0, %v3819_v61, 0.0 }
 0x23f   :  { %v1170_v12 = vsel %vm35_vm0, %v3821_v62, 0.0  ;;  %v1198_v13 = vmul.f32 %v3821_v62, %v3821_v62 }
 0x240   :  { %v1171_v14 = vadd.f32 %v1170_v12, %v1169_v58  ;;  %v1225_v35 = vsel %vm35_vm0, %v1199_v11, 0.0 }
 0x241   :  { %v1223_v16 = vsel %vm35_vm0, %v1198_v13, 0.0 }
 0x242   :  { %v1224_v17 = vadd.f32 %v1223_v16, %v1222_v60  ;;  %v1173_v18 = vadd.f32 %v1172_v15, %v1171_v14 }
 0x244   :  { %v1226_v19 = vadd.f32 %v1225_v35, %v1224_v17 }
 0x25b   :  { %v3833_v46 = vpop.f32.mrb[12].mxu0 }
 0x25c   :  { %v3835_v22 = vpop.f32.mrb[13].mxu0  ;;  %v1201_v23 = vmul.f32 %v3833_v46, %v3833_v46  ;;  %v1176_v29 = vsel %vm35_vm0, %v3833_v46, 0.0 }
 0x25d   :  { %v1174_v24 = vsel %vm35_vm0, %v3835_v22, 0.0  ;;  %v1200_v27 = vmul.f32 %v3835_v22, %v3835_v22 }
 0x25e   :  { %v1175_v28 = vadd.f32 %v1174_v24, %v1173_v18  ;;  %v1229_v36 = vsel %vm35_vm0, %v1201_v23, 0.0 }
 0x25f   :  { %v1227_v32 = vsel %vm35_vm0, %v1200_v27, 0.0  ;;  %v1335_v27 = vld [vmem:[#allocation2] sm:$0xff] }
 0x260   :  { %v1228_v33 = vadd.f32 %v1227_v32, %v1226_v19  ;;  %v1177_v34 = vadd.f32 %v1176_v29, %v1175_v28  ;;  %1351 = vst.msk [vmem:[#allocation3] sm:$0xff] %vm35_vm0, %v1335_v27  ;;  %v1400_v29 = vpop.permute.xlu0 %1399 }
 0x261   :  { %1448 = vst.msk [vmem:[#allocation3] sm:$0xff] %vm1447_vm14, %v1400_v29 }
 0x262   :  { %v1230_v37 = vadd.f32 %v1229_v36, %v1228_v33  ;;  %v1251_v33 = vlaneseq }
 0x264   :  { %v1252_v36 = vshrl.u32 %v1251_v33, 7 }
 0x269   :  { %v3847_v38 = vpop.f32.mrb[14].mxu0 }
 0x26a   :  { %v1140_v40 = vpop.f32.mrb[15].mxu0  ;;  %v1203_v42 = vmul.f32 %v3847_v38, %v3847_v38  ;;  %v1180_v50 = vsel %vm35_vm0, %v3847_v38, 0.0 }
 0x26b   :  { %v1178_v44 = vsel %vm35_vm0, %v1140_v40, 0.0  ;;  %v1202_v47 = vmul.f32 %v1140_v40, %v1140_v40 }
 0x26c   :  { %v1179_v1 = vadd.f32 %v1178_v44, %v1177_v34  ;;  %v1233_v56 = vsel %vm35_vm0, %v1203_v42, 0.0  ;;  %v1497_v34 = vpop.permute.xlu0 %1496  ;;  %v1149_v42 = vld [vmem:[%s4661_s2] sm:$0x1]  ;;  %v3863_v44 = vsub.s32 0, %v1252_v36  ;;  %s3164_s2 = smov 40  }
 0x26d   :  { %v1231_v54 = vsel %vm35_vm0, %v1202_v47, 0.0  ;;  %1545 = vst.msk [vmem:[#allocation3] sm:$0xff] %vm1544_vm15, %v1497_v34  ;;  %v1513_v47 = vpop.permute.xlu1 %1512 }
 0x26e   :  { %v1181_v52 = vadd.f32 %v1180_v50, %v1179_v1  ;;  %v1232_v31 = vadd.f32 %v1231_v54, %v1230_v37  ;;  %v1150_v54 = vld [vmem:[%s4662_s3] sm:$0x1] }
 0x270   :  { %v1182_v57 = vrot.slane %v1181_v52, 4  ;;  %v1234_v58 = vadd.f32 %v1233_v56, %v1232_v31  ;;  %v1416_v37 = vpop.permute.xlu0 %1415 }
 0x271   :  { %1456 = vst.msk [vmem:[#allocation3 + $0x40] sm:$0xff] %vm1447_vm14, %v1416_v37 }
 0x272   :  { %v1183_v59 = vadd.f32 %v1182_v57, %v1181_v52  ;;  %v1235_v60 = vrot.slane %v1234_v58, 4  ;;  %1553 = vst.msk [vmem:[#allocation3 + $0x40] sm:$0xff] %vm1544_vm15, %v1513_v47 }
 0x274   :  { %v1184_v11 = vrot.slane %v1183_v59, 2  ;;  %v1236_v12 = vadd.f32 %v1235_v60, %v1234_v58 }
 0x276   :  { %v1185_v13 = vadd.f32 %v1184_v11, %v1183_v59  ;;  %v1237_v14 = vrot.slane %v1236_v12, 2 }
 0x278   :  { %v1186_v15 = vrot.slane %v1185_v13, 1  ;;  %v1238_v16 = vadd.f32 %v1237_v14, %v1236_v12 }
 0x27a   :  { %v1187_v17 = vadd.f32 %v1186_v15, %v1185_v13  ;;  %v1239_v18 = vrot.slane %v1238_v16, 1 }
 0x27c   :  { %v1240_v35 = vadd.f32 %v1239_v18, %v1238_v16  ;;  %v1241_v19 = vmul.f32 0.0078125, %v1187_v17 }
 0x27e   :  { %v1242_v23 = vmul.f32 0.0078125, %v1240_v35  ;;  %v1243_v24 = vmul.f32 %v1241_v19, %v1241_v19 }
 0x280   :  { %v1244_v28 = vsub.f32 %v1242_v23, %v1243_v24 }
 0x282   :  { %v1245_v32 = vadd.f32 1e-05, %v1244_v28 }
 0x284   :  { %3146 = vrsqrt.f32 %v1245_v32 }
 0x28e   :  { %v3147_v1 = vpop.eup %3146 }
 0x28f   :  { %v1247_v50 = vmul.f32 %v3147_v1, %v1149_v42 }
 0x291   :  { %v1248_v52 = vmul.f32 %v1247_v50, %v1241_v19  ;;  %v1254_v31 = vrot.slane %v1247_v50, %v3863_v44 }
 0x293   :  { %v1249_v56 = vsub.f32 %v1150_v54, %v1248_v52  ;;  %v1270_v57 = vmul.f32 %v1254_v31, %v1140_v40  ;;  %v1256_v58 = vmul.f32 %v1254_v31, %v3748_v43  ;;  %v1257_v59 = vmul.f32 %v3742_v39, %v1254_v31 }
 0x294   :  { %v1258_v60 = vmul.f32 %v1254_v31, %v3758_v55  ;;  %v1259_v11 = vmul.f32 %v3756_v51, %v1254_v31  ;;  %v1260_v12 = vmul.f32 %v1254_v31, %v3772_v0  ;;  %v1261_v13 = vmul.f32 %v3770_v63, %v1254_v31 }
 0x295   :  { %v1276_v14 = vrot.slane %v1249_v56, %v3863_v44  ;;  %v1262_v15 = vmul.f32 %v1254_v31, %v3786_v21  ;;  %v1263_v16 = vmul.f32 %v3784_v20, %v1254_v31  ;;  %v1264_v40 = vmul.f32 %v1254_v31, %v3805_v25 }
 0x296   :  { %v1265_v43 = vmul.f32 %v3803_v48, %v1254_v31  ;;  %v1266_v39 = vmul.f32 %v1254_v31, %v3821_v62  ;;  %v1267_v55 = vmul.f32 %v3819_v61, %v1254_v31  ;;  %v1268_v36 = vmul.f32 %v1254_v31, %v3835_v22 }
 0x297   :  { %v1292_v17 = vadd.f32 %v1276_v14, %v1270_v57  ;;  %v1278_v51 = vadd.f32 %v1276_v14, %v1256_v58  ;;  %v1279_v18 = vadd.f32 %v1276_v14, %v1257_v59  ;;  %v1280_v0 = vadd.f32 %v1276_v14, %v1258_v60 }
 0x298   :  { %v1281_v35 = vadd.f32 %v1276_v14, %v1259_v11  ;;  %v1282_v63 = vadd.f32 %v1276_v14, %v1260_v12  ;;  %v1283_v19 = vadd.f32 %v1276_v14, %v1261_v13  ;;  %v1284_v23 = vadd.f32 %v1276_v14, %v1262_v15 }
 0x299   :  { %v1308_v24 = vmax.f32 %v1292_v17, 0.0  ;;  %v1294_v21 = vmax.f32 %v1278_v51, 0.0  ;;  %v1295_v27 = vmax.f32 %v1279_v18, 0.0  ;;  %v1296_v20 = vmax.f32 %v1280_v0, 0.0 }
 0x29a   :  { %v1297_v28 = vmax.f32 %v1281_v35, 0.0  ;;  %v1298_v25 = vmax.f32 %v1282_v63, 0.0  ;;  %v1299_v29 = vmax.f32 %v1283_v19, 0.0  ;;  %v1300_v48 = vmax.f32 %v1284_v23, 0.0  ;;  %v1326_v23 = vld [vmem:[%s4663_s4] sm:$0xff] }
 0x29b   :  { %1324 = vst.msk [vmem:[#allocation2 + $0x111] sm:$0xff] %vm35_vm0, %v1308_v24  ;;  %1310 = vst.msk [vmem:[#allocation2 + $0x11] sm:$0xff] %vm35_vm0, %v1294_v21  ;;  %v1285_v61 = vadd.f32 %v1276_v14, %v1263_v16  ;;  %v1286_v62 = vadd.f32 %v1276_v14, %v1264_v40  ;;  %v1287_v32 = vadd.f32 %v1276_v14, %v1265_v43  ;;  %v1327_v24 = vld [vmem:[%s4663_s4 + $0x8] sm:$0xff] }
 0x29c   :  { %1311 = vst.msk [vmem:[#allocation2 + $0x21] sm:$0xff] %vm35_vm0, %v1295_v27  ;;  %1312 = vst.msk [vmem:[#allocation2 + $0x31] sm:$0xff] %vm35_vm0, %v1296_v20  ;;  %v1288_v33 = vadd.f32 %v1276_v14, %v1266_v39  ;;  %v1289_v34 = vadd.f32 %v1276_v14, %v1267_v55  ;;  %v1269_v37 = vmul.f32 %v3833_v46, %v1254_v31  ;;  %v1328_v27 = vld [vmem:[%s4663_s4 + $0x10] sm:$0xff]  ;;  %v1329_v20 = vld [vmem:[%s4663_s4 + $0x18] sm:$0xff] }
 0x29d   :  { %1313 = vst.msk [vmem:[#allocation2 + $0x41] sm:$0xff] %vm35_vm0, %v1297_v28  ;;  %1314 = vst.msk [vmem:[#allocation2 + $0x51] sm:$0xff] %vm35_vm0, %v1298_v25  ;;  %v1301_v42 = vmax.f32 %v1285_v61, 0.0  ;;  %v1302_v47 = vmax.f32 %v1286_v62, 0.0  ;;  %v1303_v1 = vmax.f32 %v1287_v32, 0.0  ;;  %v1271_v50 = vmul.f32 %v3847_v38, %v1254_v31  ;;  %v1330_v25 = vld [vmem:[%s4663_s4 + $0x20] sm:$0xff] }
 0x29e   :  { %1315 = vst.msk [vmem:[#allocation2 + $0x61] sm:$0xff] %vm35_vm0, %v1299_v29  ;;  %1316 = vst.msk [vmem:[#allocation2 + $0x71] sm:$0xff] %vm35_vm0, %v1300_v48  ;;  %v1304_v54 = vmax.f32 %v1288_v33, 0.0  ;;  %v1305_v52 = vmax.f32 %v1289_v34, 0.0  ;;  %v1290_v56 = vadd.f32 %v1276_v14, %v1268_v36  ;;  %v1291_v57 = vadd.f32 %v1276_v14, %v1269_v37  ;;  %v1331_v29 = vld [vmem:[%s4663_s4 + $0x28] sm:$0xff]  ;;  %v1332_v62 = vld [vmem:[%s4663_s4 + $0x30] sm:$0xff] }
 0x29f   :  { %1317 = vst.msk [vmem:[#allocation2 + $0x81] sm:$0xff] %vm35_vm0, %v1301_v42  ;;  %1318 = vst.msk [vmem:[#allocation2 + $0xb1] sm:$0xff] %vm35_vm0, %v1302_v47  ;;  %v1293_v58 = vadd.f32 %v1276_v14, %v1271_v50  ;;  %v3115_v21 = vpack.c.bf16 %v1327_v24, %v1326_v23  ;;  %v3119_v28 = vpack.c.bf16 %v1329_v20, %v1328_v27  ;;  %v1333_v32 = vld [vmem:[%s4663_s4 + $0x38] sm:$0xff]  ;;  %v1334_v34 = vld [vmem:[%s4663_s4 + $0x40] sm:$0xff] }
 0x2a0   :  { %1319 = vst.msk [vmem:[#allocation2 + $0xc1] sm:$0xff] %vm35_vm0, %v1303_v1  ;;  %1320 = vst.msk [vmem:[#allocation2 + $0xd1] sm:$0xff] %vm35_vm0, %v1304_v54  ;;  %v1306_v46 = vmax.f32 %v1290_v56, 0.0  ;;  %v1307_v22 = vmax.f32 %v1291_v57, 0.0  ;;  %v3123_v48 = vpack.c.bf16 %v1331_v29, %v1330_v25  ;;  %v3127_v33 = vpack.c.bf16 %v1333_v32, %v1332_v62  ;;  %v4036_v56 = vpop.permute.xlu0 %1898 }
 0x2a1   :  { %1321 = vst.msk [vmem:[#allocation2 + $0xe1] sm:$0xff] %vm35_vm0, %v1305_v52  ;;  %v1309_v59 = vmax.f32 %v1293_v58, 0.0  ;;  %3116 = vmatprep.subr.bf16.mxu1 %v3115_v21 }
 0x2a2   :  { %v1561_v60 = vld [vmem:[#allocation2 + $0x10] sm:$0xff]  ;;  %1322 = vst.msk [vmem:[#allocation2 + $0xf1] sm:$0xff] %vm35_vm0, %v1306_v46  ;;  %1323 = vst.msk [vmem:[#allocation2 + $0x101] sm:$0xff] %vm35_vm0, %v1307_v22  ;;  %3118 = vmatpush3.bf16.msra.mxu1 %v3115_v21  ;;  %v4042_v22 = vpop.permute.xlu1 %2092 }
 0x2a3   :  { %v1368_v38 = vld [vmem:[#allocation2 + $0x11] sm:$0xff]  ;;  %1593 = vrot.lane.b32.xlu0 %v1561_v60, %s3158_s20  ;;  %v1562_v31 = vld [vmem:[#allocation2 + $0x20] sm:$0xff]  ;;  %1352 = vst.msk [vmem:[#allocation3 + $0x8] sm:$0xff] %vm35_vm0, %v1561_v60  ;;  %1325 = vst.msk [vmem:[#allocation2 + $0x121] sm:$0xff] %vm35_vm0, %v1309_v59  ;;  %3120 = vmatprep.subr.bf16.mxu1 %v3119_v28 }
 0x2a4   :  { %1401 = vrot.lane.b32.xlu1 %v1368_v38, %s3154_s14  ;;  %v1853_v11 = vld [vmem:[#allocation2 + $0x30] sm:$0xff]  ;;  %1353 = vst.msk [vmem:[#allocation3 + $0x10] sm:$0xff] %vm35_vm0, %v1562_v31  ;;  %v3906_v12 = vld [vmem:[#allocation2 + $0x40] sm:$0xff]  ;;  %v4044_v59 = vpop.permute.xlu0 %1995 }
 0x2a5   :  { %1354 = vst.msk [vmem:[#allocation3 + $0x18] sm:$0xff] %vm35_vm0, %v1853_v11  ;;  %v1465_v13 = vld [vmem:[#allocation2 + $0x12] sm:$0xff]  ;;  %1355 = vst.msk [vmem:[#allocation3 + $0x20] sm:$0xff] %vm35_vm0, %v3906_v12  ;;  %v3915_v15 = vld [vmem:[#allocation2 + $0x60] sm:$0xff] }
 0x2a6   :  { %v3909_v14 = vld [vmem:[#allocation2 + $0x50] sm:$0xff]  ;;  %1357 = vst.msk [vmem:[#allocation3 + $0x30] sm:$0xff] %vm35_vm0, %v3915_v15  ;;  %v1659_v40 = vld [vmem:[#allocation2 + $0x21] sm:$0xff]  ;;  %3122 = vmatpush3.bf16.msra.mxu1 %v3119_v28 }
 0x2a7   :  { %1690 = vrot.lane.b32.xlu0 %v1368_v38, %s3160_s12  ;;  %1356 = vst.msk [vmem:[#allocation3 + $0x28] sm:$0xff] %vm35_vm0, %v3909_v14  ;;  %v3919_v16 = vld [vmem:[#allocation2 + $0x70] sm:$0xff]  ;;  %v3925_v43 = vld [vmem:[#allocation2 + $0xc0] sm:$0xff]  ;;  %3124 = vmatprep.subr.bf16.mxu1 %v3123_v48 }
 0x2a8   :  { %1498 = vrot.lane.b32.xlu1 %v1465_v13, %s3156_s18  ;;  %1358 = vst.msk [vmem:[#allocation3 + $0x38] sm:$0xff] %vm35_vm0, %v3919_v16  ;;  %v3929_v39 = vld [vmem:[#allocation2 + $0xb0] sm:$0xff]  ;;  %1361 = vst.msk [vmem:[#allocation3 + $0x50] sm:$0xff] %vm35_vm0, %v3925_v43  ;;  %v3937_v17 = vld [vmem:[#allocation2 + $0xe0] sm:$0xff] }
 0x2a9   :  { %v3933_v55 = vld [vmem:[#allocation2 + $0xd0] sm:$0xff]  ;;  %1360 = vst.msk [vmem:[#allocation3 + $0x48] sm:$0xff] %vm35_vm0, %v3929_v39  ;;  %1363 = vst.msk [vmem:[#allocation3 + $0x60] sm:$0xff] %vm35_vm0, %v3937_v17  ;;  %v3947_v0 = vld [vmem:[#allocation2 + $0x100] sm:$0xff] }
 0x2aa   :  { %1362 = vst.msk [vmem:[#allocation3 + $0x58] sm:$0xff] %vm35_vm0, %v3933_v55  ;;  %v1370_v51 = vld [vmem:[#allocation2 + $0x31] sm:$0xff]  ;;  %1365 = vst.msk [vmem:[#allocation3 + $0x70] sm:$0xff] %vm35_vm0, %v3947_v0  ;;  %v1756_v63 = vld [vmem:[#allocation2 + $0x22] sm:$0xff]  ;;  %3126 = vmatpush3.bf16.msra.mxu1 %v3123_v48 }
 0x2ab   :  { %1692 = vrot.lane.b32.xlu0 %v1659_v40, %s3160_s12  ;;  %v3941_v18 = vld [vmem:[#allocation2 + $0xf0] sm:$0xff]  ;;  %v1371_v61 = vld [vmem:[#allocation2 + $0x41] sm:$0xff]  ;;  %3128 = vmatprep.subr.bf16.mxu1 %v3127_v33 }
 0x2ac   :  { %1595 = vrot.lane.b32.xlu1 %v1562_v31, %s3158_s20  ;;  %1364 = vst.msk [vmem:[#allocation3 + $0x68] sm:$0xff] %vm35_vm0, %v3941_v18  ;;  %v3951_v35 = vld [vmem:[#allocation2 + $0x110] sm:$0xff]  ;;  %v1758_v37 = vld [vmem:[#allocation2 + $0x42] sm:$0xff] }
 0x2ad   :  { %1366 = vst.msk [vmem:[#allocation3 + $0x78] sm:$0xff] %vm35_vm0, %v3951_v35  ;;  %v1467_v19 = vld [vmem:[#allocation2 + $0x32] sm:$0xff]  ;;  %v1373_v47 = vld [vmem:[#allocation2 + $0x61] sm:$0xff] }
 0x2ae   :  { %3130 = vmatpush3.bf16.msra.mxu1 %v3127_v33  ;;  %v1372_v36 = vld [vmem:[#allocation2 + $0x51] sm:$0xff]  ;;  %v1760_v50 = vld [vmem:[#allocation2 + $0x62] sm:$0xff] }
 0x2af   :  { %1405 = vrot.lane.b32.xlu0 %v1370_v51, %s3154_s14  ;;  %3055 = vmatprep.subr.mxu1 %v1334_v34  ;;  %v1469_v42 = vld [vmem:[#allocation2 + $0x52] sm:$0xff]  ;;  %v1568_v52 = vld [vmem:[#allocation2 + $0x80] sm:$0xff] }
 0x2b0   :  { %1403 = vrot.lane.b32.xlu1 %v1659_v40, %s3154_s14  ;;  %v1374_v1 = vld [vmem:[#allocation2 + $0x71] sm:$0xff]  ;;  %v1762_v58 = vld [vmem:[#allocation2 + $0x82] sm:$0xff] }
 0x2b1   :  { %v1471_v54 = vld [vmem:[#allocation2 + $0x72] sm:$0xff]  ;;  %v1665_v46 = vld [vmem:[#allocation2 + $0x81] sm:$0xff] }
 0x2b2   :  { %3056 = vmatpush3.msra.mxu1 %v1334_v34  ;;  %v1376_v57 = vld [vmem:[#allocation2 + $0xb1] sm:$0xff]  ;;  %v1379_v32 = vld [vmem:[#allocation2 + $0xe1] sm:$0xff] }
 0x2b3   :  { %1789 = vrot.lane.b32.xlu0 %v1756_v63, %s3164_s2  ;;  %v1473_v60 = vld [vmem:[#allocation2 + $0xb2] sm:$0xff] }
 0x2b4   :  { %1787 = vrot.lane.b32.xlu1 %v1465_v13, %s3164_s2  ;;  %v1377_v13 = vld [vmem:[#allocation2 + $0xc1] sm:$0xff]  ;;  %v1475_v21 = vld [vmem:[#allocation2 + $0xd2] sm:$0xff] }
 0x2b7   :  { %1502 = vrot.lane.b32.xlu0 %v1467_v19, %s3156_s18 }
 0x2b8   :  { %1500 = vrot.lane.b32.xlu1 %v1756_v63, %s3156_s18 }
 0x2bb   :  { %1886 = vrot.lane.b32.xlu0 %v1853_v11, %s3161_s0 }
 0x2bc   :  { %1884 = vrot.lane.b32.xlu1 %v1562_v31, %s3161_s0 }
 0x2bf   :  { %1599 = vrot.lane.b32.xlu0 %v3906_v12, %s3158_s20 }
 0x2c0   :  { %1597 = vrot.lane.b32.xlu1 %v1853_v11, %s3158_s20 }
 0x2c3   :  { %1983 = vrot.lane.b32.xlu0 %v1370_v51, %s3163_s15 }
 0x2c4   :  { %1981 = vrot.lane.b32.xlu1 %v1659_v40, %s3163_s15 }
 0x2c7   :  { %1407 = vrot.lane.b32.xlu0 %v1371_v61, %s3154_s14 }
 0x2c8   :  { %1694 = vrot.lane.b32.xlu1 %v1370_v51, %s3160_s12  ;;  %v1378_v51 = vld [vmem:[#allocation2 + $0xd1] sm:$0xff] }
 0x2cb   :  { %1791 = vrot.lane.b32.xlu0 %v1467_v19, %s3164_s2 }
 0x2cc   :  { %2078 = vrot.lane.b32.xlu1 %v1756_v63, %s3162_s13 }
 0x2cf   :  { %1409 = vrot.lane.b32.xlu0 %v1372_v36, %s3154_s14 }
 0x2d0   :  { %1696 = vrot.lane.b32.xlu1 %v1371_v61, %s3160_s12 }
 0x2d3   :  { %1793 = vrot.lane.b32.xlu0 %v1758_v37, %s3164_s2 }
 0x2d4   :  { %2080 = vrot.lane.b32.xlu1 %v1467_v19, %s3162_s13  ;;  %v1764_v19 = vld [vmem:[#allocation2 + $0xc2] sm:$0xff] }
 0x2d7   :  { %1506 = vrot.lane.b32.xlu0 %v1469_v42, %s3156_s18 }
 0x2d8   :  { %1504 = vrot.lane.b32.xlu1 %v1758_v37, %s3156_s18 }
 0x2db   :  { %1890 = vrot.lane.b32.xlu0 %v3909_v14, %s3161_s0 }
 0x2dc   :  { %1888 = vrot.lane.b32.xlu1 %v3906_v12, %s3161_s0 }
 0x2df   :  { %1603 = vrot.lane.b32.xlu0 %v3915_v15, %s3158_s20 }
 0x2e0   :  { %1601 = vrot.lane.b32.xlu1 %v3909_v14, %s3158_s20 }
 0x2e3   :  { %1987 = vrot.lane.b32.xlu0 %v1372_v36, %s3163_s15 }
 0x2e4   :  { %1985 = vrot.lane.b32.xlu1 %v1371_v61, %s3163_s15 }
 0x2e7   :  { %1411 = vrot.lane.b32.xlu0 %v1373_v47, %s3154_s14 }
 0x2e8   :  { %1698 = vrot.lane.b32.xlu1 %v1372_v36, %s3160_s12  ;;  %v1380_v36 = vld [vmem:[#allocation2 + $0xf1] sm:$0xff] }
 0x2eb   :  { %1795 = vrot.lane.b32.xlu0 %v1469_v42, %s3164_s2 }
 0x2ec   :  { %2082 = vrot.lane.b32.xlu1 %v1758_v37, %s3162_s13 }
 0x2ef   :  { %1413 = vrot.lane.b32.xlu0 %v1374_v1, %s3154_s14 }
 0x2f0   :  { %1700 = vrot.lane.b32.xlu1 %v1373_v47, %s3160_s12 }
 0x2f3   :  { %1797 = vrot.lane.b32.xlu0 %v1760_v50, %s3164_s2 }
 0x2f4   :  { %2084 = vrot.lane.b32.xlu1 %v1469_v42, %s3162_s13 }
 0x2f7   :  { %1510 = vrot.lane.b32.xlu0 %v1471_v54, %s3156_s18 }
 0x2f8   :  { %1508 = vrot.lane.b32.xlu1 %v1760_v50, %s3156_s18 }
 0x2fb   :  { %1894 = vrot.lane.b32.xlu0 %v3919_v16, %s3161_s0 }
 0x2fc   :  { %1892 = vrot.lane.b32.xlu1 %v3915_v15, %s3161_s0 }
 0x2ff   :  { %1607 = vrot.lane.b32.xlu0 %v1568_v52, %s3158_s20 }
 0x300   :  { %1605 = vrot.lane.b32.xlu1 %v3919_v16, %s3158_s20 }
 0x303   :  { %1991 = vrot.lane.b32.xlu0 %v1374_v1, %s3163_s15 }
 0x304   :  { %1989 = vrot.lane.b32.xlu1 %v1373_v47, %s3163_s15 }
 0x307   :  { %1799 = vrot.lane.b32.xlu0 %v1471_v54, %s3164_s2 }
 0x308   :  { %1702 = vrot.lane.b32.xlu1 %v1374_v1, %s3160_s12  ;;  %v1766_v1 = vld [vmem:[#allocation2 + $0xe2] sm:$0xff] }
 0x30b   :  { %1417 = vrot.lane.b32.xlu0 %v1376_v57, %s3154_s14 }
 0x30c   :  { %2086 = vrot.lane.b32.xlu1 %v1760_v50, %s3162_s13 }
 0x30f   :  { %1801 = vrot.lane.b32.xlu0 %v1762_v58, %s3164_s2 }
 0x310   :  { %1704 = vrot.lane.b32.xlu1 %v1665_v46, %s3160_s12 }
 0x313   :  { %1514 = vrot.lane.b32.xlu0 %v1473_v60, %s3156_s18 }
 0x314   :  { %2088 = vrot.lane.b32.xlu1 %v1471_v54, %s3162_s13 }
 0x315   :  { %v1594_v38 = vpop.permute.xlu0 %1593 }
 0x316   :  { %v1402_v31 = vpop.permute.xlu1 %1401  ;;  %1642 = vst.msk [vmem:[#allocation3] sm:$0xff] %vm1641_vm1, %v1594_v38 }
 0x317   :  { %1449 = vst.msk [vmem:[#allocation3 + $0x8] sm:$0xff] %vm1447_vm14, %v1402_v31  ;;  %1611 = vrot.lane.b32.xlu0 %v3925_v43, %s3158_s20 }
 0x318   :  { %1896 = vrot.lane.b32.xlu1 %v1568_v52, %s3161_s0  ;;  %v4109_v52 = vld [vmem:[#allocation2 + $0xf2] sm:$0xff] }
 0x319   :  { %v1691_v11 = vpop.permute.xlu0 %1690 }
 0x31a   :  { %v1499_v12 = vpop.permute.xlu1 %1498  ;;  %1739 = vst.msk [vmem:[#allocation3] sm:$0xff] %vm1738_vm2, %v1691_v11 }
 0x31b   :  { %1546 = vst.msk [vmem:[#allocation3 + $0x8] sm:$0xff] %vm1544_vm15, %v1499_v12  ;;  %1419 = vrot.lane.b32.xlu0 %v1377_v13, %s3154_s14 }
 0x31c   :  { %1609 = vrot.lane.b32.xlu1 %v3929_v39, %s3158_s20 }
 0x31d   :  { %v1693_v14 = vpop.permute.xlu0 %1692 }
 0x31e   :  { %v1596_v15 = vpop.permute.xlu1 %1595 }
 0x31f   :  { %1643 = vst.msk [vmem:[#allocation3 + $0x8] sm:$0xff] %vm1641_vm1, %v1596_v15  ;;  %1803 = vrot.lane.b32.xlu0 %v1473_v60, %s3164_s2 }
 0x320   :  { %1740 = vst.msk [vmem:[#allocation3 + $0x8] sm:$0xff] %vm1738_vm2, %v1693_v14  ;;  %1993 = vrot.lane.b32.xlu1 %v1665_v46, %s3163_s15  ;;  %v4133_v14 = vld [vmem:[#allocation2 + $0x101] sm:$0xff] }
 0x321   :  { %v1406_v16 = vpop.permute.xlu0 %1405 }
 0x322   :  { %v1404_v40 = vpop.permute.xlu1 %1403  ;;  %1451 = vst.msk [vmem:[#allocation3 + $0x18] sm:$0xff] %vm1447_vm14, %v1406_v16 }
 0x323   :  { %1450 = vst.msk [vmem:[#allocation3 + $0x10] sm:$0xff] %vm1447_vm14, %v1404_v40  ;;  %1421 = vrot.lane.b32.xlu0 %v1378_v51, %s3154_s14 }
 0x324   :  { %1706 = vrot.lane.b32.xlu1 %v1376_v57, %s3160_s12 }
 0x325   :  { %v1790_v39 = vpop.permute.xlu0 %1789 }
 0x326   :  { %v1788_v63 = vpop.permute.xlu1 %1787  ;;  %1837 = vst.msk [vmem:[#allocation3 + $0x8] sm:$0xff] %vm1835_vm5, %v1790_v39 }
 0x327   :  { %1836 = vst.msk [vmem:[#allocation3] sm:$0xff] %vm1835_vm5, %v1788_v63  ;;  %1805 = vrot.lane.b32.xlu0 %v1764_v19, %s3164_s2 }
 0x328   :  { %2090 = vrot.lane.b32.xlu1 %v1762_v58, %s3162_s13 }
 0x329   :  { %v1503_v23 = vpop.permute.xlu0 %1502 }
 0x32a   :  { %v1501_v24 = vpop.permute.xlu1 %1500  ;;  %1548 = vst.msk [vmem:[#allocation3 + $0x18] sm:$0xff] %vm1544_vm15, %v1503_v23  ;;  %v1768_v23 = vld [vmem:[#allocation2 + $0x102] sm:$0xff] }
 0x32b   :  { %1547 = vst.msk [vmem:[#allocation3 + $0x10] sm:$0xff] %vm1544_vm15, %v1501_v24  ;;  %1518 = vrot.lane.b32.xlu0 %v1475_v21, %s3156_s18  ;;  %v1479_v24 = vld [vmem:[#allocation2 + $0x112] sm:$0xff] }
 0x32c   :  { %1708 = vrot.lane.b32.xlu1 %v1377_v13, %s3160_s12 }
 0x32d   :  { %v1887_v27 = vpop.permute.xlu0 %1886 }
 0x32e   :  { %v1885_v20 = vpop.permute.xlu1 %1884  ;;  %1934 = vst.msk [vmem:[#allocation3 + $0x8] sm:$0xff] %vm1932_vm6, %v1887_v27  ;;  %v1576_v27 = vld [vmem:[#allocation2 + $0x120] sm:$0xff] }
 0x32f   :  { %1933 = vst.msk [vmem:[#allocation3] sm:$0xff] %vm1932_vm6, %v1885_v20  ;;  %1902 = vrot.lane.b32.xlu0 %v3933_v55, %s3161_s0 }
 0x330   :  { %1516 = vrot.lane.b32.xlu1 %v1764_v19, %s3156_s18 }
 0x331   :  { %v1600_v28 = vpop.permute.xlu0 %1599 }
 0x332   :  { %v1598_v25 = vpop.permute.xlu1 %1597  ;;  %1645 = vst.msk [vmem:[#allocation3 + $0x18] sm:$0xff] %vm1641_vm1, %v1600_v28 }
 0x333   :  { %1644 = vst.msk [vmem:[#allocation3 + $0x10] sm:$0xff] %vm1641_vm1, %v1598_v25  ;;  %1615 = vrot.lane.b32.xlu0 %v3937_v17, %s3158_s20 }
 0x334   :  { %1900 = vrot.lane.b32.xlu1 %v3925_v43, %s3161_s0 }
 0x335   :  { %v1984_v29 = vpop.permute.xlu0 %1983 }
 0x336   :  { %v1982_v48 = vpop.permute.xlu1 %1981  ;;  %2031 = vst.msk [vmem:[#allocation3 + $0x8] sm:$0xff] %vm2029_vm7, %v1984_v29 }
 0x337   :  { %2030 = vst.msk [vmem:[#allocation3] sm:$0xff] %vm2029_vm7, %v1982_v48  ;;  %1999 = vrot.lane.b32.xlu0 %v1378_v51, %s3163_s15 }
 0x338   :  { %1613 = vrot.lane.b32.xlu1 %v3933_v55, %s3158_s20 }
 0x339   :  { %v1408_v61 = vpop.permute.xlu0 %1407 }
 0x33a   :  { %v1695_v62 = vpop.permute.xlu1 %1694  ;;  %1452 = vst.msk [vmem:[#allocation3 + $0x20] sm:$0xff] %vm1447_vm14, %v1408_v61 }
 0x33b   :  { %1741 = vst.msk [vmem:[#allocation3 + $0x10] sm:$0xff] %vm1738_vm2, %v1695_v62  ;;  %1423 = vrot.lane.b32.xlu0 %v1379_v32, %s3154_s14 }
 0x33c   :  { %1997 = vrot.lane.b32.xlu1 %v1377_v13, %s3163_s15 }
 0x33d   :  { %v1792_v43 = vpop.permute.xlu0 %1791 }
 0x33e   :  { %v2079_v33 = vpop.permute.xlu1 %2078  ;;  %1838 = vst.msk [vmem:[#allocation3 + $0x10] sm:$0xff] %vm1835_vm5, %v1792_v43 }
 0x33f   :  { %2127 = vst.msk [vmem:[#allocation3] sm:$0xff] %vm2126_vm8, %v2079_v33  ;;  %1807 = vrot.lane.b32.xlu0 %v1475_v21, %s3164_s2 }
 0x340   :  { %1710 = vrot.lane.b32.xlu1 %v1378_v51, %s3160_s12  ;;  %v1382_v51 = vld [vmem:[#allocation2 + $0x111] sm:$0xff] }
 0x341   :  { %v1410_v55 = vpop.permute.xlu0 %1409 }
 0x342   :  { %v1697_v34 = vpop.permute.xlu1 %1696  ;;  %1453 = vst.msk [vmem:[#allocation3 + $0x28] sm:$0xff] %vm1447_vm14, %v1410_v55 }
 0x343   :  { %1742 = vst.msk [vmem:[#allocation3 + $0x18] sm:$0xff] %vm1738_vm2, %v1697_v34  ;;  %1425 = vrot.lane.b32.xlu0 %v1380_v36, %s3154_s14  ;;  %v1964_v34 = vld [vmem:[#allocation2 + $0x131] sm:$0xff] }
 0x344   :  { %2094 = vrot.lane.b32.xlu1 %v1764_v19, %s3162_s13 }
 0x345   :  { %v1794_v37 = vpop.permute.xlu0 %1793 }
 0x346   :  { %v2081_v42 = vpop.permute.xlu1 %2080  ;;  %v2143_v47 = vld [vmem:[#allocation3] sm:$0xff]  ;;  %1839 = vst.msk [vmem:[#allocation3 + $0x18] sm:$0xff] %vm1835_vm5, %v1794_v37 }
 0x347   :  { %2128 = vst.msk [vmem:[#allocation3 + $0x8] sm:$0xff] %vm2126_vm8, %v2081_v42  ;;  %3057 = vmatprep.mubr.msk.f32.mxu1 %vm2159_vm9, %v2143_v47  ;;  %1809 = vrot.lane.b32.xlu0 %v1766_v1, %s3164_s2  ;;  %v2061_v42 = vld [vmem:[#allocation2 + $0x132] sm:$0xff] }
 0x348   :  { %1712 = vrot.lane.b32.xlu1 %v1379_v32, %s3160_s12 }
 0x349   :  { %v1507_v50 = vpop.permute.xlu0 %1506 }
 0x34a   :  { %v1505_v54 = vpop.permute.xlu1 %1504  ;;  %1550 = vst.msk [vmem:[#allocation3 + $0x28] sm:$0xff] %vm1544_vm15, %v1507_v50 }
 0x34b   :  { %1549 = vst.msk [vmem:[#allocation3 + $0x20] sm:$0xff] %vm1544_vm15, %v1505_v54  ;;  %1522 = vrot.lane.b32.xlu0 %v4109_v52, %s3156_s18 }
 0x34c   :  { %2096 = vrot.lane.b32.xlu1 %v1475_v21, %s3162_s13 }
 0x34d   :  { %v1891_v57 = vpop.permute.xlu0 %1890 }
 0x34e   :  { %v1889_v58 = vpop.permute.xlu1 %1888  ;;  %v2144_v46 = vld [vmem:[#allocation3 + $0x8] sm:$0xff]  ;;  %1936 = vst.msk [vmem:[#allocation3 + $0x18] sm:$0xff] %vm1932_vm6, %v1891_v57 }
 0x34f   :  { %1935 = vst.msk [vmem:[#allocation3 + $0x10] sm:$0xff] %vm1932_vm6, %v1889_v58  ;;  %3058 = vmatmul.mubr.msk.f32.vlgmr.msra.gmra.mrb[0].mxu1 %vm2159_vm9, %v2144_v46  ;;  %1906 = vrot.lane.b32.xlu0 %v3941_v18, %s3161_s0 }
 0x350   :  { %1520 = vrot.lane.b32.xlu1 %v1766_v1, %s3156_s18 }
 0x351   :  { %v1604_v60 = vpop.permute.xlu0 %1603 }
 0x352   :  { %v1602_v38 = vpop.permute.xlu1 %1601  ;;  %1647 = vst.msk [vmem:[#allocation3 + $0x28] sm:$0xff] %vm1641_vm1, %v1604_v60 }
 0x353   :  { %1646 = vst.msk [vmem:[#allocation3 + $0x20] sm:$0xff] %vm1641_vm1, %v1602_v38  ;;  %1619 = vrot.lane.b32.xlu0 %v3947_v0, %s3158_s20 }
 0x354   :  { %1904 = vrot.lane.b32.xlu1 %v3937_v17, %s3161_s0 }
 0x355   :  { %v1988_v31 = vpop.permute.xlu0 %1987 }
 0x356   :  { %v1986_v11 = vpop.permute.xlu1 %1985  ;;  %2033 = vst.msk [vmem:[#allocation3 + $0x18] sm:$0xff] %vm2029_vm7, %v1988_v31 }
 0x357   :  { %2032 = vst.msk [vmem:[#allocation3 + $0x10] sm:$0xff] %vm2029_vm7, %v1986_v11  ;;  %2003 = vrot.lane.b32.xlu0 %v1380_v36, %s3163_s15 }
 0x358   :  { %1617 = vrot.lane.b32.xlu1 %v3941_v18, %s3158_s20  ;;  %v2498_v18 = vld [vmem:[%s4664_s7] sm:$0xf] }
 0x359   :  { %v1412_v12 = vpop.permute.xlu0 %1411  ;;  %3081 = vmatprep.subr.msk.mxu0 %vm1000_vm4, %v2498_v18  ;;  %3131 = vmatprep.subr.msk.mxu1 %vm1000_vm4, %v2498_v18 }
 0x35a   :  { %v1699_v13 = vpop.permute.xlu1 %1698  ;;  %1454 = vst.msk [vmem:[#allocation3 + $0x30] sm:$0xff] %vm1447_vm14, %v1412_v12  ;;  %3082 = vmatpush3.msk.msra.mxu0 %vm1000_vm4, %v2498_v18  ;;  %3132 = vmatpush3.msk.msra.mxu1 %vm1000_vm4, %v2498_v18 }
 0x35b   :  { %1743 = vst.msk [vmem:[#allocation3 + $0x20] sm:$0xff] %vm1738_vm2, %v1699_v13  ;;  %1427 = vrot.lane.b32.xlu0 %v4133_v14, %s3154_s14  ;;  %3084 = vmatmul.mubr.msk.f32.vlgmr.msra.gmra.mrb[16].mxu0 %vm104_vm3, %v3264_v2 }
 0x35c   :  { %2001 = vrot.lane.b32.xlu1 %v1379_v32, %s3163_s15  ;;  %3086 = vmatprep.mubr.msk.f32.mxu0 %vm104_vm3, %v3269_v3 }
 0x35d   :  { %v1796_v17 = vpop.permute.xlu0 %1795 }
 0x35e   :  { %v2083_v15 = vpop.permute.xlu1 %2082  ;;  %1840 = vst.msk [vmem:[#allocation3 + $0x20] sm:$0xff] %vm1835_vm5, %v1796_v17 }
 0x35f   :  { %2129 = vst.msk [vmem:[#allocation3 + $0x10] sm:$0xff] %vm2126_vm8, %v2083_v15  ;;  %1811 = vrot.lane.b32.xlu0 %v4109_v52, %s3164_s2  ;;  %3087 = vmatmul.mubr.msk.f32.gmra.mrb[18].mxu0 %vm104_vm3, %v3288_v4 }
 0x360   :  { %1714 = vrot.lane.b32.xlu1 %v1380_v36, %s3160_s12  ;;  %3089 = vmatprep.mubr.msk.f32.mxu0 %vm104_vm3, %v3293_v5 }
 0x361   :  { %v1414_v16 = vpop.permute.xlu0 %1413 }
 0x362   :  { %v1701_v40 = vpop.permute.xlu1 %1700  ;;  %1455 = vst.msk [vmem:[#allocation3 + $0x38] sm:$0xff] %vm1447_vm14, %v1414_v16 }
 0x363   :  { %1744 = vst.msk [vmem:[#allocation3 + $0x28] sm:$0xff] %vm1738_vm2, %v1701_v40  ;;  %1429 = vrot.lane.b32.xlu0 %v1382_v51, %s3154_s14  ;;  %3090 = vmatmul.mubr.msk.f32.gmra.mrb[20].mxu0 %vm104_vm3, %v3298_v6 }
 0x364   :  { %2098 = vrot.lane.b32.xlu1 %v1766_v1, %s3162_s13  ;;  %3092 = vmatprep.mubr.msk.f32.mxu0 %vm104_vm3, %v3309_v7 }
 0x365   :  { %v1798_v39 = vpop.permute.xlu0 %1797 }
 0x366   :  { %v2085_v63 = vpop.permute.xlu1 %2084  ;;  %v2145_v19 = vld [vmem:[#allocation3 + $0x10] sm:$0xff]  ;;  %1841 = vst.msk [vmem:[#allocation3 + $0x28] sm:$0xff] %vm1835_vm5, %v1798_v39 }
 0x367   :  { %2130 = vst.msk [vmem:[#allocation3 + $0x18] sm:$0xff] %vm2126_vm8, %v2085_v63  ;;  %3060 = vmatprep.mubr.msk.f32.mxu1 %vm2159_vm9, %v2145_v19  ;;  %1813 = vrot.lane.b32.xlu0 %v1768_v23, %s3164_s2 }
 0x368   :  { %1716 = vrot.lane.b32.xlu1 %v4133_v14, %s3160_s12  ;;  %3093 = vmatmul.mubr.msk.f32.gmra.mrb[22].mxu0 %vm104_vm3, %v3314_v8 }
 0x369   :  { %v1511_v2 = vpop.permute.xlu0 %1510  ;;  %3095 = vmatprep.mubr.msk.f32.mxu0 %vm104_vm3, %v3319_v9 }
 0x36a   :  { %v1509_v3 = vpop.permute.xlu1 %1508  ;;  %1552 = vst.msk [vmem:[#allocation3 + $0x38] sm:$0xff] %vm1544_vm15, %v1511_v2 }
 0x36b   :  { %1551 = vst.msk [vmem:[#allocation3 + $0x30] sm:$0xff] %vm1544_vm15, %v1509_v3  ;;  %1526 = vrot.lane.b32.xlu0 %v1479_v24, %s3156_s18 }
 0x36c   :  { %2100 = vrot.lane.b32.xlu1 %v4109_v52, %s3162_s13  ;;  %3096 = vmatmul.mubr.msk.f32.gmra.mrb[24].mxu0 %vm104_vm3, %v3330_v10  ;;  %v1673_v10 = vld [vmem:[#allocation2 + $0x121] sm:$0xff] }
 0x36d   :  { %v1895_v4 = vpop.permute.xlu0 %1894 }
 0x36e   :  { %v1893_v5 = vpop.permute.xlu1 %1892  ;;  %v2146_v21 = vld [vmem:[#allocation3 + $0x18] sm:$0xff]  ;;  %1938 = vst.msk [vmem:[#allocation3 + $0x28] sm:$0xff] %vm1932_vm6, %v1895_v4 }
 0x36f   :  { %1937 = vst.msk [vmem:[#allocation3 + $0x20] sm:$0xff] %vm1932_vm6, %v1893_v5  ;;  %3061 = vmatmul.mubr.msk.f32.gmra.mrb[2].mxu1 %vm2159_vm9, %v2146_v21  ;;  %1910 = vrot.lane.b32.xlu0 %v3951_v35, %s3161_s0 }
 0x370   :  { %1524 = vrot.lane.b32.xlu1 %v1768_v23, %s3156_s18 }
 0x371   :  { %v1608_v6 = vpop.permute.xlu0 %1607 }
 0x372   :  { %v1606_v7 = vpop.permute.xlu1 %1605  ;;  %1649 = vst.msk [vmem:[#allocation3 + $0x38] sm:$0xff] %vm1641_vm1, %v1608_v6 }
 0x373   :  { %1648 = vst.msk [vmem:[#allocation3 + $0x30] sm:$0xff] %vm1641_vm1, %v1606_v7  ;;  %1623 = vrot.lane.b32.xlu0 %v1576_v27, %s3158_s20 }
 0x374   :  { %1908 = vrot.lane.b32.xlu1 %v3947_v0, %s3161_s0 }
 0x375   :  { %v1992_v8 = vpop.permute.xlu0 %1991 }
 0x376   :  { %v1990_v20 = vpop.permute.xlu1 %1989  ;;  %2035 = vst.msk [vmem:[#allocation3 + $0x28] sm:$0xff] %vm2029_vm7, %v1992_v8 }
 0x377   :  { %2034 = vst.msk [vmem:[#allocation3 + $0x20] sm:$0xff] %vm2029_vm7, %v1990_v20  ;;  %2007 = vrot.lane.b32.xlu0 %v1382_v51, %s3163_s15 }
 0x378   :  { %1621 = vrot.lane.b32.xlu1 %v3951_v35, %s3158_s20 }
 0x379   :  { %v1800_v9 = vpop.permute.xlu0 %1799 }
 0x37a   :  { %v1703_v28 = vpop.permute.xlu1 %1702 }
 0x37b   :  { %1745 = vst.msk [vmem:[#allocation3 + $0x30] sm:$0xff] %vm1738_vm2, %v1703_v28  ;;  %1720 = vrot.lane.b32.xlu0 %v1673_v10, %s3160_s12 }
 0x37c   :  { %1842 = vst.msk [vmem:[#allocation3 + $0x30] sm:$0xff] %vm1835_vm5, %v1800_v9  ;;  %2005 = vrot.lane.b32.xlu1 %v4133_v14, %s3163_s15 }
 0x37d   :  { %v1418_v0 = vpop.permute.xlu0 %1417 }
 0x37e   :  { %v2087_v25 = vpop.permute.xlu1 %2086  ;;  %1457 = vst.msk [vmem:[#allocation3 + $0x48] sm:$0xff] %vm1447_vm14, %v1418_v0 }
 0x37f   :  { %2131 = vst.msk [vmem:[#allocation3 + $0x20] sm:$0xff] %vm2126_vm8, %v2087_v25  ;;  %2104 = vrot.lane.b32.xlu0 %v1479_v24, %s3162_s13 }
 0x380   :  { %1718 = vrot.lane.b32.xlu1 %v1382_v51, %s3160_s12 }
 0x381   :  { %v1802_v35 = vpop.permute.xlu0 %1801 }
 0x382   :  { %v1705_v29 = vpop.permute.xlu1 %1704 }
 0x383   :  { %1746 = vst.msk [vmem:[#allocation3 + $0x38] sm:$0xff] %vm1738_vm2, %v1705_v29  ;;  %1912 = vrot.lane.b32.xlu0 %v1576_v27, %s3161_s0 }
 0x384   :  { %1843 = vst.msk [vmem:[#allocation3 + $0x38] sm:$0xff] %vm1835_vm5, %v1802_v35  ;;  %2102 = vrot.lane.b32.xlu1 %v1768_v23, %s3162_s13 }
 0x385   :  { %1940 = vst.msk [vmem:[#allocation3 + $0x38] sm:$0xff] %vm1932_vm6, %v4036_v56  ;;  %v1515_v48 = vpop.permute.xlu0 %1514 }
 0x386   :  { %2037 = vst.msk [vmem:[#allocation3 + $0x38] sm:$0xff] %vm2029_vm7, %v4044_v59  ;;  %v2089_v61 = vpop.permute.xlu1 %2088  ;;  %v2147_v62 = vld [vmem:[#allocation3 + $0x20] sm:$0xff] }
 0x387   :  { %2134 = vst.msk [vmem:[#allocation3 + $0x38] sm:$0xff] %vm2126_vm8, %v4042_v22  ;;  %2132 = vst.msk [vmem:[#allocation3 + $0x28] sm:$0xff] %vm2126_vm8, %v2089_v61  ;;  %3063 = vmatprep.mubr.msk.f32.mxu1 %vm2159_vm9, %v2147_v62  ;;  %2009 = vrot.lane.b32.xlu0 %v1673_v10, %s3163_s15  ;;  %v2060_v59 = vld [vmem:[#allocation2 + $0x122] sm:$0xff]  ;;  %v1867_v22 = vld [vmem:[#allocation2 + $0x130] sm:$0xff] }
 0x388   :  { %1554 = vst.msk [vmem:[#allocation3 + $0x48] sm:$0xff] %vm1544_vm15, %v1515_v48  ;;  %1815 = vrot.lane.b32.xlu1 %v1479_v24, %s3164_s2 }
 0x389   :  { %v1612_v56 = vpop.permute.xlu0 %1611 }
 0x38a   :  { %v1897_v32 = vpop.permute.xlu1 %1896  ;;  %1651 = vst.msk [vmem:[#allocation3 + $0x48] sm:$0xff] %vm1641_vm1, %v1612_v56 }
 0x38b   :  { %1939 = vst.msk [vmem:[#allocation3 + $0x30] sm:$0xff] %vm1932_vm6, %v1897_v32  ;;  %2106 = vrot.lane.b32.xlu0 %v2060_v59, %s3162_s13 }
 0x38c   :  { %1817 = vrot.lane.b32.xlu1 %v2060_v59, %s3164_s2 }
 0x38d   :  { %v1420_v43 = vpop.permute.xlu0 %1419 }
 0x38e   :  { %v1610_v33 = vpop.permute.xlu1 %1609  ;;  %v2148_v55 = vld [vmem:[#allocation3 + $0x28] sm:$0xff]  ;;  %1458 = vst.msk [vmem:[#allocation3 + $0x50] sm:$0xff] %vm1447_vm14, %v1420_v43  ;;  %v2150_v38 = vld [vmem:[#allocation3 + $0x38] sm:$0xff] }
 0x38f   :  { %1650 = vst.msk [vmem:[#allocation3 + $0x40] sm:$0xff] %vm1641_vm1, %v1610_v33  ;;  %3064 = vmatmul.mubr.msk.f32.gmra.mrb[4].mxu1 %vm2159_vm9, %v2148_v55 }
 0x390   :  { %1914 = vrot.lane.b32.xlu1 %v1867_v22, %s3161_s0 }
 0x391   :  { %v1804_v36 = vpop.permute.xlu0 %1803 }
 0x392   :  { %v1994_v37 = vpop.permute.xlu1 %1993 }
 0x393   :  { %2036 = vst.msk [vmem:[#allocation3 + $0x30] sm:$0xff] %vm2029_vm7, %v1994_v37 }
 0x394   :  { %2011 = vrot.lane.b32.xlu1 %v1964_v34, %s3163_s15 }
 0x395   :  { %v1422_v47 = vpop.permute.xlu0 %1421 }
 0x396   :  { %v1707_v1 = vpop.permute.xlu1 %1706  ;;  %1459 = vst.msk [vmem:[#allocation3 + $0x58] sm:$0xff] %vm1447_vm14, %v1422_v47 }
 0x397   :  { %1747 = vst.msk [vmem:[#allocation3 + $0x40] sm:$0xff] %vm1738_vm2, %v1707_v1 }
 0x398   :  { %1844 = vst.msk [vmem:[#allocation3 + $0x40] sm:$0xff] %vm1835_vm5, %v1804_v36  ;;  %2108 = vrot.lane.b32.xlu1 %v2061_v42, %s3162_s13 }
 0x399   :  { %v1806_v50 = vpop.permute.xlu0 %1805 }
 0x39a   :  { %v2091_v54 = vpop.permute.xlu1 %2090 }
 0x39b   :  { %2133 = vst.msk [vmem:[#allocation3 + $0x30] sm:$0xff] %vm2126_vm8, %v2091_v54 }
 0x39d   :  { %v1519_v52 = vpop.permute.xlu0 %1518 }
 0x39e   :  { %v1709_v57 = vpop.permute.xlu1 %1708  ;;  %1556 = vst.msk [vmem:[#allocation3 + $0x58] sm:$0xff] %vm1544_vm15, %v1519_v52 }
 0x39f   :  { %1748 = vst.msk [vmem:[#allocation3 + $0x48] sm:$0xff] %vm1738_vm2, %v1709_v57 }
 0x3a0   :  { %1845 = vst.msk [vmem:[#allocation3 + $0x48] sm:$0xff] %vm1835_vm5, %v1806_v50 }
 0x3a1   :  { %v1903_v58 = vpop.permute.xlu0 %1902 }
 0x3a2   :  { %v1517_v46 = vpop.permute.xlu1 %1516  ;;  %v2149_v60 = vld [vmem:[#allocation3 + $0x30] sm:$0xff]  ;;  %1942 = vst.msk [vmem:[#allocation3 + $0x48] sm:$0xff] %vm1932_vm6, %v1903_v58 }
 0x3a3   :  { %1555 = vst.msk [vmem:[#allocation3 + $0x50] sm:$0xff] %vm1544_vm15, %v1517_v46  ;;  %3066 = vmatprep.mubr.msk.f32.mxu1 %vm2159_vm9, %v2149_v60 }
 0x3a4   :  { %3067 = vmatmul.mubr.msk.f32.gmra.mrb[6].mxu1 %vm2159_vm9, %v2150_v38 }
 0x3a5   :  { %v1616_v31 = vpop.permute.xlu0 %1615 }
 0x3a6   :  { %v1901_v11 = vpop.permute.xlu1 %1900  ;;  %1653 = vst.msk [vmem:[#allocation3 + $0x58] sm:$0xff] %vm1641_vm1, %v1616_v31 }
 0x3a7   :  { %1941 = vst.msk [vmem:[#allocation3 + $0x40] sm:$0xff] %vm1932_vm6, %v1901_v11 }
 0x3a9   :  { %v2000_v12 = vpop.permute.xlu0 %1999 }
 0x3aa   :  { %v1614_v13 = vpop.permute.xlu1 %1613  ;;  %2039 = vst.msk [vmem:[#allocation3 + $0x48] sm:$0xff] %vm2029_vm7, %v2000_v12 }
 0x3ab   :  { %1652 = vst.msk [vmem:[#allocation3 + $0x50] sm:$0xff] %vm1641_vm1, %v1614_v13 }
 0x3ad   :  { %v1424_v14 = vpop.permute.xlu0 %1423 }
 0x3ae   :  { %v1998_v17 = vpop.permute.xlu1 %1997  ;;  %1460 = vst.msk [vmem:[#allocation3 + $0x60] sm:$0xff] %vm1447_vm14, %v1424_v14 }
 0x3af   :  { %2038 = vst.msk [vmem:[#allocation3 + $0x40] sm:$0xff] %vm2029_vm7, %v1998_v17 }
 0x3b1   :  { %v1808_v15 = vpop.permute.xlu0 %1807 }
 0x3b2   :  { %v1711_v18 = vpop.permute.xlu1 %1710 }
 0x3b3   :  { %1749 = vst.msk [vmem:[#allocation3 + $0x50] sm:$0xff] %vm1738_vm2, %v1711_v18 }
 0x3b4   :  { %1846 = vst.msk [vmem:[#allocation3 + $0x50] sm:$0xff] %vm1835_vm5, %v1808_v15 }
 0x3b5   :  { %v1426_v16 = vpop.permute.xlu0 %1425 }
 0x3b6   :  { %v2095_v40 = vpop.permute.xlu1 %2094  ;;  %1461 = vst.msk [vmem:[#allocation3 + $0x68] sm:$0xff] %vm1447_vm14, %v1426_v16 }
 0x3b7   :  { %2135 = vst.msk [vmem:[#allocation3 + $0x40] sm:$0xff] %vm2126_vm8, %v2095_v40 }
 0x3b9   :  { %v1810_v51 = vpop.permute.xlu0 %1809 }
 0x3ba   :  { %v1713_v39 = vpop.permute.xlu1 %1712 }
 0x3bb   :  { %1750 = vst.msk [vmem:[#allocation3 + $0x58] sm:$0xff] %vm1738_vm2, %v1713_v39 }
 0x3bc   :  { %1847 = vst.msk [vmem:[#allocation3 + $0x58] sm:$0xff] %vm1835_vm5, %v1810_v51 }
 0x3bd   :  { %v1523_v63 = vpop.permute.xlu0 %1522 }
 0x3be   :  { %v2097_v19 = vpop.permute.xlu1 %2096  ;;  %v2151_v23 = vld [vmem:[#allocation3 + $0x40] sm:$0xff]  ;;  %1558 = vst.msk [vmem:[#allocation3 + $0x68] sm:$0xff] %vm1544_vm15, %v1523_v63 }
 0x3bf   :  { %2136 = vst.msk [vmem:[#allocation3 + $0x48] sm:$0xff] %vm2126_vm8, %v2097_v19  ;;  %3069 = vmatprep.mubr.msk.f32.mxu1 %vm2159_vm9, %v2151_v23 }
 0x3c1   :  { %v1907_v2 = vpop.permute.xlu0 %1906 }
 0x3c2   :  { %v1521_v3 = vpop.permute.xlu1 %1520  ;;  %1944 = vst.msk [vmem:[#allocation3 + $0x58] sm:$0xff] %vm1932_vm6, %v1907_v2 }
 0x3c3   :  { %1557 = vst.msk [vmem:[#allocation3 + $0x60] sm:$0xff] %vm1544_vm15, %v1521_v3 }
 0x3c5   :  { %v1620_v24 = vpop.permute.xlu0 %1619 }
 0x3c6   :  { %v1905_v4 = vpop.permute.xlu1 %1904  ;;  %v2152_v5 = vld [vmem:[#allocation3 + $0x48] sm:$0xff]  ;;  %1655 = vst.msk [vmem:[#allocation3 + $0x68] sm:$0xff] %vm1641_vm1, %v1620_v24 }
 0x3c7   :  { %1943 = vst.msk [vmem:[#allocation3 + $0x50] sm:$0xff] %vm1932_vm6, %v1905_v4  ;;  %3070 = vmatmul.mubr.msk.f32.gmra.mrb[8].mxu1 %vm2159_vm9, %v2152_v5 }
 0x3c9   :  { %v2004_v21 = vpop.permute.xlu0 %2003 }
 0x3ca   :  { %v1618_v6 = vpop.permute.xlu1 %1617  ;;  %2041 = vst.msk [vmem:[#allocation3 + $0x58] sm:$0xff] %vm2029_vm7, %v2004_v21 }
 0x3cb   :  { %1654 = vst.msk [vmem:[#allocation3 + $0x60] sm:$0xff] %vm1641_vm1, %v1618_v6 }
 0x3cd   :  { %v1428_v7 = vpop.permute.xlu0 %1427 }
 0x3ce   :  { %v2002_v27 = vpop.permute.xlu1 %2001  ;;  %1462 = vst.msk [vmem:[#allocation3 + $0x70] sm:$0xff] %vm1447_vm14, %v1428_v7 }
 0x3cf   :  { %2040 = vst.msk [vmem:[#allocation3 + $0x50] sm:$0xff] %vm2029_vm7, %v2002_v27 }
 0x3d1   :  { %v1812_v8 = vpop.permute.xlu0 %1811 }
 0x3d2   :  { %v1715_v20 = vpop.permute.xlu1 %1714 }
 0x3d3   :  { %1751 = vst.msk [vmem:[#allocation3 + $0x60] sm:$0xff] %vm1738_vm2, %v1715_v20 }
 0x3d4   :  { %1848 = vst.msk [vmem:[#allocation3 + $0x60] sm:$0xff] %vm1835_vm5, %v1812_v8 }
 0x3d5   :  { %v1430_v9 = vpop.permute.xlu0 %1429 }
 0x3d6   :  { %v2099_v28 = vpop.permute.xlu1 %2098  ;;  %1463 = vst.msk [vmem:[#allocation3 + $0x78] sm:$0xff] %vm1447_vm14, %v1430_v9 }
 0x3d7   :  { %2137 = vst.msk [vmem:[#allocation3 + $0x50] sm:$0xff] %vm2126_vm8, %v2099_v28 }
 0x3d9   :  { %v1814_v10 = vpop.permute.xlu0 %1813 }
 0x3da   :  { %v1717_v0 = vpop.permute.xlu1 %1716 }
 0x3db   :  { %1752 = vst.msk [vmem:[#allocation3 + $0x68] sm:$0xff] %vm1738_vm2, %v1717_v0 }
 0x3dc   :  { %1849 = vst.msk [vmem:[#allocation3 + $0x68] sm:$0xff] %vm1835_vm5, %v1814_v10 }
 0x3dd   :  { %v1527_v25 = vpop.permute.xlu0 %1526 }
 0x3de   :  { %v2101_v35 = vpop.permute.xlu1 %2100  ;;  %v2153_v29 = vld [vmem:[#allocation3 + $0x50] sm:$0xff]  ;;  %1560 = vst.msk [vmem:[#allocation3 + $0x78] sm:$0xff] %vm1544_vm15, %v1527_v25 }
 0x3df   :  { %2138 = vst.msk [vmem:[#allocation3 + $0x58] sm:$0xff] %vm2126_vm8, %v2101_v35  ;;  %3072 = vmatprep.mubr.msk.f32.mxu1 %vm2159_vm9, %v2153_v29 }
 0x3e1   :  { %v1911_v48 = vpop.permute.xlu0 %1910 }
 0x3e2   :  { %v1525_v61 = vpop.permute.xlu1 %1524  ;;  %1946 = vst.msk [vmem:[#allocation3 + $0x68] sm:$0xff] %vm1932_vm6, %v1911_v48 }
 0x3e3   :  { %1559 = vst.msk [vmem:[#allocation3 + $0x70] sm:$0xff] %vm1544_vm15, %v1525_v61 }
 0x3e5   :  { %v1624_v62 = vpop.permute.xlu0 %1623 }
 0x3e6   :  { %v1909_v56 = vpop.permute.xlu1 %1908  ;;  %v2154_v32 = vld [vmem:[#allocation3 + $0x58] sm:$0xff]  ;;  %1657 = vst.msk [vmem:[#allocation3 + $0x78] sm:$0xff] %vm1641_vm1, %v1624_v62 }
 0x3e7   :  { %1945 = vst.msk [vmem:[#allocation3 + $0x60] sm:$0xff] %vm1932_vm6, %v1909_v56  ;;  %3073 = vmatmul.mubr.msk.f32.gmra.mrb[10].mxu1 %vm2159_vm9, %v2154_v32 }
 0x3e9   :  { %v2008_v59 = vpop.permute.xlu0 %2007 }
 0x3ea   :  { %v1622_v22 = vpop.permute.xlu1 %1621  ;;  %2043 = vst.msk [vmem:[#allocation3 + $0x68] sm:$0xff] %vm2029_vm7, %v2008_v59 }
 0x3eb   :  { %1656 = vst.msk [vmem:[#allocation3 + $0x70] sm:$0xff] %vm1641_vm1, %v1622_v22 }
 0x3ed   :  { %v1721_v43 = vpop.permute.xlu0 %1720 }
 0x3ee   :  { %v2006_v33 = vpop.permute.xlu1 %2005  ;;  %1754 = vst.msk [vmem:[#allocation3 + $0x78] sm:$0xff] %vm1738_vm2, %v1721_v43 }
 0x3ef   :  { %2042 = vst.msk [vmem:[#allocation3 + $0x60] sm:$0xff] %vm2029_vm7, %v2006_v33 }
 0x3f1   :  { %v2105_v55 = vpop.permute.xlu0 %2104 }
 0x3f2   :  { %v1719_v34 = vpop.permute.xlu1 %1718  ;;  %2140 = vst.msk [vmem:[#allocation3 + $0x68] sm:$0xff] %vm2126_vm8, %v2105_v55 }
 0x3f3   :  { %1753 = vst.msk [vmem:[#allocation3 + $0x70] sm:$0xff] %vm1738_vm2, %v1719_v34 }
 0x3f5   :  { %v1913_v36 = vpop.permute.xlu0 %1912 }
 0x3f6   :  { %v2103_v37 = vpop.permute.xlu1 %2102 }
 0x3f7   :  { %2139 = vst.msk [vmem:[#allocation3 + $0x60] sm:$0xff] %vm2126_vm8, %v2103_v37 }
 0x3f9   :  { %v2010_v42 = vpop.permute.xlu0 %2009  ;;  %v2156_v52 = vld [vmem:[#allocation3 + $0x68] sm:$0xff] }
 0x3fa   :  { %v1816_v47 = vpop.permute.xlu1 %1815 }
 0x3fb   :  { %1850 = vst.msk [vmem:[#allocation3 + $0x70] sm:$0xff] %vm1835_vm5, %v1816_v47 }
 0x3fc   :  { %1947 = vst.msk [vmem:[#allocation3 + $0x70] sm:$0xff] %vm1932_vm6, %v1913_v36 }
 0x3fd   :  { %2044 = vst.msk [vmem:[#allocation3 + $0x70] sm:$0xff] %vm2029_vm7, %v2010_v42  ;;  %v2107_v1 = vpop.permute.xlu0 %2106 }
 0x3fe   :  { %v1818_v50 = vpop.permute.xlu1 %1817  ;;  %v2155_v54 = vld [vmem:[#allocation3 + $0x60] sm:$0xff]  ;;  %2141 = vst.msk [vmem:[#allocation3 + $0x70] sm:$0xff] %vm2126_vm8, %v2107_v1 }
 0x3ff   :  { %1851 = vst.msk [vmem:[#allocation3 + $0x78] sm:$0xff] %vm1835_vm5, %v1818_v50  ;;  %3075 = vmatprep.mubr.msk.f32.mxu1 %vm2159_vm9, %v2155_v54 }
 0x400   :  { %3076 = vmatmul.mubr.msk.f32.gmra.mrb[12].mxu1 %vm2159_vm9, %v2156_v52 }
 0x402   :  { %v1915_v57 = vpop.permute.xlu1 %1914 }
 0x403   :  { %1948 = vst.msk [vmem:[#allocation3 + $0x78] sm:$0xff] %vm1932_vm6, %v1915_v57 }
 0x405   :  { %v2157_v46 = vld [vmem:[#allocation3 + $0x70] sm:$0xff] }
 0x406   :  { %v2012_v58 = vpop.permute.xlu1 %2011  ;;  %3078 = vmatprep.mubr.msk.f32.mxu1 %vm2159_vm9, %v2157_v46 }
 0x407   :  { %2045 = vst.msk [vmem:[#allocation3 + $0x78] sm:$0xff] %vm2029_vm7, %v2012_v58 }
 0x40a   :  { %v2109_v60 = vpop.permute.xlu1 %2108 }
 0x40b   :  { %2142 = vst.msk [vmem:[#allocation3 + $0x78] sm:$0xff] %vm2126_vm8, %v2109_v60 }
 0x412   :  { %v2158_v38 = vld [vmem:[#allocation3 + $0x78] sm:$0xff] }
 0x413   :  { %3079 = vmatmul.mubr.msk.f32.gmra.mrb[14].mxu1 %vm2159_vm9, %v2158_v38 }
 0x414   :  { %3098 = vmatprep.mubr.msk.f32.mxu1 %vm104_vm3, %v3369_v26 }
 0x417   :  { %3099 = vmatmul.mubr.msk.f32.vlgmr.msra.gmra.mrb[16].mxu1 %vm104_vm3, %v3386_v30 }
 0x418   :  { %3101 = vmatprep.mubr.msk.f32.mxu1 %vm104_vm3, %v3427_v41 }
 0x41b   :  { %3102 = vmatmul.mubr.msk.f32.gmra.mrb[18].mxu1 %vm104_vm3, %v3443_v45 }
 0x41c   :  { %3104 = vmatprep.mubr.msk.f32.mxu1 %vm104_vm3, %v3469_v49 }
 0x41f   :  { %3105 = vmatmul.mubr.msk.f32.gmra.mrb[20].mxu1 %vm104_vm3, %v3485_v53 }
 0x422   :  { %v4314_v31 = vpop.f32.mrb[0].mxu1 }
 0x423   :  { %v2356_v26 = vsel %vm35_vm0, %v4314_v31, 0.0  ;;  %v2393_v30 = vmul.f32 %v4314_v31, %v4314_v31  ;;  %v4320_v11 = vpop.f32.mrb[1].mxu1 }
 0x424   :  { %v2355_v41 = vsel %vm35_vm0, %v4320_v11, 0.0  ;;  %v2392_v45 = vmul.f32 %v4320_v11, %v4320_v11 }
 0x425   :  { %v2409_v49 = vsel %vm35_vm0, %v2393_v30, 0.0  ;;  %v2357_v12 = vadd.f32 %v2356_v26, %v2355_v41 }
 0x426   :  { %v2408_v53 = vsel %vm35_vm0, %v2392_v45, 0.0 }
 0x427   :  { %v2410_v13 = vadd.f32 %v2409_v49, %v2408_v53 }
 0x42e   :  { %v4342_v3 = vpop.f32.mrb[16].mxu0 }
 0x42f   :  { %v2698_v24 = vsel %vm35_vm0, %v4342_v3, 0.0  ;;  %v2735_v4 = vmul.f32 %v4342_v3, %v4342_v3  ;;  %v4348_v5 = vpop.f32.mrb[17].mxu0 }
 0x430   :  { %v2697_v21 = vsel %vm35_vm0, %v4348_v5, 0.0  ;;  %v2734_v6 = vmul.f32 %v4348_v5, %v4348_v5 }
 0x431   :  { %v2751_v27 = vsel %vm35_vm0, %v2735_v4, 0.0  ;;  %v2699_v8 = vadd.f32 %v2698_v24, %v2697_v21 }
 0x432   :  { %v4354_v7 = vpop.f32.mrb[18].mxu0  ;;  %v2750_v28 = vsel %vm35_vm0, %v2734_v6, 0.0 }
 0x433   :  { %v2737_v20 = vmul.f32 %v4354_v7, %v4354_v7  ;;  %v4359_v9 = vpop.f32.mrb[19].mxu0  ;;  %v2702_v10 = vsel %vm35_vm0, %v4354_v7, 0.0  ;;  %v2752_v29 = vadd.f32 %v2751_v27, %v2750_v28 }
 0x434   :  { %v2700_v0 = vsel %vm35_vm0, %v4359_v9, 0.0  ;;  %v2736_v25 = vmul.f32 %v4359_v9, %v4359_v9 }
 0x435   :  { %v2755_v48 = vsel %vm35_vm0, %v2737_v20, 0.0  ;;  %v2701_v61 = vadd.f32 %v2700_v0, %v2699_v8 }
 0x436   :  { %v4368_v35 = vpop.f32.mrb[20].mxu0  ;;  %v2753_v56 = vsel %vm35_vm0, %v2736_v25, 0.0 }
 0x437   :  { %v4371_v62 = vpop.f32.mrb[21].mxu0  ;;  %v2739_v32 = vmul.f32 %v4368_v35, %v4368_v35  ;;  %v2754_v33 = vadd.f32 %v2753_v56, %v2752_v29  ;;  %v2703_v55 = vadd.f32 %v2702_v10, %v2701_v61  ;;  %v2706_v36 = vsel %vm35_vm0, %v4368_v35, 0.0 }
 0x438   :  { %v2704_v59 = vsel %vm35_vm0, %v4371_v62, 0.0  ;;  %v2738_v22 = vmul.f32 %v4371_v62, %v4371_v62 }
 0x439   :  { %v2705_v1 = vadd.f32 %v2704_v59, %v2703_v55  ;;  %v2756_v50 = vadd.f32 %v2755_v48, %v2754_v33  ;;  %v2759_v58 = vsel %vm35_vm0, %v2739_v32, 0.0 }
 0x43a   :  { %v2757_v37 = vsel %vm35_vm0, %v2738_v22, 0.0 }
 0x43b   :  { %v4380_v43 = vpop.f32.mrb[22].mxu0  ;;  %v2758_v38 = vadd.f32 %v2757_v37, %v2756_v50  ;;  %v2707_v30 = vadd.f32 %v2706_v36, %v2705_v1 }
 0x43c   :  { %v4382_v34 = vpop.f32.mrb[23].mxu0  ;;  %v2741_v54 = vmul.f32 %v4380_v43, %v4380_v43  ;;  %v2710_v26 = vsel %vm35_vm0, %v4380_v43, 0.0 }
 0x43d   :  { %v2740_v42 = vmul.f32 %v4382_v34, %v4382_v34  ;;  %v2708_v46 = vsel %vm35_vm0, %v4382_v34, 0.0 }
 0x43f   :  { %v4389_v47 = vpop.f32.mrb[24].mxu0  ;;  %v2761_v41 = vsel %vm35_vm0, %v2740_v42, 0.0 }
 0x440   :  { %v4393_v52 = vpop.f32.mrb[25].mxu0  ;;  %v2714_v6 = vsel %vm35_vm0, %v4389_v47, 0.0 }
 0x441   :  { %v2742_v53 = vmul.f32 %v4393_v52, %v4393_v52 }
 0x442   :  { %v4328_v14 = vpop.f32.mrb[2].mxu1 }
 0x443   :  { %v4330_v17 = vpop.f32.mrb[3].mxu1  ;;  %v2395_v15 = vmul.f32 %v4328_v14, %v4328_v14  ;;  %v2360_v51 = vsel %vm35_vm0, %v4328_v14, 0.0  ;;  %v2765_v27 = vsel %vm35_vm0, %v2742_v53, 0.0 }
 0x444   :  { %v2358_v18 = vsel %vm35_vm0, %v4330_v17, 0.0  ;;  %v2394_v16 = vmul.f32 %v4330_v17, %v4330_v17 }
 0x445   :  { %v2359_v40 = vadd.f32 %v2358_v18, %v2357_v12  ;;  %v2413_v23 = vsel %vm35_vm0, %v2395_v15, 0.0  ;;  %v2763_v15 = vsel %vm35_vm0, %v2741_v54, 0.0  ;;  %v2709_v18 = vadd.f32 %v2708_v46, %v2707_v30 }
 0x446   :  { %v2411_v39 = vsel %vm35_vm0, %v2394_v16, 0.0  ;;  %v2760_v16 = vadd.f32 %v2759_v58, %v2758_v38 }
 0x447   :  { %v2412_v63 = vadd.f32 %v2411_v39, %v2410_v13  ;;  %v2361_v19 = vadd.f32 %v2360_v51, %v2359_v40  ;;  %v2743_v39 = vmul.f32 %v4389_v47, %v4389_v47  ;;  %v2711_v21 = vadd.f32 %v2710_v26, %v2709_v18 }
 0x448   :  { %v2762_v4 = vadd.f32 %v2761_v41, %v2760_v16 }
 0x449   :  { %v2414_v2 = vadd.f32 %v2413_v23, %v2412_v63  ;;  %v2712_v63 = vsel %vm35_vm0, %v4393_v52, 0.0  ;;  %v2767_v10 = vsel %vm35_vm0, %v2743_v39, 0.0 }
 0x44a   :  { %v2713_v20 = vadd.f32 %v2712_v63, %v2711_v21  ;;  %v2764_v28 = vadd.f32 %v2763_v15, %v2762_v4 }
 0x44c   :  { %v4426_v0 = vadd.f32 %v2714_v6, %v2713_v20  ;;  %v2766_v25 = vadd.f32 %v2765_v27, %v2764_v28 }
 0x44e   :  { %v4428_v29 = vadd.f32 %v2767_v10, %v2766_v25 }
 0x462   :  { %v4395_v57 = vpop.f32.mrb[4].mxu1 }
 0x463   :  { %v4400_v60 = vpop.f32.mrb[5].mxu1  ;;  %v2397_v45 = vmul.f32 %v4395_v57, %v4395_v57  ;;  %v2364_v40 = vsel %vm35_vm0, %v4395_v57, 0.0 }
 0x464   :  { %v2362_v49 = vsel %vm35_vm0, %v4400_v60, 0.0  ;;  %v2396_v12 = vmul.f32 %v4400_v60, %v4400_v60 }
 0x465   :  { %v2363_v13 = vadd.f32 %v2362_v49, %v2361_v19  ;;  %v2417_v19 = vsel %vm35_vm0, %v2397_v45, 0.0 }
 0x466   :  { %v2415_v51 = vsel %vm35_vm0, %v2396_v12, 0.0 }
 0x467   :  { %v2416_v23 = vadd.f32 %v2415_v51, %v2414_v2  ;;  %v2365_v24 = vadd.f32 %v2364_v40, %v2363_v13 }
 0x469   :  { %v2418_v8 = vadd.f32 %v2417_v19, %v2416_v23 }
 0x477   :  { %v4430_v2 = vpop.f32.mrb[6].mxu1 }
 0x478   :  { %v4432_v48 = vpop.f32.mrb[7].mxu1  ;;  %v2399_v61 = vmul.f32 %v4430_v2, %v4430_v2  ;;  %v2368_v22 = vsel %vm35_vm0, %v4430_v2, 0.0 }
 0x479   :  { %v2366_v56 = vsel %vm35_vm0, %v4432_v48, 0.0  ;;  %v2398_v32 = vmul.f32 %v4432_v48, %v4432_v48 }
 0x47a   :  { %v2367_v59 = vadd.f32 %v2366_v56, %v2365_v24  ;;  %v2421_v37 = vsel %vm35_vm0, %v2399_v61, 0.0 }
 0x47b   :  { %v2419_v33 = vsel %vm35_vm0, %v2398_v32, 0.0 }
 0x47c   :  { %v2420_v55 = vadd.f32 %v2419_v33, %v2418_v8  ;;  %v2369_v36 = vadd.f32 %v2368_v22, %v2367_v59 }
 0x47e   :  { %v2422_v42 = vadd.f32 %v2421_v37, %v2420_v55 }
 0x49a   :  { %v4444_v1 = vpop.f32.mrb[8].mxu1 }
 0x49b   :  { %v4446_v50 = vpop.f32.mrb[9].mxu1  ;;  %v2401_v54 = vmul.f32 %v4444_v1, %v4444_v1  ;;  %v2372_v26 = vsel %vm35_vm0, %v4444_v1, 0.0 }
 0x49c   :  { %v2370_v58 = vsel %vm35_vm0, %v4446_v50, 0.0  ;;  %v2400_v46 = vmul.f32 %v4446_v50, %v4446_v50 }
 0x49d   :  { %v2371_v38 = vadd.f32 %v2370_v58, %v2369_v36  ;;  %v2425_v49 = vsel %vm35_vm0, %v2401_v54, 0.0 }
 0x49e   :  { %v2423_v30 = vsel %vm35_vm0, %v2400_v46, 0.0 }
 0x49f   :  { %v2424_v41 = vadd.f32 %v2423_v30, %v2422_v42  ;;  %v2373_v45 = vadd.f32 %v2372_v26, %v2371_v38 }
 0x4a1   :  { %v2426_v12 = vadd.f32 %v2425_v49, %v2424_v41 }
 0x4ba   :  { %v4458_v53 = vpop.f32.mrb[10].mxu1 }
 0x4bb   :  { %v4460_v13 = vpop.f32.mrb[11].mxu1  ;;  %v2403_v15 = vmul.f32 %v4458_v53, %v4458_v53  ;;  %v2376_v51 = vsel %vm35_vm0, %v4458_v53, 0.0 }
 0x4bc   :  { %v2374_v18 = vsel %vm35_vm0, %v4460_v13, 0.0  ;;  %v2402_v16 = vmul.f32 %v4460_v13, %v4460_v13 }
 0x4bd   :  { %v2375_v40 = vadd.f32 %v2374_v18, %v2373_v45  ;;  %v2429_v24 = vsel %vm35_vm0, %v2403_v15, 0.0 }
 0x4be   :  { %v2427_v39 = vsel %vm35_vm0, %v2402_v16, 0.0 }
 0x4bf   :  { %v2428_v63 = vadd.f32 %v2427_v39, %v2426_v12  ;;  %v2377_v23 = vadd.f32 %v2376_v51, %v2375_v40 }
 0x4c1   :  { %v2430_v4 = vadd.f32 %v2429_v24, %v2428_v63 }
 0x4d3   :  { %v4472_v21 = vpop.f32.mrb[12].mxu1 }
 0x4d4   :  { %v4474_v19 = vpop.f32.mrb[13].mxu1  ;;  %v2405_v6 = vmul.f32 %v4472_v21, %v4472_v21  ;;  %v2380_v28 = vsel %vm35_vm0, %v4472_v21, 0.0 }
 0x4d5   :  { %v2378_v27 = vsel %vm35_vm0, %v4474_v19, 0.0  ;;  %v2404_v8 = vmul.f32 %v4474_v19, %v4474_v19 }
 0x4d6   :  { %v2379_v20 = vadd.f32 %v2378_v27, %v2377_v23  ;;  %v2433_v56 = vsel %vm35_vm0, %v2405_v6, 0.0 }
 0x4d7   :  { %v2431_v10 = vsel %vm35_vm0, %v2404_v8, 0.0 }
 0x4d8   :  { %v2432_v25 = vadd.f32 %v2431_v10, %v2430_v4  ;;  %v2381_v61 = vadd.f32 %v2380_v28, %v2379_v20 }
 0x4da   :  { %v2434_v32 = vadd.f32 %v2433_v56, %v2432_v25 }
 0x4e6   :  { %v4486_v59 = vpop.f32.mrb[14].mxu1 }
 0x4e7   :  { %v4488_v22 = vpop.f32.mrb[15].mxu1  ;;  %v2407_v33 = vmul.f32 %v4486_v59, %v4486_v59  ;;  %v2384_v42 = vsel %vm35_vm0, %v4486_v59, 0.0 }
 0x4e8   :  { %v2382_v55 = vsel %vm35_vm0, %v4488_v22, 0.0  ;;  %v2406_v36 = vmul.f32 %v4488_v22, %v4488_v22 }
 0x4e9   :  { %v2383_v37 = vadd.f32 %v2382_v55, %v2381_v61  ;;  %v2437_v41 = vsel %vm35_vm0, %v2407_v33, 0.0 }
 0x4ea   :  { %v2435_v54 = vsel %vm35_vm0, %v2406_v36, 0.0  ;;  %v4499_v58 = vpop.f32.mrb[16].mxu1 }
 0x4eb   :  { %v2385_v46 = vadd.f32 %v2384_v42, %v2383_v37  ;;  %v2436_v38 = vadd.f32 %v2435_v54, %v2434_v32  ;;  %v2745_v26 = vmul.f32 %v4499_v58, %v4499_v58  ;;  %v4503_v30 = vpop.f32.mrb[17].mxu1  ;;  %v2718_v16 = vsel %vm35_vm0, %v4499_v58, 0.0 }
 0x4ec   :  { %v2716_v45 = vsel %vm35_vm0, %v4503_v30, 0.0  ;;  %v2744_v49 = vmul.f32 %v4503_v30, %v4503_v30 }
 0x4ed   :  { %v2386_v12 = vrot.slane %v2385_v46, 4  ;;  %v2438_v15 = vadd.f32 %v2437_v41, %v2436_v38  ;;  %v2717_v18 = vadd.f32 %v2716_v45, %v4426_v0  ;;  %v2771_v23 = vsel %vm35_vm0, %v2745_v26, 0.0 }
 0x4ee   :  { %v2769_v40 = vsel %vm35_vm0, %v2744_v49, 0.0  ;;  %v4514_v51 = vpop.f32.mrb[18].mxu1 }
 0x4ef   :  { %v2387_v39 = vadd.f32 %v2386_v12, %v2385_v46  ;;  %v2439_v63 = vrot.slane %v2438_v15, 4  ;;  %v2770_v24 = vadd.f32 %v2769_v40, %v4428_v29  ;;  %v4518_v4 = vpop.f32.mrb[19].mxu1  ;;  %v2747_v6 = vmul.f32 %v4514_v51, %v4514_v51 }
 0x4f0   :  { %v2719_v27 = vadd.f32 %v2718_v16, %v2717_v18  ;;  %v2720_v0 = vsel %vm35_vm0, %v4518_v4, 0.0  ;;  %v2746_v8 = vmul.f32 %v4518_v4, %v4518_v4  ;;  %v2722_v25 = vsel %vm35_vm0, %v4514_v51, 0.0 }
 0x4f1   :  { %v2388_v20 = vrot.slane %v2387_v39, 2  ;;  %v2440_v28 = vadd.f32 %v2439_v63, %v2438_v15  ;;  %v2772_v10 = vadd.f32 %v2771_v23, %v2770_v24  ;;  %v2775_v55 = vsel %vm35_vm0, %v2747_v6, 0.0 }
 0x4f2   :  { %v2721_v61 = vadd.f32 %v2720_v0, %v2719_v27  ;;  %v2773_v29 = vsel %vm35_vm0, %v2746_v8, 0.0  ;;  %v4529_v56 = vpop.f32.mrb[20].mxu1 }
 0x4f3   :  { %v2389_v32 = vadd.f32 %v2388_v20, %v2387_v39  ;;  %v2441_v33 = vrot.slane %v2440_v28, 2  ;;  %v2774_v36 = vadd.f32 %v2773_v29, %v2772_v10  ;;  %v4532_v37 = vpop.f32.mrb[21].mxu1  ;;  %v2749_v42 = vmul.f32 %v4529_v56, %v4529_v56 }
 0x4f4   :  { %v2723_v54 = vadd.f32 %v2722_v25, %v2721_v61  ;;  %v2724_v46 = vsel %vm35_vm0, %v4532_v37, 0.0  ;;  %v2748_v38 = vmul.f32 %v4532_v37, %v4532_v37  ;;  %v2726_v16 = vsel %vm35_vm0, %v4529_v56, 0.0 }
 0x4f5   :  { %v2390_v26 = vrot.slane %v2389_v32, 1  ;;  %v2442_v41 = vadd.f32 %v2441_v33, %v2440_v28  ;;  %v2776_v45 = vadd.f32 %v2775_v55, %v2774_v36  ;;  %v2779_v39 = vsel %vm35_vm0, %v2749_v42, 0.0 }
 0x4f6   :  { %v2725_v49 = vadd.f32 %v2724_v46, %v2723_v54  ;;  %v2777_v12 = vsel %vm35_vm0, %v2748_v38, 0.0 }
 0x4f7   :  { %v2391_v15 = vadd.f32 %v2390_v26, %v2389_v32  ;;  %v2443_v18 = vrot.slane %v2442_v41, 1  ;;  %v2778_v40 = vadd.f32 %v2777_v12, %v2776_v45  ;;  %v2353_v45 = vld [vmem:[%s4665_s5] sm:$0x1] }
 0x4f8   :  { %v2727_v63 = vadd.f32 %v2726_v16, %v2725_v49  ;;  %v2354_v16 = vld [vmem:[%s4666_s6] sm:$0x1] }
 0x4f9   :  { %v2444_v23 = vadd.f32 %v2443_v18, %v2442_v41  ;;  %v2445_v24 = vmul.f32 0.0078125, %v2391_v15  ;;  %v2780_v6 = vadd.f32 %v2779_v39, %v2778_v40 }
 0x4fa   :  { %v2728_v27 = vrot.slane %v2727_v63, 4 }
 0x4fb   :  { %v2446_v0 = vmul.f32 0.0078125, %v2444_v23  ;;  %v2447_v8 = vmul.f32 %v2445_v24, %v2445_v24  ;;  %v2781_v20 = vrot.slane %v2780_v6, 4 }
 0x4fc   :  { %v2729_v28 = vadd.f32 %v2728_v27, %v2727_v63 }
 0x4fd   :  { %v2448_v10 = vsub.f32 %v2446_v0, %v2447_v8  ;;  %v2782_v25 = vadd.f32 %v2781_v20, %v2780_v6 }
 0x4fe   :  { %v2730_v61 = vrot.slane %v2729_v28, 2 }
 0x4ff   :  { %v2449_v29 = vadd.f32 1e-05, %v2448_v10  ;;  %v2783_v32 = vrot.slane %v2782_v25, 2 }
 0x500   :  { %v2731_v33 = vadd.f32 %v2730_v61, %v2729_v28 }
 0x501   :  { %3148 = vrsqrt.f32 %v2449_v29  ;;  %v2784_v55 = vadd.f32 %v2783_v32, %v2782_v25 }
 0x502   :  { %v2732_v36 = vrot.slane %v2731_v33, 1 }
 0x503   :  { %v2785_v54 = vrot.slane %v2784_v55, 1 }
 0x504   :  { %v2733_v42 = vadd.f32 %v2732_v36, %v2731_v33 }
 0x505   :  { %v2786_v46 = vadd.f32 %v2785_v54, %v2784_v55 }
 0x506   :  { %v2787_v38 = vmul.f32 0.0078125, %v2733_v42 }
 0x507   :  { %v2788_v26 = vmul.f32 0.0078125, %v2786_v46 }
 0x508   :  { %v2789_v41 = vmul.f32 %v2787_v38, %v2787_v38 }
 0x50a   :  { %v2790_v49 = vsub.f32 %v2788_v26, %v2789_v41  ;;  %v2696_v41 = vld [vmem:[%s4668_s9] sm:$0x1] }
 0x50b   :  { %v3149_v12 = vpop.eup %3148 }
 0x50c   :  { %v2451_v15 = vmul.f32 %v3149_v12, %v2353_v45  ;;  %v2791_v18 = vadd.f32 1e-05, %v2790_v49 }
 0x50e   :  { %v2452_v40 = vmul.f32 %v2451_v15, %v2445_v24  ;;  %v2458_v39 = vrot.slane %v2451_v15, %v3863_v44  ;;  %3150 = vrsqrt.f32 %v2791_v18 }
 0x510   :  { %v2453_v63 = vsub.f32 %v2354_v16, %v2452_v40  ;;  %v2460_v23 = vmul.f32 %v2458_v39, %v4320_v11  ;;  %v2461_v6 = vmul.f32 %v4314_v31, %v2458_v39  ;;  %v2462_v27 = vmul.f32 %v2458_v39, %v4330_v17 }
 0x511   :  { %v2463_v0 = vmul.f32 %v4328_v14, %v2458_v39  ;;  %v2464_v8 = vmul.f32 %v2458_v39, %v4400_v60  ;;  %v2465_v20 = vmul.f32 %v4395_v57, %v2458_v39  ;;  %v2466_v28 = vmul.f32 %v2458_v39, %v4432_v48 }
 0x512   :  { %v2467_v24 = vmul.f32 %v4430_v2, %v2458_v39  ;;  %v2468_v10 = vmul.f32 %v2458_v39, %v4446_v50  ;;  %v2469_v25 = vmul.f32 %v4444_v1, %v2458_v39  ;;  %v2470_v11 = vmul.f32 %v2458_v39, %v4460_v13 }
 0x513   :  { %v2471_v31 = vmul.f32 %v4458_v53, %v2458_v39  ;;  %v2472_v17 = vmul.f32 %v2458_v39, %v4474_v19  ;;  %v2473_v14 = vmul.f32 %v4472_v21, %v2458_v39  ;;  %v2474_v60 = vmul.f32 %v2458_v39, %v4488_v22  ;;  %v2695_v53 = vld [vmem:[%s4667_s8] sm:$0x1] }
 0x514   :  { %v2475_v57 = vmul.f32 %v4486_v59, %v2458_v39  ;;  %v2480_v48 = vrot.slane %v2453_v63, %v3863_v44 }
 0x516   :  { %v4568_v61 = vadd.f32 %v2480_v48, %v2474_v60  ;;  %v2482_v2 = vadd.f32 %v2480_v48, %v2460_v23  ;;  %v2483_v50 = vadd.f32 %v2480_v48, %v2461_v6  ;;  %v2484_v29 = vadd.f32 %v2480_v48, %v2462_v27 }
 0x517   :  { %v2485_v1 = vadd.f32 %v2480_v48, %v2463_v0  ;;  %v2486_v32 = vadd.f32 %v2480_v48, %v2464_v8  ;;  %v2487_v13 = vadd.f32 %v2480_v48, %v2465_v20  ;;  %v2488_v33 = vadd.f32 %v2480_v48, %v2466_v28 }
 0x518   :  { %v3151_v21 = vpop.eup %3150  ;;  %v2489_v19 = vadd.f32 %v2480_v48, %v2467_v24  ;;  %v2490_v22 = vadd.f32 %v2480_v48, %v2468_v10  ;;  %v2491_v55 = vadd.f32 %v2480_v48, %v2469_v25  ;;  %v2492_v59 = vadd.f32 %v2480_v48, %v2470_v11 }
 0x519   :  { %v2493_v36 = vadd.f32 %v2480_v48, %v2471_v31  ;;  %v2494_v54 = vadd.f32 %v2480_v48, %v2472_v17  ;;  %v2495_v42 = vadd.f32 %v2480_v48, %v2473_v14  ;;  %v2497_v46 = vadd.f32 %v2480_v48, %v2475_v57 }
 0x51a   :  { %v2793_v26 = vmul.f32 %v3151_v21, %v2695_v53 }
 0x51c   :  { %v2794_v45 = vmul.f32 %v2793_v26, %v2787_v38  ;;  %v2800_v49 = vrot.slane %v2793_v26, %v3863_v44 }
 0x51e   :  { %v2795_v12 = vsub.f32 %v2696_v41, %v2794_v45  ;;  %v2802_v15 = vmul.f32 %v2800_v49, %v4348_v5  ;;  %v2803_v18 = vmul.f32 %v4342_v3, %v2800_v49  ;;  %v2804_v16 = vmul.f32 %v2800_v49, %v4359_v9 }
 0x51f   :  { %v2805_v40 = vmul.f32 %v4354_v7, %v2800_v49  ;;  %v2806_v39 = vmul.f32 %v2800_v49, %v4371_v62  ;;  %v2807_v63 = vmul.f32 %v4368_v35, %v2800_v49  ;;  %v2808_v23 = vmul.f32 %v2800_v49, %v4382_v34 }
 0x520   :  { %v2809_v6 = vmul.f32 %v4380_v43, %v2800_v49  ;;  %v2810_v38 = vmul.f32 %v2800_v49, %v4393_v52  ;;  %v2811_v27 = vmul.f32 %v4389_v47, %v2800_v49  ;;  %v2812_v5 = vmul.f32 %v2800_v49, %v4503_v30 }
 0x521   :  { %v2813_v3 = vmul.f32 %v4499_v58, %v2800_v49  ;;  %v2814_v9 = vmul.f32 %v2800_v49, %v4518_v4  ;;  %v2815_v7 = vmul.f32 %v4514_v51, %v2800_v49  ;;  %v2816_v62 = vmul.f32 %v2800_v49, %v4532_v37 }
 0x522   :  { %v2817_v35 = vmul.f32 %v4529_v56, %v2800_v49  ;;  %v2822_v34 = vrot.slane %v2795_v12, %v3863_v44 }
 0x524   :  { %v2824_v0 = vadd.f32 %v2822_v34, %v2802_v15  ;;  %v2825_v43 = vadd.f32 %v2822_v34, %v2803_v18  ;;  %v2826_v8 = vadd.f32 %v2822_v34, %v2804_v16  ;;  %v2827_v52 = vadd.f32 %v2822_v34, %v2805_v40 }
 0x525   :  { %v2828_v20 = vadd.f32 %v2822_v34, %v2806_v39  ;;  %v2829_v47 = vadd.f32 %v2822_v34, %v2807_v63  ;;  %v2830_v28 = vadd.f32 %v2822_v34, %v2808_v23  ;;  %v2831_v30 = vadd.f32 %v2822_v34, %v2809_v6 }
 0x526   :  { %v2832_v24 = vadd.f32 %v2822_v34, %v2810_v38  ;;  %v2833_v58 = vadd.f32 %v2822_v34, %v2811_v27  ;;  %v2834_v10 = vadd.f32 %v2822_v34, %v2812_v5  ;;  %v2835_v4 = vadd.f32 %v2822_v34, %v2813_v3 }
 0x527   :  { %v2836_v25 = vadd.f32 %v2822_v34, %v2814_v9  ;;  %v2837_v51 = vadd.f32 %v2822_v34, %v2815_v7  ;;  %v2838_v11 = vadd.f32 %v2822_v34, %v2816_v62  ;;  %v2839_v37 = vadd.f32 %v2822_v34, %v2817_v35 }
 0x528   :  { %v2840_v31 = vadd.f32 %v2824_v0, %v2482_v2  ;;  %v2841_v56 = vadd.f32 %v2825_v43, %v2483_v50  ;;  %v2842_v17 = vadd.f32 %v2826_v8, %v2484_v29  ;;  %v2843_v44 = vadd.f32 %v2827_v52, %v2485_v1 }
 0x529   :  { %v2844_v14 = vadd.f32 %v2828_v20, %v2486_v32  ;;  %v2845_v60 = vadd.f32 %v2829_v47, %v2487_v13  ;;  %v2846_v57 = vadd.f32 %v2830_v28, %v2488_v33  ;;  %v2847_v48 = vadd.f32 %v2831_v30, %v2489_v19 }
 0x52a   :  { %v2848_v53 = vadd.f32 %v2832_v24, %v2490_v22  ;;  %v2849_v21 = vadd.f32 %v2833_v58, %v2491_v55  ;;  %v2850_v26 = vadd.f32 %v2834_v10, %v2492_v59  ;;  %v2851_v41 = vadd.f32 %v2835_v4, %v2493_v36 }
 0x52b   :  { %v2852_v45 = vadd.f32 %v2836_v25, %v2494_v54  ;;  %v2853_v49 = vadd.f32 %v2837_v51, %v2495_v42  ;;  %v2854_v12 = vadd.f32 %v2838_v11, %v4568_v61  ;;  %v2855_v15 = vadd.f32 %v2839_v37, %v2497_v46 }
 0x52c   :  { %v2856_v18 = vmax.f32 %v2840_v31, 0.0  ;;  %v2857_v16 = vmax.f32 %v2841_v56, 0.0  ;;  %v2858_v40 = vmax.f32 %v2842_v17, 0.0  ;;  %v2859_v2 = vmax.f32 %v2843_v44, 0.0 }
 0x52d   :  { %v2860_v50 = vmax.f32 %v2844_v14, 0.0  ;;  %v2861_v29 = vmax.f32 %v2845_v60, 0.0  ;;  %v2862_v1 = vmax.f32 %v2846_v57, 0.0  ;;  %v2863_v32 = vmax.f32 %v2847_v48, 0.0 }
 0x52e   :  { %v2864_v13 = vmax.f32 %v2848_v53, 0.0  ;;  %v2865_v33 = vmax.f32 %v2849_v21, 0.0  ;;  %v2866_v19 = vmax.f32 %v2850_v26, 0.0  ;;  %v2867_v22 = vmax.f32 %v2851_v41, 0.0  ;;  %2872 = vst.msk [vmem:[%s4669_s10] sm:$0xff] %vm35_vm0, %v2856_v18  ;;  %2873 = vst.msk [vmem:[%s4669_s10 + $0x8] sm:$0xff] %vm35_vm0, %v2857_v16 }
 0x52f   :  { %2874 = vst.msk [vmem:[%s4669_s10 + $0x10] sm:$0xff] %vm35_vm0, %v2858_v40  ;;  %2875 = vst.msk [vmem:[%s4669_s10 + $0x18] sm:$0xff] %vm35_vm0, %v2859_v2  ;;  %v2868_v61 = vmax.f32 %v2852_v45, 0.0  ;;  %v2869_v55 = vmax.f32 %v2853_v49, 0.0  ;;  %v2870_v59 = vmax.f32 %v2854_v12, 0.0  ;;  %v2871_v36 = vmax.f32 %v2855_v15, 0.0 }
 0x530   :  { %2876 = vst.msk [vmem:[%s4669_s10 + $0x20] sm:$0xff] %vm35_vm0, %v2860_v50  ;;  %2877 = vst.msk [vmem:[%s4669_s10 + $0x28] sm:$0xff] %vm35_vm0, %v2861_v29 }
 0x531   :  { %2878 = vst.msk [vmem:[%s4669_s10 + $0x30] sm:$0xff] %vm35_vm0, %v2862_v1  ;;  %2879 = vst.msk [vmem:[%s4669_s10 + $0x38] sm:$0xff] %vm35_vm0, %v2863_v32 }
 0x532   :  { %2880 = vst.msk [vmem:[%s4669_s10 + $0x40] sm:$0xff] %vm35_vm0, %v2864_v13  ;;  %2881 = vst.msk [vmem:[%s4669_s10 + $0x48] sm:$0xff] %vm35_vm0, %v2865_v33 }
 0x533   :  { %2882 = vst.msk [vmem:[%s4669_s10 + $0x50] sm:$0xff] %vm35_vm0, %v2866_v19  ;;  %2883 = vst.msk [vmem:[%s4669_s10 + $0x58] sm:$0xff] %vm35_vm0, %v2867_v22 }
 0x534   :  { %2884 = vst.msk [vmem:[%s4669_s10 + $0x60] sm:$0xff] %vm35_vm0, %v2868_v61  ;;  %2885 = vst.msk [vmem:[%s4669_s10 + $0x68] sm:$0xff] %vm35_vm0, %v2869_v55 }
 0x535   :  { %2886 = vst.msk [vmem:[%s4669_s10 + $0x70] sm:$0xff] %vm35_vm0, %v2870_v59  ;;  %2887 = vst.msk [vmem:[%s4669_s10 + $0x78] sm:$0xff] %vm35_vm0, %v2871_v36 }

</bundles_post_ra>
